<compile_context>
chip_gen: v7x
topology: tpu7x:2x2x1
jax: 0.10.0
libtpu: 0.0.40
codegen_flags: <defaults>
</compile_context>

<pallas_src>
import jax
import jax.numpy as jnp
from jax.experimental import pallas as pl
from jax.experimental.pallas import tpu as pltpu

# ----------------------------- config -------------------------------------
N, C_IN, H, W = 2, 4, 16, 16          # input (NCHW, PyTorch convention)
C_OUT = 8
KH = KW = 3
STRIDE = 1
PAD = 1
EPS = 1e-5
H_OUT = (H + 2 * PAD - KH) // STRIDE + 1
W_OUT = (W + 2 * PAD - KW) // STRIDE + 1
HW = H_OUT * W_OUT                    # 256  (lane-dense spatial axis)
M = N * HW                            # 512  columns of the im2col matrix
K = KH * KW * C_IN                    # 36   contraction length


# ----------------------------- kernel --------------------------------------
def _conv_bn_prelu_kernel(x_ref, w_ref, gamma_ref, beta_ref, alpha_ref,
                          o_ref, xp_ref, col_ref):
    """Fused conv3x3(s=1,p=1,bias=False) + BatchNorm2d(batch stats) + PReLU.

    x_ref:     (N, C_IN, H, W)           raw NCHW input (no wrapper relayout)
    w_ref:     (C_OUT, KH*KW*C_IN)       flattened conv weight
    gamma/beta/alpha_ref: (C_OUT, 1)     per-channel BN / PReLU parameters
    o_ref:     (N, C_OUT, H_OUT*W_OUT)   lane-dense NCHW-native output
    xp_ref:    (N, C_IN, H+2P, W+2P)     scratch: zero-padded input
    col_ref:   (K, N*H_OUT*W_OUT)        scratch: im2col patch matrix
    """
    # ---- zero-pad the input inside the kernel (no jnp.pad glue in HBM) -----
    xp_ref[...] = jnp.zeros(xp_ref.shape, xp_ref.dtype)
    xp_ref[:, :, PAD:PAD + H, PAD:PAD + W] = x_ref[...]

    # ---- im2col: build the whole patch matrix once into VMEM scratch -------
    # column index = n*HW + h*W_OUT + w ; row index = (kh*KW + kw)*C_IN + c
    for n in range(N):
        for kh in range(KH):
            for kw in range(KW):
                tap = xp_ref[n, :, kh:kh + H_OUT, kw:kw + W_OUT]   # (C_IN,16,16)
                r = (kh * KW + kw) * C_IN
                col_ref[r:r + C_IN, n * HW:(n + 1) * HW] = tap.reshape(C_IN, HW)

    # ---- single MXU matmul: (C_OUT, K) @ (K, M) -> (C_OUT, M) ---------------
    y = jnp.dot(w_ref[...], col_ref[...], preferred_element_type=jnp.float32)

    # ---- BatchNorm2d (training-mode biased batch stats over N,H,W), folded
    #      into one per-channel affine and fused with PReLU ------------------
    mean = jnp.mean(y, axis=1, keepdims=True)                         # (C_OUT,1)
    var = jnp.mean((y - mean) * (y - mean), axis=1, keepdims=True)    # (C_OUT,1)
    a = gamma_ref[...] * jax.lax.rsqrt(var + EPS)                     # (C_OUT,1)
    b = beta_ref[...] - mean * a                                      # (C_OUT,1)
    y_hat = y * a + b
    out = jnp.where(y_hat >= 0.0, y_hat, alpha_ref[...] * y_hat)

    # ---- lane-dense store, NCHW-native --------------------------------------
    for n in range(N):
        o_ref[n, :, :] = out[:, n * HW:(n + 1) * HW]


# ----------------------------- wrapper --------------------------------------
@jax.jit
def conv_bn_prelu(x_nchw, w_oihw, gamma, beta, alpha):
    # Only tiny parameter reshapes happen in glue; x stays NCHW (no transpose,
    # no pad — both are done inside the kernel).
    # w_flat[o, (kh*KW+kw)*C_IN + c] = w[o, c, kh, kw]
    w_flat = jnp.transpose(w_oihw, (0, 2, 3, 1)).reshape(C_OUT, K)
    w_flat = w_flat.astype(jnp.float32)
    gamma2 = gamma.reshape(C_OUT, 1).astype(jnp.float32)
    beta2 = beta.reshape(C_OUT, 1).astype(jnp.float32)
    alpha2 = alpha.reshape(C_OUT, 1).astype(jnp.float32)

    vmem = pl.BlockSpec(memory_space=pltpu.MemorySpace.VMEM)
    out3 = pl.pallas_call(
        _conv_bn_prelu_kernel,
        out_shape=jax.ShapeDtypeStruct((N, C_OUT, HW), jnp.float32),
        in_specs=[vmem, vmem, vmem, vmem, vmem],
        out_specs=vmem,
        scratch_shapes=[
            pltpu.VMEM((N, C_IN, H + 2 * PAD, W + 2 * PAD), jnp.float32),
            pltpu.VMEM((K, M), jnp.float32),
        ],
    )(x_nchw.astype(jnp.float32), w_flat, gamma2, beta2, alpha2)

    # (N, C_OUT, H*W) -> (N, C_OUT, H, W): pure row-major reshape, no relayout.
    return out3.reshape(N, C_OUT, H_OUT, W_OUT)


# ----------------------------- reference (plain JAX) ------------------------
def _reference(x_nchw, w_oihw, gamma, beta, alpha):
    y = jax.lax.conv_general_dilated(
        x_nchw, w_oihw, window_strides=(STRIDE, STRIDE),
        padding=((PAD, PAD), (PAD, PAD)),
        dimension_numbers=("NCHW", "OIHW", "NCHW"))
    mean = jnp.mean(y, axis=(0, 2, 3), keepdims=True)
    var = jnp.mean((y - mean) ** 2, axis=(0, 2, 3), keepdims=True)
    yh = (y - mean) * jax.lax.rsqrt(var + EPS)
    yh = yh * gamma.reshape(1, -1, 1, 1) + beta.reshape(1, -1, 1, 1)
    a = alpha.reshape(1, -1, 1, 1)
    return jnp.where(yh >= 0, yh, a * yh)


# ----------------------------- main ------------------------------------------
if __name__ == "__main__":
    key = jax.random.PRNGKey(0)
    kx, kw = jax.random.split(key)

    x = jax.random.normal(kx, (N, C_IN, H, W), dtype=jnp.float32)
    # deterministic parameter init (shapes match nn.Conv2d / BatchNorm2d / PReLU)
    w = jax.random.normal(kw, (C_OUT, C_IN, KH, KW), dtype=jnp.float32) * 0.1
    gamma = jnp.ones((C_OUT,), jnp.float32)           # BN weight default
    beta = jnp.zeros((C_OUT,), jnp.float32)           # BN bias default
    alpha = jnp.full((C_OUT,), 0.25, jnp.float32)     # PReLU default slope

    out = conv_bn_prelu(x, w, gamma, beta, alpha)
    out = jax.block_until_ready(out)

    ref = _reference(x, w, gamma, beta, alpha)
    assert out.shape == (N, C_OUT, H_OUT, W_OUT)
    assert jnp.allclose(out, ref, atol=1e-4, rtol=1e-4), "mismatch vs reference"

    print("KERNEL_OK")
</pallas_src>

<mosaic_0001>
module attributes {stable_mosaic.version = 11 : i64} {
  func.func @_conv_bn_prelu_kernel(%arg0: memref<2x4x16x16xf32, #tpu.memory_space<vmem>>, %arg1: memref<8x36xf32, #tpu.memory_space<vmem>>, %arg2: memref<8x1xf32, #tpu.memory_space<vmem>>, %arg3: memref<8x1xf32, #tpu.memory_space<vmem>>, %arg4: memref<8x1xf32, #tpu.memory_space<vmem>>, %arg5: memref<2x8x256xf32, #tpu.memory_space<vmem>>, %arg6: memref<2x4x18x18xf32, #tpu.memory_space<vmem>>, %arg7: memref<36x512xf32, #tpu.memory_space<vmem>>) attributes {dimension_semantics = [], scalar_prefetch = 0 : i64, scratch_operands = 2 : i64, tpu.core_type = #tpu.core_type<tc>} {
    %cst = arith.constant 0.000000e+00 : f32
    %0 = vector.broadcast %cst : f32 to vector<2x4x18x18xf32>
    %c0 = arith.constant 0 : index
    %c0_0 = arith.constant 0 : index
    %c0_1 = arith.constant 0 : index
    %c0_2 = arith.constant 0 : index
    %1 = vector.load %arg6[%c0, %c0_0, %c0_1, %c0_2] : memref<2x4x18x18xf32, #tpu.memory_space<vmem>>, vector<2x4x18x18xf32>
    tpu.vector_store %arg6[%c0, %c0_0, %c0_1, %c0_2], %0 {strides = array<i32>} : memref<2x4x18x18xf32, #tpu.memory_space<vmem>>, vector<2x4x18x18xf32>,
    %c0_3 = arith.constant 0 : index
    %c0_4 = arith.constant 0 : index
    %c0_5 = arith.constant 0 : index
    %c0_6 = arith.constant 0 : index
    %2 = vector.load %arg0[%c0_3, %c0_4, %c0_5, %c0_6] : memref<2x4x16x16xf32, #tpu.memory_space<vmem>>, vector<2x4x16x16xf32>
    %c0_7 = arith.constant 0 : index
    %c0_8 = arith.constant 0 : index
    %c1 = arith.constant 1 : index
    %c1_9 = arith.constant 1 : index
    %3 = vector.load %arg6[%c0_7, %c0_8, %c1, %c1_9] : memref<2x4x18x18xf32, #tpu.memory_space<vmem>>, vector<2x4x16x16xf32>
    tpu.vector_store %arg6[%c0_7, %c0_8, %c1, %c1_9], %2 {strides = array<i32>} : memref<2x4x18x18xf32, #tpu.memory_space<vmem>>, vector<2x4x16x16xf32>,
    %c0_10 = arith.constant 0 : index
    %c0_11 = arith.constant 0 : index
    %c0_12 = arith.constant 0 : index
    %c0_13 = arith.constant 0 : index
    %4 = vector.load %arg6[%c0_10, %c0_11, %c0_12, %c0_13] : memref<2x4x18x18xf32, #tpu.memory_space<vmem>>, vector<1x4x16x16xf32>
    %5 = vector.shape_cast %4 : vector<1x4x16x16xf32> to vector<4x16x16xf32>
    %6 = vector.shape_cast %5 : vector<4x16x16xf32> to vector<4x256xf32>
    %c0_14 = arith.constant 0 : index
    %c0_15 = arith.constant 0 : index
    %7 = vector.load %arg7[%c0_14, %c0_15] : memref<36x512xf32, #tpu.memory_space<vmem>>, vector<4x256xf32>
    tpu.vector_store %arg7[%c0_14, %c0_15], %6 {strides = array<i32>} : memref<36x512xf32, #tpu.memory_space<vmem>>, vector<4x256xf32>,
    %c0_16 = arith.constant 0 : index
    %c0_17 = arith.constant 0 : index
    %c0_18 = arith.constant 0 : index
    %c1_19 = arith.constant 1 : index
    %8 = vector.load %arg6[%c0_16, %c0_17, %c0_18, %c1_19] : memref<2x4x18x18xf32, #tpu.memory_space<vmem>>, vector<1x4x16x16xf32>
    %9 = vector.shape_cast %8 : vector<1x4x16x16xf32> to vector<4x16x16xf32>
    %10 = vector.shape_cast %9 : vector<4x16x16xf32> to vector<4x256xf32>
    %c4 = arith.constant 4 : index
    %c0_20 = arith.constant 0 : index
    %11 = vector.load %arg7[%c4, %c0_20] : memref<36x512xf32, #tpu.memory_space<vmem>>, vector<4x256xf32>
    tpu.vector_store %arg7[%c4, %c0_20], %10 {strides = array<i32>} : memref<36x512xf32, #tpu.memory_space<vmem>>, vector<4x256xf32>,
    %c0_21 = arith.constant 0 : index
    %c0_22 = arith.constant 0 : index
    %c0_23 = arith.constant 0 : index
    %c2 = arith.constant 2 : index
    %12 = vector.load %arg6[%c0_21, %c0_22, %c0_23, %c2] : memref<2x4x18x18xf32, #tpu.memory_space<vmem>>, vector<1x4x16x16xf32>
    %13 = vector.shape_cast %12 : vector<1x4x16x16xf32> to vector<4x16x16xf32>
    %14 = vector.shape_cast %13 : vector<4x16x16xf32> to vector<4x256xf32>
    %c8 = arith.constant 8 : index
    %c0_24 = arith.constant 0 : index
    %15 = vector.load %arg7[%c8, %c0_24] : memref<36x512xf32, #tpu.memory_space<vmem>>, vector<4x256xf32>
    tpu.vector_store %arg7[%c8, %c0_24], %14 {strides = array<i32>} : memref<36x512xf32, #tpu.memory_space<vmem>>, vector<4x256xf32>,
    %c0_25 = arith.constant 0 : index
    %c0_26 = arith.constant 0 : index
    %c1_27 = arith.constant 1 : index
    %c0_28 = arith.constant 0 : index
    %16 = vector.load %arg6[%c0_25, %c0_26, %c1_27, %c0_28] : memref<2x4x18x18xf32, #tpu.memory_space<vmem>>, vector<1x4x16x16xf32>
    %17 = vector.shape_cast %16 : vector<1x4x16x16xf32> to vector<4x16x16xf32>
    %18 = vector.shape_cast %17 : vector<4x16x16xf32> to vector<4x256xf32>
    %c12 = arith.constant 12 : index
    %c0_29 = arith.constant 0 : index
    %19 = vector.load %arg7[%c12, %c0_29] : memref<36x512xf32, #tpu.memory_space<vmem>>, vector<4x256xf32>
    tpu.vector_store %arg7[%c12, %c0_29], %18 {strides = array<i32>} : memref<36x512xf32, #tpu.memory_space<vmem>>, vector<4x256xf32>,
    %c0_30 = arith.constant 0 : index
    %c0_31 = arith.constant 0 : index
    %c1_32 = arith.constant 1 : index
    %c1_33 = arith.constant 1 : index
    %20 = vector.load %arg6[%c0_30, %c0_31, %c1_32, %c1_33] : memref<2x4x18x18xf32, #tpu.memory_space<vmem>>, vector<1x4x16x16xf32>
    %21 = vector.shape_cast %20 : vector<1x4x16x16xf32> to vector<4x16x16xf32>
    %22 = vector.shape_cast %21 : vector<4x16x16xf32> to vector<4x256xf32>
    %c16 = arith.constant 16 : index
    %c0_34 = arith.constant 0 : index
    %23 = vector.load %arg7[%c16, %c0_34] : memref<36x512xf32, #tpu.memory_space<vmem>>, vector<4x256xf32>
    tpu.vector_store %arg7[%c16, %c0_34], %22 {strides = array<i32>} : memref<36x512xf32, #tpu.memory_space<vmem>>, vector<4x256xf32>,
    %c0_35 = arith.constant 0 : index
    %c0_36 = arith.constant 0 : index
    %c1_37 = arith.constant 1 : index
    %c2_38 = arith.constant 2 : index
    %24 = vector.load %arg6[%c0_35, %c0_36, %c1_37, %c2_38] : memref<2x4x18x18xf32, #tpu.memory_space<vmem>>, vector<1x4x16x16xf32>
    %25 = vector.shape_cast %24 : vector<1x4x16x16xf32> to vector<4x16x16xf32>
    %26 = vector.shape_cast %25 : vector<4x16x16xf32> to vector<4x256xf32>
    %c20 = arith.constant 20 : index
    %c0_39 = arith.constant 0 : index
    %27 = vector.load %arg7[%c20, %c0_39] : memref<36x512xf32, #tpu.memory_space<vmem>>, vector<4x256xf32>
    tpu.vector_store %arg7[%c20, %c0_39], %26 {strides = array<i32>} : memref<36x512xf32, #tpu.memory_space<vmem>>, vector<4x256xf32>,
    %c0_40 = arith.constant 0 : index
    %c0_41 = arith.constant 0 : index
    %c2_42 = arith.constant 2 : index
    %c0_43 = arith.constant 0 : index
    %28 = vector.load %arg6[%c0_40, %c0_41, %c2_42, %c0_43] : memref<2x4x18x18xf32, #tpu.memory_space<vmem>>, vector<1x4x16x16xf32>
    %29 = vector.shape_cast %28 : vector<1x4x16x16xf32> to vector<4x16x16xf32>
    %30 = vector.shape_cast %29 : vector<4x16x16xf32> to vector<4x256xf32>
    %c24 = arith.constant 24 : index
    %c0_44 = arith.constant 0 : index
    %31 = vector.load %arg7[%c24, %c0_44] : memref<36x512xf32, #tpu.memory_space<vmem>>, vector<4x256xf32>
    tpu.vector_store %arg7[%c24, %c0_44], %30 {strides = array<i32>} : memref<36x512xf32, #tpu.memory_space<vmem>>, vector<4x256xf32>,
    %c0_45 = arith.constant 0 : index
    %c0_46 = arith.constant 0 : index
    %c2_47 = arith.constant 2 : index
    %c1_48 = arith.constant 1 : index
    %32 = vector.load %arg6[%c0_45, %c0_46, %c2_47, %c1_48] : memref<2x4x18x18xf32, #tpu.memory_space<vmem>>, vector<1x4x16x16xf32>
    %33 = vector.shape_cast %32 : vector<1x4x16x16xf32> to vector<4x16x16xf32>
    %34 = vector.shape_cast %33 : vector<4x16x16xf32> to vector<4x256xf32>
    %c28 = arith.constant 28 : index
    %c0_49 = arith.constant 0 : index
    %35 = vector.load %arg7[%c28, %c0_49] : memref<36x512xf32, #tpu.memory_space<vmem>>, vector<4x256xf32>
    tpu.vector_store %arg7[%c28, %c0_49], %34 {strides = array<i32>} : memref<36x512xf32, #tpu.memory_space<vmem>>, vector<4x256xf32>,
    %c0_50 = arith.constant 0 : index
    %c0_51 = arith.constant 0 : index
    %c2_52 = arith.constant 2 : index
    %c2_53 = arith.constant 2 : index
    %36 = vector.load %arg6[%c0_50, %c0_51, %c2_52, %c2_53] : memref<2x4x18x18xf32, #tpu.memory_space<vmem>>, vector<1x4x16x16xf32>
    %37 = vector.shape_cast %36 : vector<1x4x16x16xf32> to vector<4x16x16xf32>
    %38 = vector.shape_cast %37 : vector<4x16x16xf32> to vector<4x256xf32>
    %c32 = arith.constant 32 : index
    %c0_54 = arith.constant 0 : index
    %39 = vector.load %arg7[%c32, %c0_54] : memref<36x512xf32, #tpu.memory_space<vmem>>, vector<4x256xf32>
    tpu.vector_store %arg7[%c32, %c0_54], %38 {strides = array<i32>} : memref<36x512xf32, #tpu.memory_space<vmem>>, vector<4x256xf32>,
    %c1_55 = arith.constant 1 : index
    %c0_56 = arith.constant 0 : index
    %c0_57 = arith.constant 0 : index
    %c0_58 = arith.constant 0 : index
    %40 = vector.load %arg6[%c1_55, %c0_56, %c0_57, %c0_58] : memref<2x4x18x18xf32, #tpu.memory_space<vmem>>, vector<1x4x16x16xf32>
    %41 = vector.shape_cast %40 : vector<1x4x16x16xf32> to vector<4x16x16xf32>
    %42 = vector.shape_cast %41 : vector<4x16x16xf32> to vector<4x256xf32>
    %c0_59 = arith.constant 0 : index
    %c256 = arith.constant 256 : index
    %43 = vector.load %arg7[%c0_59, %c256] : memref<36x512xf32, #tpu.memory_space<vmem>>, vector<4x256xf32>
    tpu.vector_store %arg7[%c0_59, %c256], %42 {strides = array<i32>} : memref<36x512xf32, #tpu.memory_space<vmem>>, vector<4x256xf32>,
    %c1_60 = arith.constant 1 : index
    %c0_61 = arith.constant 0 : index
    %c0_62 = arith.constant 0 : index
    %c1_63 = arith.constant 1 : index
    %44 = vector.load %arg6[%c1_60, %c0_61, %c0_62, %c1_63] : memref<2x4x18x18xf32, #tpu.memory_space<vmem>>, vector<1x4x16x16xf32>
    %45 = vector.shape_cast %44 : vector<1x4x16x16xf32> to vector<4x16x16xf32>
    %46 = vector.shape_cast %45 : vector<4x16x16xf32> to vector<4x256xf32>
    %c4_64 = arith.constant 4 : index
    %c256_65 = arith.constant 256 : index
    %47 = vector.load %arg7[%c4_64, %c256_65] : memref<36x512xf32, #tpu.memory_space<vmem>>, vector<4x256xf32>
    tpu.vector_store %arg7[%c4_64, %c256_65], %46 {strides = array<i32>} : memref<36x512xf32, #tpu.memory_space<vmem>>, vector<4x256xf32>,
    %c1_66 = arith.constant 1 : index
    %c0_67 = arith.constant 0 : index
    %c0_68 = arith.constant 0 : index
    %c2_69 = arith.constant 2 : index
    %48 = vector.load %arg6[%c1_66, %c0_67, %c0_68, %c2_69] : memref<2x4x18x18xf32, #tpu.memory_space<vmem>>, vector<1x4x16x16xf32>
    %49 = vector.shape_cast %48 : vector<1x4x16x16xf32> to vector<4x16x16xf32>
    %50 = vector.shape_cast %49 : vector<4x16x16xf32> to vector<4x256xf32>
    %c8_70 = arith.constant 8 : index
    %c256_71 = arith.constant 256 : index
    %51 = vector.load %arg7[%c8_70, %c256_71] : memref<36x512xf32, #tpu.memory_space<vmem>>, vector<4x256xf32>
    tpu.vector_store %arg7[%c8_70, %c256_71], %50 {strides = array<i32>} : memref<36x512xf32, #tpu.memory_space<vmem>>, vector<4x256xf32>,
    %c1_72 = arith.constant 1 : index
    %c0_73 = arith.constant 0 : index
    %c1_74 = arith.constant 1 : index
    %c0_75 = arith.constant 0 : index
    %52 = vector.load %arg6[%c1_72, %c0_73, %c1_74, %c0_75] : memref<2x4x18x18xf32, #tpu.memory_space<vmem>>, vector<1x4x16x16xf32>
    %53 = vector.shape_cast %52 : vector<1x4x16x16xf32> to vector<4x16x16xf32>
    %54 = vector.shape_cast %53 : vector<4x16x16xf32> to vector<4x256xf32>
    %c12_76 = arith.constant 12 : index
    %c256_77 = arith.constant 256 : index
    %55 = vector.load %arg7[%c12_76, %c256_77] : memref<36x512xf32, #tpu.memory_space<vmem>>, vector<4x256xf32>
    tpu.vector_store %arg7[%c12_76, %c256_77], %54 {strides = array<i32>} : memref<36x512xf32, #tpu.memory_space<vmem>>, vector<4x256xf32>,
    %c1_78 = arith.constant 1 : index
    %c0_79 = arith.constant 0 : index
    %c1_80 = arith.constant 1 : index
    %c1_81 = arith.constant 1 : index
    %56 = vector.load %arg6[%c1_78, %c0_79, %c1_80, %c1_81] : memref<2x4x18x18xf32, #tpu.memory_space<vmem>>, vector<1x4x16x16xf32>
    %57 = vector.shape_cast %56 : vector<1x4x16x16xf32> to vector<4x16x16xf32>
    %58 = vector.shape_cast %57 : vector<4x16x16xf32> to vector<4x256xf32>
    %c16_82 = arith.constant 16 : index
    %c256_83 = arith.constant 256 : index
    %59 = vector.load %arg7[%c16_82, %c256_83] : memref<36x512xf32, #tpu.memory_space<vmem>>, vector<4x256xf32>
    tpu.vector_store %arg7[%c16_82, %c256_83], %58 {strides = array<i32>} : memref<36x512xf32, #tpu.memory_space<vmem>>, vector<4x256xf32>,
    %c1_84 = arith.constant 1 : index
    %c0_85 = arith.constant 0 : index
    %c1_86 = arith.constant 1 : index
    %c2_87 = arith.constant 2 : index
    %60 = vector.load %arg6[%c1_84, %c0_85, %c1_86, %c2_87] : memref<2x4x18x18xf32, #tpu.memory_space<vmem>>, vector<1x4x16x16xf32>
    %61 = vector.shape_cast %60 : vector<1x4x16x16xf32> to vector<4x16x16xf32>
    %62 = vector.shape_cast %61 : vector<4x16x16xf32> to vector<4x256xf32>
    %c20_88 = arith.constant 20 : index
    %c256_89 = arith.constant 256 : index
    %63 = vector.load %arg7[%c20_88, %c256_89] : memref<36x512xf32, #tpu.memory_space<vmem>>, vector<4x256xf32>
    tpu.vector_store %arg7[%c20_88, %c256_89], %62 {strides = array<i32>} : memref<36x512xf32, #tpu.memory_space<vmem>>, vector<4x256xf32>,
    %c1_90 = arith.constant 1 : index
    %c0_91 = arith.constant 0 : index
    %c2_92 = arith.constant 2 : index
    %c0_93 = arith.constant 0 : index
    %64 = vector.load %arg6[%c1_90, %c0_91, %c2_92, %c0_93] : memref<2x4x18x18xf32, #tpu.memory_space<vmem>>, vector<1x4x16x16xf32>
    %65 = vector.shape_cast %64 : vector<1x4x16x16xf32> to vector<4x16x16xf32>
    %66 = vector.shape_cast %65 : vector<4x16x16xf32> to vector<4x256xf32>
    %c24_94 = arith.constant 24 : index
    %c256_95 = arith.constant 256 : index
    %67 = vector.load %arg7[%c24_94, %c256_95] : memref<36x512xf32, #tpu.memory_space<vmem>>, vector<4x256xf32>
    tpu.vector_store %arg7[%c24_94, %c256_95], %66 {strides = array<i32>} : memref<36x512xf32, #tpu.memory_space<vmem>>, vector<4x256xf32>,
    %c1_96 = arith.constant 1 : index
    %c0_97 = arith.constant 0 : index
    %c2_98 = arith.constant 2 : index
    %c1_99 = arith.constant 1 : index
    %68 = vector.load %arg6[%c1_96, %c0_97, %c2_98, %c1_99] : memref<2x4x18x18xf32, #tpu.memory_space<vmem>>, vector<1x4x16x16xf32>
    %69 = vector.shape_cast %68 : vector<1x4x16x16xf32> to vector<4x16x16xf32>
    %70 = vector.shape_cast %69 : vector<4x16x16xf32> to vector<4x256xf32>
    %c28_100 = arith.constant 28 : index
    %c256_101 = arith.constant 256 : index
    %71 = vector.load %arg7[%c28_100, %c256_101] : memref<36x512xf32, #tpu.memory_space<vmem>>, vector<4x256xf32>
    tpu.vector_store %arg7[%c28_100, %c256_101], %70 {strides = array<i32>} : memref<36x512xf32, #tpu.memory_space<vmem>>, vector<4x256xf32>,
    %c1_102 = arith.constant 1 : index
    %c0_103 = arith.constant 0 : index
    %c2_104 = arith.constant 2 : index
    %c2_105 = arith.constant 2 : index
    %72 = vector.load %arg6[%c1_102, %c0_103, %c2_104, %c2_105] : memref<2x4x18x18xf32, #tpu.memory_space<vmem>>, vector<1x4x16x16xf32>
    %73 = vector.shape_cast %72 : vector<1x4x16x16xf32> to vector<4x16x16xf32>
    %74 = vector.shape_cast %73 : vector<4x16x16xf32> to vector<4x256xf32>
    %c32_106 = arith.constant 32 : index
    %c256_107 = arith.constant 256 : index
    %75 = vector.load %arg7[%c32_106, %c256_107] : memref<36x512xf32, #tpu.memory_space<vmem>>, vector<4x256xf32>
    tpu.vector_store %arg7[%c32_106, %c256_107], %74 {strides = array<i32>} : memref<36x512xf32, #tpu.memory_space<vmem>>, vector<4x256xf32>,
    %c0_108 = arith.constant 0 : index
    %c0_109 = arith.constant 0 : index
    %76 = vector.load %arg1[%c0_108, %c0_109] : memref<8x36xf32, #tpu.memory_space<vmem>>, vector<8x36xf32>
    %c0_110 = arith.constant 0 : index
    %c0_111 = arith.constant 0 : index
    %77 = vector.load %arg7[%c0_110, %c0_111] : memref<36x512xf32, #tpu.memory_space<vmem>>, vector<36x512xf32>
    %cst_112 = arith.constant dense<0.000000e+00> : vector<8x512xf32>
    %78 = tpu.matmul %76, %77, %cst_112 {dimension_numbers = #tpu.dot_dimension_numbers<[1], [0], [0], [1], [0, 0, 1, 1], [], []>} : vector<8x36xf32>, vector<36x512xf32>, vector<8x512xf32> -> vector<8x512xf32>
    %cst_113 = arith.constant dense<0.000000e+00> : vector<8xf32>
    %79 = vector.multi_reduction <add>, %78, %cst_113 [1] : vector<8x512xf32> to vector<8xf32>
    %80 = vector.shape_cast %79 : vector<8xf32> to vector<8x1xf32>
    %cst_114 = arith.constant 5.120000e+02 : f32
    %81 = vector.broadcast %cst_114 : f32 to vector<8x1xf32>
    %82 = arith.divf %80, %81 : vector<8x1xf32>
    %83 = vector.broadcast %82 : vector<8x1xf32> to vector<8x512xf32>
    %84 = arith.subf %78, %83 : vector<8x512xf32>
    %85 = vector.broadcast %82 : vector<8x1xf32> to vector<8x512xf32>
    %86 = arith.subf %78, %85 : vector<8x512xf32>
    %87 = arith.mulf %84, %86 : vector<8x512xf32>
    %cst_115 = arith.constant dense<0.000000e+00> : vector<8xf32>
    %88 = vector.multi_reduction <add>, %87, %cst_115 [1] : vector<8x512xf32> to vector<8xf32>
    %89 = vector.shape_cast %88 : vector<8xf32> to vector<8x1xf32>
    %cst_116 = arith.constant 5.120000e+02 : f32
    %90 = vector.broadcast %cst_116 : f32 to vector<8x1xf32>
    %91 = arith.divf %89, %90 : vector<8x1xf32>
    %c0_117 = arith.constant 0 : index
    %c0_118 = arith.constant 0 : index
    %92 = vector.load %arg2[%c0_117, %c0_118] : memref<8x1xf32, #tpu.memory_space<vmem>>, vector<8x1xf32>
    %cst_119 = arith.constant 9.99999974E-6 : f32
    %93 = vector.broadcast %cst_119 : f32 to vector<8x1xf32>
    %94 = arith.addf %91, %93 : vector<8x1xf32>
    %95 = math.rsqrt %94 : vector<8x1xf32>
    %96 = arith.mulf %92, %95 : vector<8x1xf32>
    %c0_120 = arith.constant 0 : index
    %c0_121 = arith.constant 0 : index
    %97 = vector.load %arg3[%c0_120, %c0_121] : memref<8x1xf32, #tpu.memory_space<vmem>>, vector<8x1xf32>
    %98 = arith.mulf %82, %96 : vector<8x1xf32>
    %99 = arith.subf %97, %98 : vector<8x1xf32>
    %100 = vector.broadcast %96 : vector<8x1xf32> to vector<8x512xf32>
    %101 = arith.mulf %78, %100 : vector<8x512xf32>
    %102 = vector.broadcast %99 : vector<8x1xf32> to vector<8x512xf32>
    %103 = arith.addf %101, %102 : vector<8x512xf32>
    %cst_122 = arith.constant 0.000000e+00 : f32
    %104 = vector.broadcast %cst_122 : f32 to vector<8x512xf32>
    %105 = arith.cmpf oge, %103, %104 : vector<8x512xf32>
    %c0_123 = arith.constant 0 : index
    %c0_124 = arith.constant 0 : index
    %106 = vector.load %arg4[%c0_123, %c0_124] : memref<8x1xf32, #tpu.memory_space<vmem>>, vector<8x1xf32>
    %107 = vector.broadcast %106 : vector<8x1xf32> to vector<8x512xf32>
    %108 = arith.mulf %107, %103 : vector<8x512xf32>
    %109 = arith.select %105, %103, %108 : vector<8x512xi1>, vector<8x512xf32>
    %110 = vector.extract_strided_slice %109 {offsets = [0, 0], sizes = [8, 256], strides = [1, 1]} : vector<8x512xf32> to vector<8x256xf32>
    %c0_125 = arith.constant 0 : index
    %c0_126 = arith.constant 0 : index
    %c0_127 = arith.constant 0 : index
    %111 = vector.load %arg5[%c0_125, %c0_126, %c0_127] : memref<2x8x256xf32, #tpu.memory_space<vmem>>, vector<1x8x256xf32>
    %112 = vector.shape_cast %111 : vector<1x8x256xf32> to vector<8x256xf32>
    %113 = vector.shape_cast %110 : vector<8x256xf32> to vector<1x8x256xf32>
    tpu.vector_store %arg5[%c0_125, %c0_126, %c0_127], %113 {strides = array<i32>} : memref<2x8x256xf32, #tpu.memory_space<vmem>>, vector<1x8x256xf32>,
    %114 = vector.extract_strided_slice %109 {offsets = [0, 256], sizes = [8, 256], strides = [1, 1]} : vector<8x512xf32> to vector<8x256xf32>
    %c1_128 = arith.constant 1 : index
    %c0_129 = arith.constant 0 : index
    %c0_130 = arith.constant 0 : index
    %115 = vector.load %arg5[%c1_128, %c0_129, %c0_130] : memref<2x8x256xf32, #tpu.memory_space<vmem>>, vector<1x8x256xf32>
    %116 = vector.shape_cast %115 : vector<1x8x256xf32> to vector<8x256xf32>
    %117 = vector.shape_cast %114 : vector<8x256xf32> to vector<1x8x256xf32>
    tpu.vector_store %arg5[%c1_128, %c0_129, %c0_130], %117 {strides = array<i32>} : memref<2x8x256xf32, #tpu.memory_space<vmem>>, vector<1x8x256xf32>,
    return
  }
}

</mosaic_0001>

<bundles_post_ra>
// kernel: conv_bn_prelu.1
= control target key start
LH: loop header
LB: loop body
LE: loop exit
PB: predicated region body
PF: predicated region fallthrough
CT: control target
= control target key end

     0   :  { %vm20_vm0 = vcmask 146432   ;;  %vm23_vm1 = vcmask 140288   ;;  %v8167_v2 = vmov 0.0   ;;  %s4827_s22 = smov 1   ;;  %vm126_vm2 = vcmask 138248   ;;  %s4832_s27 = smov 32   ;;  %s8157_s0 = inlined_call_operand.vmem [shape: f32[2,4,16,16], index: 0, kind: input, shape index: {}]   ;;  %s8158_s1 = inlined_call_operand.vmem [shape: f32[8,36], index: 1, kind: input, shape index: {}]   ;;  %s8159_s2 = inlined_call_operand.vmem [shape: f32[8,1], index: 2, kind: input, shape index: {}]   ;;  %s8160_s3 = inlined_call_operand.vmem [shape: f32[8,1], index: 3, kind: input, shape index: {}]   ;;  %s8161_s4 = inlined_call_operand.vmem [shape: f32[8,1], index: 4, kind: input, shape index: {}]   ;;  %s8162_s5 = inlined_call_operand.vmem [shape: f32[2,8,256], index: 5, kind: output, shape index: {}]  }
   0x1   :  { %v48_v0 = vld [vmem:[%s8157_s0 + $0x10] sm:$0xff]  ;;  %v46_v1 = vld [vmem:[%s8157_s0] sm:$0xff]  ;;  %25 = vst.msk [vmem:[#allocation2 + $0x18] sm:$0xff] %vm20_vm0, %v8167_v2  ;;  %26 = vst.msk [vmem:[#allocation2 + $0x20] sm:$0xff] %vm20_vm0, %v8167_v2  ;;  %4573 = vmatprep.mubr.f32.mxu0 %v8167_v2  ;;  %4644 = vmatprep.mubr.f32.mxu1 %v8167_v2  ;;  %v4829_v28 = vmov 1983009808   ;;  %v156_v30 = vlaneseq }
   0x2   :  { %21 = vst.msk [vmem:[#allocation2] sm:$0xff] %vm20_vm0, %v8167_v2  ;;  %22 = vst.msk [vmem:[#allocation2 + $0x8] sm:$0xff] %vm20_vm0, %v8167_v2  ;;  %82 = vrot.lane.b32.xlu1 %v48_v0, %s4827_s22  ;;  %78 = vrot.lane.b32.xlu0 %v46_v1, %s4827_s22  ;;  %v49_v3 = vld [vmem:[%s8157_s0 + $0x18] sm:$0xff]  ;;  %v47_v4 = vld [vmem:[%s8157_s0 + $0x8] sm:$0xff]  ;;  %v154_v29 = vunpack.c.l.s4 %v4829_v28  ;;  %s4833_s28 = smov 64   ;;  %s4834_s29 = smov 96  }
   0x3   :  { %28 = vst.msk [vmem:[#allocation2 + $0x30] sm:$0xff] %vm20_vm0, %v8167_v2  ;;  %29 = vst.msk [vmem:[#allocation2 + $0x38] sm:$0xff] %vm20_vm0, %v8167_v2  ;;  %v51_v5 = vld [vmem:[%s8157_s0 + $0x28] sm:$0xff]  ;;  %v50_v6 = vld [vmem:[%s8157_s0 + $0x20] sm:$0xff]  ;;  %v4992_v36 = vshrl.u32 %v156_v30, 7  ;;  %s4835_s30 = smov 16  }
   0x4   :  { %31 = vst.msk [vmem:[#allocation2 + $0x48] sm:$0xff] %vm20_vm0, %v8167_v2  ;;  %32 = vst.msk [vmem:[#allocation2 + $0x50] sm:$0xff] %vm20_vm0, %v8167_v2  ;;  %v53_v7 = vld [vmem:[%s8157_s0 + $0x38] sm:$0xff]  ;;  %v52_v8 = vld [vmem:[%s8157_s0 + $0x30] sm:$0xff]  ;;  %v155_v35 = vunpack.c.0.s8 %v154_v29  ;;  %s4836_s6 = smov 48   ;;  %s4837_s7 = smov 80  }
   0x5   :  { %34 = vst.msk [vmem:[#allocation2 + $0x60] sm:$0xff] %vm20_vm0, %v8167_v2  ;;  %35 = vst.msk [vmem:[#allocation2 + $0x68] sm:$0xff] %vm20_vm0, %v8167_v2  ;;  %v55_v9 = vld [vmem:[%s8157_s0 + $0x48] sm:$0xff]  ;;  %v54_v10 = vld [vmem:[%s8157_s0 + $0x40] sm:$0xff]  ;;  %s4838_s8 = smov 112   ;;  %vm343_vm3 = vcmask 130048  }
   0x6   :  { %37 = vst.msk [vmem:[#allocation2 + $0x78] sm:$0xff] %vm20_vm0, %v8167_v2  ;;  %38 = vst.msk [vmem:[#allocation2 + $0x80] sm:$0xff] %vm20_vm0, %v8167_v2  ;;  %84 = vrot.lane.b32.xlu1 %v49_v3, %s4827_s22  ;;  %80 = vrot.lane.b32.xlu0 %v47_v4, %s4827_s22  ;;  %v57_v11 = vld [vmem:[%s8157_s0 + $0x58] sm:$0xff]  ;;  %v56_v12 = vld [vmem:[%s8157_s0 + $0x50] sm:$0xff]  ;;  %v5005_v41 = vsub.s32 %v155_v35, %v4992_v36  ;;  %vm345_vm4 = vcmask 261120   ;;  %vm347_vm5 = vcmask 392192  }
   0x7   :  { %40 = vst.msk [vmem:[#allocation2 + $0x90] sm:$0xff] %vm20_vm0, %v8167_v2  ;;  %41 = vst.msk [vmem:[#allocation2 + $0x98] sm:$0xff] %vm20_vm0, %v8167_v2  ;;  %v59_v13 = vld [vmem:[%s8157_s0 + $0x68] sm:$0xff]  ;;  %v58_v14 = vld [vmem:[%s8157_s0 + $0x60] sm:$0xff]  ;;  %vm349_vm6 = vcmask 523264   ;;  %vm351_vm7 = vcmask 654336  }
   0x8   :  { %43 = vst.msk [vmem:[#allocation2 + $0xa8] sm:$0xff] %vm20_vm0, %v8167_v2  ;;  %44 = vst.msk [vmem:[#allocation2 + $0xb0] sm:$0xff] %vm20_vm0, %v8167_v2  ;;  %v61_v15 = vld [vmem:[%s8157_s0 + $0x78] sm:$0xff]  ;;  %v60_v16 = vld [vmem:[%s8157_s0 + $0x70] sm:$0xff]  ;;  %s4828_s0 = smov 127   ;;  %vm353_vm8 = vcmask 785408  }
   0x9   :  { %27 = vst.msk [vmem:[#allocation2 + $0x28] sm:$0x3] %vm23_vm1, %v8167_v2  ;;  %24 = vst.msk [vmem:[#allocation2 + $0x10] sm:$0x3] %vm23_vm1, %v8167_v2  ;;  %vm355_vm9 = vcmask 916480   ;;  %vm4496_vm10 = vcmask 1043456  }
   0xa   :  { %30 = vst.msk [vmem:[#allocation2 + $0x40] sm:$0x3] %vm23_vm1, %v8167_v2  ;;  %33 = vst.msk [vmem:[#allocation2 + $0x58] sm:$0x3] %vm23_vm1, %v8167_v2  ;;  %88 = vrot.lane.b32.xlu1 %v51_v5, %s4827_s22  ;;  %86 = vrot.lane.b32.xlu0 %v50_v6, %s4827_s22  ;;  %vm4492_vm11 = vcmask 293888  }
   0xb   :  { %36 = vst.msk [vmem:[#allocation2 + $0x70] sm:$0x3] %vm23_vm1, %v8167_v2  ;;  %39 = vst.msk [vmem:[#allocation2 + $0x88] sm:$0x3] %vm23_vm1, %v8167_v2 }
   0xc   :  { %42 = vst.msk [vmem:[#allocation2 + $0xa0] sm:$0x3] %vm23_vm1, %v8167_v2  ;;  %45 = vst.msk [vmem:[#allocation2 + $0xb8] sm:$0x3] %vm23_vm1, %v8167_v2 }
   0xe   :  { %92 = vrot.lane.b32.xlu1 %v53_v7, %s4827_s22  ;;  %90 = vrot.lane.b32.xlu0 %v52_v8, %s4827_s22 }
  0x12   :  { %96 = vrot.lane.b32.xlu1 %v55_v9, %s4827_s22  ;;  %94 = vrot.lane.b32.xlu0 %v54_v10, %s4827_s22 }
  0x16   :  { %100 = vrot.lane.b32.xlu1 %v57_v11, %s4827_s22  ;;  %98 = vrot.lane.b32.xlu0 %v56_v12, %s4827_s22 }
  0x1a   :  { %104 = vrot.lane.b32.xlu1 %v59_v13, %s4827_s22  ;;  %102 = vrot.lane.b32.xlu0 %v58_v14, %s4827_s22 }
  0x1e   :  { %108 = vrot.lane.b32.xlu1 %v61_v15, %s4827_s22  ;;  %106 = vrot.lane.b32.xlu0 %v60_v16, %s4827_s22  ;;  %s4830_s22 = smov 126  }
  0x74   :  { %v83_v17 = vpop.permute.xlu1 %82  ;;  %v79_v18 = vpop.permute.xlu0 %78 }
  0x75   :  { %129 = vst.msk [vmem:[#allocation2 + $0x19] sm:$0xff] %vm126_vm2, %v83_v17  ;;  %127 = vst.msk [vmem:[#allocation2 + $0x1] sm:$0xff] %vm126_vm2, %v79_v18 }
  0x78   :  { %v85_v19 = vpop.permute.xlu1 %84  ;;  %v81_v20 = vpop.permute.xlu0 %80 }
  0x79   :  { %130 = vst.msk [vmem:[#allocation2 + $0x21] sm:$0xff] %vm126_vm2, %v85_v19  ;;  %128 = vst.msk [vmem:[#allocation2 + $0x9] sm:$0xff] %vm126_vm2, %v81_v20 }
  0x7c   :  { %v89_v21 = vpop.permute.xlu1 %88  ;;  %v87_v22 = vpop.permute.xlu0 %86  ;;  %v4972_v23 = vld [vmem:[#allocation2] sm:$0xff]  ;;  %v4978_v24 = vld [vmem:[#allocation2 + $0x18] sm:$0xff] }
  0x7d   :  { %132 = vst.msk [vmem:[#allocation2 + $0x39] sm:$0xff] %vm126_vm2, %v89_v21  ;;  %131 = vst.msk [vmem:[#allocation2 + $0x31] sm:$0xff] %vm126_vm2, %v87_v22  ;;  %382 = vrot.lane.b32.xlu0 %v4972_v23, %s4828_s0  ;;  %v5033_v50 = vld [vmem:[#allocation2 + $0x19] sm:$0xff]  ;;  %v5043_v57 = vld [vmem:[#allocation2 + $0x1] sm:$0xff] }
  0x80   :  { %v93_v25 = vpop.permute.xlu1 %92  ;;  %v91_v26 = vpop.permute.xlu0 %90  ;;  %v4980_v27 = vld [vmem:[#allocation2 + $0x8] sm:$0xff]  ;;  %v4988_v33 = vld [vmem:[#allocation2 + $0x20] sm:$0xff] }
  0x81   :  { %134 = vst.msk [vmem:[#allocation2 + $0x51] sm:$0xff] %vm126_vm2, %v93_v25  ;;  %133 = vst.msk [vmem:[#allocation2 + $0x49] sm:$0xff] %vm126_vm2, %v91_v26  ;;  %386 = vrot.lane.b32.xlu0 %v4978_v24, %s4828_s0  ;;  %384 = vrot.lane.b32.xlu1 %v4980_v27, %s4828_s0  ;;  %v5091_v6 = vld [vmem:[#allocation2 + $0x21] sm:$0xff]  ;;  %v5121_v18 = vld [vmem:[#allocation2 + $0x9] sm:$0xff] }
  0x82   :  { %v1811_v28 = vld [vmem:[#allocation2 + $0x22] sm:$0xff] }
  0x84   :  { %v97_v31 = vpop.permute.xlu1 %96  ;;  %v95_v32 = vpop.permute.xlu0 %94  ;;  %v4990_v34 = vld [vmem:[#allocation2 + $0x30] sm:$0xff]  ;;  %v5000_v39 = vld [vmem:[#allocation2 + $0x38] sm:$0xff] }
  0x85   :  { %136 = vst.msk [vmem:[#allocation2 + $0x69] sm:$0xff] %vm126_vm2, %v97_v31  ;;  %135 = vst.msk [vmem:[#allocation2 + $0x61] sm:$0xff] %vm126_vm2, %v95_v32  ;;  %388 = vrot.lane.b32.xlu1 %v4988_v33, %s4828_s0  ;;  %390 = vrot.lane.b32.xlu0 %v4990_v34, %s4828_s0  ;;  %v152_v42 = vcombine.high %v4972_v23, %v4990_v34  ;;  %v5039_v53 = vld [vmem:[#allocation2 + $0x31] sm:$0xff]  ;;  %v5139_v30 = vld [vmem:[#allocation2 + $0x39] sm:$0xff] }
  0x86   :  { %v877_v58 = vcombine.high %v5043_v57, %v5039_v53  ;;  %v5141_v31 = vld [vmem:[#allocation2 + $0x22] sm:$0xff]  ;;  %v5143_v32 = vld [vmem:[#allocation2 + $0x3a] sm:$0xff] }
  0x87   :  { %v5020_v47 = vrot.slane %v152_v42, %v5005_v41  ;;  %v1813_v61 = vld [vmem:[#allocation2 + $0x3a] sm:$0xff] }
  0x88   :  { %v101_v37 = vpop.permute.xlu1 %100  ;;  %v99_v38 = vpop.permute.xlu0 %98  ;;  %v5002_v40 = vld [vmem:[#allocation2 + $0x48] sm:$0xff]  ;;  %v5017_v46 = vld [vmem:[#allocation2 + $0x50] sm:$0xff]  ;;  %v5061_v60 = vrot.slane %v877_v58, %v5005_v41 }
  0x89   :  { %138 = vst.msk [vmem:[#allocation2 + $0x81] sm:$0xff] %vm126_vm2, %v101_v37  ;;  %137 = vst.msk [vmem:[#allocation2 + $0x79] sm:$0xff] %vm126_vm2, %v99_v38  ;;  %392 = vrot.lane.b32.xlu1 %v5000_v39, %s4828_s0  ;;  %394 = vrot.lane.b32.xlu0 %v5002_v40, %s4828_s0  ;;  %v168_v43 = vcombine.high %v4978_v24, %v5002_v40  ;;  %v5025_v49 = vld [vmem:[#allocation2 + $0x49] sm:$0xff]  ;;  %v5123_v19 = vld [vmem:[#allocation2 + $0x51] sm:$0xff] }
  0x8a   :  { %v893_v54 = vcombine.high %v5033_v50, %v5025_v49  ;;  %8304 = vst [vmem:[#allocation5_spill] sm:$0xff] %v5061_v60  ;;  %v5129_v20 = vld [vmem:[#allocation2 + $0x52] sm:$0xff]  ;;  %v5150_v37 = vld [vmem:[#allocation2 + $0xa] sm:$0xff] }
  0x8b   :  { %v5023_v48 = vrot.slane %v168_v43, %v5005_v41  ;;  %v1685_v35 = vcombine.high %v5141_v31, %v5129_v20  ;;  %v1669_v58 = vcombine.high %v5150_v37, %v5143_v32 }
  0x8c   :  { %v105_v44 = vpop.permute.xlu1 %104  ;;  %v103_v45 = vpop.permute.xlu0 %102  ;;  %v5054_v59 = vrot.slane %v893_v54, %v5005_v41  ;;  %v5077_v0 = vld [vmem:[#allocation2 + $0x68] sm:$0xff]  ;;  %v4831_v54 = vmov 1934713408  }
  0x8d   :  { %140 = vst.msk [vmem:[#allocation2 + $0x99] sm:$0xff] %vm126_vm2, %v105_v44  ;;  %139 = vst.msk [vmem:[#allocation2 + $0x91] sm:$0xff] %vm126_vm2, %v103_v45  ;;  %396 = vrot.lane.b32.xlu1 %v5017_v46, %s4828_s0  ;;  %636 = vrot.lane.b32.xlu0 %v4972_v23, %s4830_s22  ;;  %v199_v51 = vcombine.low %v5020_v47, %v5023_v48  ;;  %v5079_v1 = vld [vmem:[#allocation2 + $0x69] sm:$0xff]  ;;  %v5093_v7 = vld [vmem:[#allocation2 + $0x61] sm:$0xff] }
  0x8e   :  { %8303 = vst [vmem:[#allocation4_spill] sm:$0xff] %v5054_v59 }
  0x90   :  { %v109_v55 = vpop.permute.xlu1 %108  ;;  %v107_v56 = vpop.permute.xlu0 %106  ;;  %v5069_v62 = vld [vmem:[#allocation2 + $0x80] sm:$0xff] }
  0x91   :  { %142 = vst.msk [vmem:[#allocation2 + $0xb1] sm:$0xff] %vm126_vm2, %v109_v55  ;;  %141 = vst.msk [vmem:[#allocation2 + $0xa9] sm:$0xff] %vm126_vm2, %v107_v56  ;;  %638 = vrot.lane.b32.xlu1 %v4980_v27, %s4830_s22  ;;  %640 = vrot.lane.b32.xlu0 %v4978_v24, %s4830_s22  ;;  %v5081_v3 = vld [vmem:[#allocation2 + $0x81] sm:$0xff]  ;;  %v5103_v12 = vld [vmem:[#allocation2 + $0x79] sm:$0xff]  ;;  %v186_v55 = vunpack.c.l.s4 %v4831_v54  ;;  %v235_v56 = vcombine.low %v4988_v33, %v5017_v46 }
  0x92   :  { %v4806_v54 = vld [vmem:[#allocation2 + $0x6] ss:$48 sps:$4 sm:$0xff]  }
  0x93   :  { %v187_v29 = vunpack.c.0.s8 %v186_v55 }
  0x94   :  { %v5083_v4 = vld [vmem:[#allocation2 + $0x99] sm:$0xff]  ;;  %v5095_v8 = vld [vmem:[#allocation2 + $0x91] sm:$0xff] }
  0x95   :  { %642 = vrot.lane.b32.xlu1 %v4988_v33, %s4830_s22  ;;  %644 = vrot.lane.b32.xlu0 %v4990_v34, %s4830_s22  ;;  %v3106_v9 = vcombine.high %v5079_v1, %v5083_v4  ;;  %v5101_v11 = vld [vmem:[#allocation2 + $0x98] sm:$0xff]  ;;  %v3038_v14 = vcombine.high %v5093_v7, %v5095_v8  ;;  %v4800_v43 = vld [vmem:[#allocation2 + $0x64] ss:$48 sps:$4 sm:$0xff]  }
  0x96   :  { %v4796_v25 = vld [vmem:[#allocation2 + $0x6c] ss:$48 sps:$4 sm:$0xff]  }
  0x97   :  { %v5114_v15 = vrot.slane %v3106_v9, %v5005_v41  ;;  %v5132_v21 = vrot.slane %v3038_v14, %v5005_v41  ;;  %v5153_v38 = vrot.slane %v4796_v25, %v5005_v41  ;;  %v1809_v9 = vld [vmem:[#allocation2 + $0xa] sm:$0xff]  ;;  %v5169_v25 = vrot.slane %v1685_v35, %v5005_v41 }
  0x98   :  { %v5075_v63 = vld [vmem:[#allocation2 + $0xb0] sm:$0xff]  ;;  %v4801_v44 = vld [vmem:[#allocation2 + $0x7c] ss:$48 sps:$4 sm:$0xff]   ;;  %v5185_v35 = vrot.slane %v1669_v58, %v5005_v41 }
  0x99   :  { %646 = vrot.lane.b32.xlu1 %v5000_v39, %s4830_s22  ;;  %648 = vrot.lane.b32.xlu0 %v5002_v40, %s4830_s22  ;;  %v5085_v5 = vld [vmem:[#allocation2 + $0xb1] sm:$0xff]  ;;  %v5105_v13 = vld [vmem:[#allocation2 + $0xa9] sm:$0xff]  ;;  %8305 = vst [vmem:[#allocation6_spill] sm:$0xff] %v5114_v15  ;;  %8307 = vst [vmem:[#allocation8_spill] sm:$0xff] %v5132_v21 }
  0x9a   :  { %v3122_v10 = vcombine.high %v5081_v3, %v5085_v5  ;;  %v3054_v17 = vcombine.high %v5103_v12, %v5105_v13  ;;  %v4797_v26 = vld [vmem:[#allocation2 + $0x84] ss:$48 sps:$4 sm:$0xff]   ;;  %8309 = vst [vmem:[#allocation10_spill] sm:$0xff] %v5153_v38  ;;  %v4807_v14 = vld [vmem:[#allocation2 + $0x1e] ss:$48 sps:$4 sm:$0xff]   ;;  %8311 = vst [vmem:[#allocation12_spill] sm:$0xff] %v5169_v25 }
  0x9b   :  { %v5156_v42 = vrot.slane %v4797_v26, %v5005_v41  ;;  %v5172_v26 = vrot.slane %v4800_v43, %v5005_v41  ;;  %8314 = vst [vmem:[#allocation15_spill] sm:$0xff] %v5185_v35  ;;  %v5187_v43 = vld [vmem:[#allocation2 + $0x78] sm:$0xff]  ;;  %v5230_v58 = vld [vmem:[#allocation2 + $0x90] sm:$0xff] }
  0x9c   :  { %v5117_v16 = vrot.slane %v3122_v10, %v5005_v41  ;;  %v5135_v22 = vrot.slane %v3054_v17, %v5005_v41  ;;  %v1815_v10 = vld [vmem:[#allocation2 + $0x52] sm:$0xff]  ;;  %v219_v17 = vcombine.low %v4980_v27, %v5000_v39  ;;  %v5459_v38 = vld [vmem:[#allocation2 + $0x9a] sm:$0xff] }
  0x9d   :  { %650 = vrot.lane.b32.xlu1 %v5017_v46, %s4830_s22  ;;  %2549 = vrot.lane.b32.xlu0 %v5069_v62, %s4828_s0  ;;  %8310 = vst [vmem:[#allocation11_spill] sm:$0xff] %v5156_v42  ;;  %8312 = vst [vmem:[#allocation13_spill] sm:$0xff] %v5172_v26 }
  0x9e   :  { %8306 = vst [vmem:[#allocation7_spill] sm:$0xff] %v5117_v16  ;;  %8308 = vst [vmem:[#allocation9_spill] sm:$0xff] %v5135_v22  ;;  %v5196_v55 = vrot.slane %v219_v17, %v5005_v41 }
  0xa1   :  { %2545 = vrot.lane.b32.xlu1 %v5077_v0, %s4828_s0  ;;  %2557 = vrot.lane.b32.xlu0 %v5075_v63, %s4828_s0 }
  0xa5   :  { %2553 = vrot.lane.b32.xlu1 %v5101_v11, %s4828_s0  ;;  %1360 = vrot.lane.b32.xlu0 %v5091_v6, %s4830_s22 }
  0xa9   :  { %1356 = vrot.lane.b32.xlu1 %v5121_v18, %s4830_s22  ;;  %1368 = vrot.lane.b32.xlu0 %v5123_v19, %s4830_s22 }
  0xad   :  { %1364 = vrot.lane.b32.xlu1 %v5139_v30, %s4830_s22  ;;  %1830 = vrot.lane.b32.xlu0 %v1811_v28, %s4828_s0  ;;  %v5175_v28 = vrot.slane %v4801_v44, %v5005_v41  ;;  %v5190_v44 = vrot.slane %v4807_v14, %v5005_v41 }
  0xaf   :  { %8313 = vst [vmem:[#allocation14_spill] sm:$0xff] %v5175_v28  ;;  %8315 = vst [vmem:[#allocation16_spill] sm:$0xff] %v5190_v44 }
  0xb1   :  { %1826 = vrot.lane.b32.xlu1 %v1809_v9, %s4828_s0  ;;  %1838 = vrot.lane.b32.xlu0 %v1815_v10, %s4828_s0  ;;  %v5180_v9 = vrot.slane %v235_v56, %v5005_v41  ;;  %v236_v10 = vcombine.high %v4988_v33, %v5017_v46  ;;  %v220_v33 = vcombine.high %v4980_v27, %v5000_v39  ;;  %v5215_v39 = vld [vmem:[#allocation2 + $0x60] sm:$0xff]  ;;  %v5217_v46 = vld [vmem:[#allocation2 + $0xa8] sm:$0xff] }
  0xb2   :  { %v5203_v56 = vrot.slane %v4806_v54, %v5005_v41  ;;  %v167_v27 = vcombine.low %v4978_v24, %v5002_v40 }
  0xb3   :  { %v252_v14 = vcombine.high %v5196_v55, %v5180_v9  ;;  %v250_v17 = vrot.slane %v236_v10, %v5005_v41 }
  0xb4   :  { %8316 = vst [vmem:[#allocation17_spill] sm:$0xff] %v5203_v56  ;;  %v175_v10 = vrot.slane %v167_v27, %v5005_v41  ;;  %v251_v56 = vcombine.low %v5196_v55, %v5180_v9 }
  0xb5   :  { %1834 = vrot.lane.b32.xlu1 %v1813_v61, %s4828_s0  ;;  %2547 = vrot.lane.b32.xlu0 %v5187_v43, %s4828_s0  ;;  %v5208_v61 = vsub.s32 %v187_v29, %v4992_v36  ;;  %v234_v36 = vrot.slane %v220_v33, %v5005_v41  ;;  %v151_v29 = vcombine.low %v4972_v23, %v4990_v34 }
  0xb6   :  { %v892_v34 = vcombine.low %v5033_v50, %v5025_v49 }
  0xb7   :  { %v266_v24 = vrot.slane %v252_v14, %v5208_v61  ;;  %v267_v40 = vcombine.low %v234_v36, %v250_v17  ;;  %v159_v54 = vrot.slane %v151_v29, %v5005_v41  ;;  %v268_v52 = vcombine.high %v234_v36, %v250_v17 }
  0xb8   :  { %v876_v17 = vcombine.low %v5043_v57, %v5039_v53 }
  0xb9   :  { %2543 = vrot.lane.b32.xlu1 %v5215_v39, %s4828_s0  ;;  %2555 = vrot.lane.b32.xlu0 %v5217_v46, %s4828_s0  ;;  %v275_v33 = vrot.slane %v267_v40, %v5208_v61  ;;  %v184_v45 = vcombine.high %v159_v54, %v175_v10  ;;  %v183_v23 = vcombine.low %v159_v54, %v175_v10 }
  0xba   :  { %v282_v27 = vrot.slane %v268_v52, %v5208_v61  ;;  %v900_v54 = vrot.slane %v892_v34, %v5005_v41  ;;  %v884_v36 = vrot.slane %v876_v17, %v5005_v41  ;;  %v8317_v10 = vcombine.high %v5020_v47, %v5023_v48 }
  0xbb   :  { %v198_v14 = vrot.slane %v184_v45, %v5208_v61  ;;  %v5245_v29 = vrot.slane %v183_v23, %v5208_v61  ;;  %v207_v45 = vrot.slane %v199_v51, %v5208_v61 }
  0xbc   :  { %v909_v40 = vcombine.high %v884_v36, %v900_v54  ;;  %v214_v23 = vrot.slane %v8317_v10, %v5208_v61  ;;  %v908_v44 = vcombine.low %v884_v36, %v900_v54  ;;  %v285_v54 = vcombine.high %v275_v33, %v8167_v2  ;;  %v5318_v10 = vld [vmem:[#allocation2 + $0x32] sm:$0xff] }
  0xbd   :  { %2551 = vrot.lane.b32.xlu1 %v5230_v58, %s4828_s0  ;;  %320 = vrot.lane.b32.xlu0 %v266_v24, %s4832_s27  ;;  %v215_v52 = vcombine.high %v5245_v29, %v8167_v2  ;;  %v216_v34 = vcombine.high %v198_v14, %v8167_v2  ;;  %v217_v17 = vcombine.high %v207_v45, %v8167_v2 }
  0xbe   :  { %v923_v51 = vrot.slane %v909_v40, %v5208_v61  ;;  %v218_v48 = vcombine.high %v214_v23, %v8167_v2  ;;  %v286_v40 = vcombine.high %v282_v27, %v8167_v2 }
  0xc1   :  { %1354 = vrot.lane.b32.xlu1 %v5043_v57, %s4830_s22  ;;  %328 = vrot.lane.b32.xlu0 %v275_v33, %s4833_s28  ;;  %v5310_v33 = vld [vmem:[#allocation2 + $0x1a] sm:$0xff] }
  0xc5   :  { %292 = vrot.lane.b32.xlu1 %v198_v14, %s4832_s27  ;;  %336 = vrot.lane.b32.xlu0 %v282_v27, %s4834_s29  ;;  %v5279_v14 = vrot.slane %v251_v56, %v5208_v61  ;;  %v284_v56 = vcombine.high %v266_v24, %v8167_v2  ;;  %v5308_v24 = vld [vmem:[#allocation2 + $0x2] sm:$0xff] }
  0xc7   :  { %v283_v9 = vcombine.high %v5279_v14, %v8167_v2 }
  0xc9   :  { %300 = vrot.lane.b32.xlu1 %v207_v45, %s4833_s28  ;;  %288 = vrot.lane.b32.xlu0 %v215_v52, %s4835_s30  ;;  %v924_v52 = vcombine.low %v5061_v60, %v5054_v59  ;;  %v5282_v45 = vrot.slane %v908_v44, %v5208_v61  ;;  %v941_v44 = vcombine.high %v923_v51, %v8167_v2 }
  0xcb   :  { %v932_v47 = vrot.slane %v924_v52, %v5208_v61  ;;  %8318 = vst [vmem:[#allocation18_spill] sm:$0xff] %v5282_v45  ;;  %v940_v55 = vcombine.high %v5282_v45, %v8167_v2 }
  0xcd   :  { %308 = vrot.lane.b32.xlu1 %v214_v23, %s4834_s29  ;;  %296 = vrot.lane.b32.xlu0 %v216_v34, %s4836_s6  ;;  %v942_v36 = vcombine.high %v932_v47, %v8167_v2  ;;  %v5320_v23 = vld [vmem:[#allocation2 + $0x4a] sm:$0xff] }
  0xd1   :  { %1017 = vrot.lane.b32.xlu1 %v923_v51, %s4832_s27  ;;  %304 = vrot.lane.b32.xlu0 %v217_v17, %s4837_s7 }
  0xd5   :  { %1025 = vrot.lane.b32.xlu1 %v932_v47, %s4833_s28  ;;  %312 = vrot.lane.b32.xlu0 %v218_v48, %s4838_s8 }
  0xd9   :  { %316 = vrot.lane.b32.xlu1 %v283_v9, %s4835_s30  ;;  %1013 = vrot.lane.b32.xlu0 %v940_v55, %s4835_s30 }
  0xdd   :  { %324 = vrot.lane.b32.xlu1 %v284_v56, %s4836_s6  ;;  %1021 = vrot.lane.b32.xlu0 %v941_v44, %s4836_s6 }
  0xe1   :  { %332 = vrot.lane.b32.xlu1 %v285_v54, %s4837_s7  ;;  %1029 = vrot.lane.b32.xlu0 %v942_v36, %s4837_s7 }
  0xe5   :  { %340 = vrot.lane.b32.xlu1 %v286_v40, %s4838_s8  ;;  %1358 = vrot.lane.b32.xlu0 %v5033_v50, %s4830_s22 }
  0xe9   :  { %1362 = vrot.lane.b32.xlu1 %v5039_v53, %s4830_s22  ;;  %1366 = vrot.lane.b32.xlu0 %v5025_v49, %s4830_s22 }
  0xed   :  { %1824 = vrot.lane.b32.xlu1 %v5308_v24, %s4828_s0  ;;  %1828 = vrot.lane.b32.xlu0 %v5310_v33, %s4828_s0 }
  0xef   :  { %v5316_v27 = vpop.permute.xlu0 %382 }
  0xf1   :  { %1832 = vrot.lane.b32.xlu1 %v5318_v10, %s4828_s0  ;;  %1836 = vrot.lane.b32.xlu0 %v5320_v23, %s4828_s0 }
  0xf3   :  { %v5326_v34 = vpop.permute.xlu1 %384  ;;  %v5328_v51 = vpop.permute.xlu0 %386 }
  0xf5   :  { %2799 = vrot.lane.b32.xlu1 %v5077_v0, %s4830_s22  ;;  %2803 = vrot.lane.b32.xlu0 %v5069_v62, %s4830_s22 }
  0xf7   :  { %v389_v17 = vpop.permute.xlu1 %388  ;;  %v5334_v52 = vpop.permute.xlu0 %390 }
  0xf8   :  { %v406_v36 = vcombine.low %v5316_v27, %v5334_v52 }
  0xf9   :  { %2807 = vrot.lane.b32.xlu1 %v5101_v11, %s4830_s22  ;;  %2811 = vrot.lane.b32.xlu0 %v5075_v63, %s4830_s22 }
  0xfb   :  { %v393_v47 = vpop.permute.xlu1 %392  ;;  %v395_v48 = vpop.permute.xlu0 %394 }
  0xfc   :  { %v475_v40 = vcombine.high %v5326_v34, %v393_v47 }
  0xfd   :  { %1108 = vrot.lane.b32.xlu1 %v5121_v18, %s4828_s0  ;;  %1112 = vrot.lane.b32.xlu0 %v5091_v6, %s4828_s0 }
  0xff   :  { %v397_v0 = vpop.permute.xlu1 %396  ;;  %v5344_v9 = vpop.permute.xlu0 %636 }
 0x100   :  { %v491_v56 = vcombine.high %v389_v17, %v397_v0 }
 0x101   :  { %1116 = vrot.lane.b32.xlu1 %v5139_v30, %s4828_s0  ;;  %1120 = vrot.lane.b32.xlu0 %v5123_v19, %s4828_s0 }
 0x103   :  { %v5350_v62 = vpop.permute.xlu1 %638  ;;  %v5352_v63 = vpop.permute.xlu0 %640 }
 0x105   :  { %2797 = vrot.lane.b32.xlu1 %v5215_v39, %s4830_s22  ;;  %2801 = vrot.lane.b32.xlu0 %v5187_v43, %s4830_s22  ;;  %v490_v39 = vcombine.low %v389_v17, %v397_v0  ;;  %v423_v0 = vcombine.high %v5328_v51, %v395_v48 }
 0x107   :  { %v5358_v6 = vpop.permute.xlu1 %642  ;;  %v5360_v11 = vpop.permute.xlu0 %644  ;;  %v5399_v44 = vrot.slane %v490_v39, %v5005_v41 }
 0x109   :  { %2805 = vrot.lane.b32.xlu1 %v5230_v58, %s4830_s22  ;;  %2809 = vrot.lane.b32.xlu0 %v5217_v46, %s4830_s22 }
 0x10b   :  { %v5366_v18 = vpop.permute.xlu1 %646  ;;  %v5368_v19 = vpop.permute.xlu0 %648 }
 0x10c   :  { %v728_v21 = vcombine.low %v5350_v62, %v5366_v18 }
 0x10d   :  { %1106 = vrot.lane.b32.xlu1 %v5043_v57, %s4828_s0  ;;  %1110 = vrot.lane.b32.xlu0 %v5033_v50, %s4828_s0  ;;  %v474_v50 = vcombine.low %v5326_v34, %v393_v47  ;;  %v505_v47 = vrot.slane %v491_v56, %v5005_v41  ;;  %v489_v56 = vrot.slane %v475_v40, %v5005_v41 }
 0x10f   :  { %v5374_v30 = vpop.permute.xlu1 %650  ;;  %v5376_v43 = vpop.permute.xlu0 %2549  ;;  %v5409_v2 = vrot.slane %v474_v50, %v5005_v41  ;;  %v522_v35 = vcombine.low %v489_v56, %v505_v47 }
 0x110   :  { %v744_v25 = vcombine.low %v5358_v6, %v5374_v30 }
 0x111   :  { %1114 = vrot.lane.b32.xlu1 %v5039_v53, %s4828_s0  ;;  %1118 = vrot.lane.b32.xlu0 %v5025_v49, %s4828_s0  ;;  %v422_v53 = vcombine.low %v5328_v51, %v395_v48  ;;  %v507_v50 = vcombine.high %v5409_v2, %v5399_v44  ;;  %v407_v51 = vcombine.high %v5316_v27, %v5334_v52 }
 0x112   :  { %v5437_v48 = vrot.slane %v406_v36, %v5005_v41 }
 0x113   :  { %v5382_v46 = vpop.permute.xlu1 %2545  ;;  %v5384_v58 = vpop.permute.xlu0 %2557  ;;  %v5421_v39 = vrot.slane %v422_v53, %v5005_v41  ;;  %v5441_v53 = vld [vmem:[#allocation2 + $0x82] sm:$0xff]  ;;  %v5462_v42 = vrot.slane %v507_v50, %v5208_v61  ;;  %v523_v50 = vcombine.high %v489_v56, %v505_v47  ;;  %v5494_v47 = vrot.slane %v522_v35, %v5208_v61 }
 0x114   :  { %v2652_v57 = vcombine.high %v5376_v43, %v5384_v58  ;;  %v660_v56 = vcombine.low %v5344_v9, %v5360_v11 }
 0x115   :  { %3517 = vrot.lane.b32.xlu1 %v5079_v1, %s4830_s22  ;;  %3521 = vrot.lane.b32.xlu0 %v5081_v3, %s4830_s22  ;;  %v439_v27 = vcombine.high %v5437_v48, %v5421_v39 }
 0x116   :  { %v5412_v45 = vrot.slane %v2652_v57, %v5005_v41  ;;  %v437_v57 = vrot.slane %v423_v0, %v5005_v41  ;;  %v421_v0 = vrot.slane %v407_v51, %v5005_v41  ;;  %v676_v51 = vcombine.low %v5352_v63, %v5368_v19 }
 0x117   :  { %v5394_v55 = vpop.permute.xlu1 %2553  ;;  %v5396_v49 = vpop.permute.xlu0 %1360  ;;  %v5484_v59 = vrot.slane %v439_v27, %v5208_v61  ;;  %v729_v27 = vcombine.high %v5350_v62, %v5366_v18 }
 0x118   :  { %v2636_v54 = vcombine.high %v5382_v46, %v5394_v55  ;;  %8319 = vst [vmem:[#allocation19_spill] sm:$0xff] %v5412_v45  ;;  %v454_v16 = vcombine.low %v421_v0, %v437_v57  ;;  %v455_v35 = vcombine.high %v421_v0, %v437_v57  ;;  %v5512_v60 = vrot.slane %v676_v51, %v5005_v41 }
 0x119   :  { %3525 = vrot.lane.b32.xlu1 %v5083_v4, %s4830_s22  ;;  %3529 = vrot.lane.b32.xlu0 %v5085_v5, %s4830_s22  ;;  %v5532_v0 = vrot.slane %v660_v56, %v5005_v41 }
 0x11a   :  { %v5415_v17 = vrot.slane %v2636_v54, %v5005_v41  ;;  %v5432_v54 = vld [vmem:[#allocation2 + $0x6a] sm:$0xff] }
 0x11b   :  { %v5423_v26 = vpop.permute.xlu1 %1356  ;;  %v5425_v34 = vpop.permute.xlu0 %1368 }
 0x11c   :  { %8320 = vst [vmem:[#allocation20_spill] sm:$0xff] %v5415_v17  ;;  %v1463_v28 = vcombine.high %v5396_v49, %v5425_v34 }
 0x11d   :  { %3987 = vrot.lane.b32.xlu1 %v5432_v54, %s4828_s0  ;;  %3991 = vrot.lane.b32.xlu0 %v5441_v53, %s4828_s0 }
 0x11e   :  { %v5470_v22 = vrot.slane %v1463_v28, %v5005_v41  ;;  %v745_v28 = vcombine.high %v5358_v6, %v5374_v30  ;;  %v5503_v6 = vrot.slane %v728_v21, %v5005_v41  ;;  %v677_v30 = vcombine.high %v5352_v63, %v5368_v19 }
 0x11f   :  { %v5451_v52 = vpop.permute.xlu1 %1364  ;;  %v5453_v36 = vpop.permute.xlu0 %1830  ;;  %v5519_v21 = vrot.slane %v454_v16, %v5208_v61  ;;  %v5527_v63 = vrot.slane %v523_v50, %v5208_v61  ;;  %v661_v19 = vcombine.high %v5344_v9, %v5360_v11  ;;  %v743_v16 = vrot.slane %v729_v27, %v5005_v41 }
 0x120   :  { %8321 = vst [vmem:[#allocation21_spill] sm:$0xff] %v5453_v36  ;;  %v1447_v40 = vcombine.high %v5423_v26, %v5451_v52  ;;  %8322 = vst [vmem:[#allocation22_spill] sm:$0xff] %v5470_v22  ;;  %v759_v62 = vrot.slane %v745_v28, %v5005_v41  ;;  %v691_v50 = vrot.slane %v677_v30, %v5005_v41 }
 0x121   :  { %3995 = vrot.lane.b32.xlu1 %v5459_v38, %s4828_s0  ;;  %575 = vrot.lane.b32.xlu0 %v5462_v42, %s4832_s27  ;;  %v693_v9 = vcombine.high %v5532_v0, %v5512_v60  ;;  %v5553_v27 = vrot.slane %v455_v35, %v5208_v61 }
 0x122   :  { %v5473_v15 = vrot.slane %v1447_v40, %v5005_v41  ;;  %v5489_v40 = vrot.slane %v744_v25, %v5005_v41 }
 0x123   :  { %v5479_v17 = vpop.permute.xlu1 %1826  ;;  %v5481_v45 = vpop.permute.xlu0 %1838 }
 0x124   :  { %8323 = vst [vmem:[#allocation23_spill] sm:$0xff] %v5473_v15  ;;  %8324 = vst [vmem:[#allocation24_spill] sm:$0xff] %v5479_v17  ;;  %v1933_v25 = vcombine.high %v5453_v36, %v5481_v45  ;;  %v761_v18 = vcombine.high %v5503_v6, %v5489_v40 }
 0x125   :  { %8325 = vst [vmem:[#allocation25_spill] sm:$0xff] %v5481_v45  ;;  %547 = vrot.lane.b32.xlu1 %v5484_v59, %s4832_s27  ;;  %583 = vrot.lane.b32.xlu0 %v5494_v47, %s4833_s28  ;;  %v675_v45 = vrot.slane %v661_v19, %v5005_v41  ;;  %v777_v19 = vcombine.high %v743_v16, %v759_v62 }
 0x126   :  { %v5538_v51 = vrot.slane %v1933_v25, %v5005_v41  ;;  %v776_v25 = vcombine.low %v743_v16, %v759_v62  ;;  %v5558_v36 = vrot.slane %v761_v18, %v5208_v61  ;;  %v438_v18 = vcombine.low %v5437_v48, %v5421_v39 }
 0x127   :  { %v5514_v15 = vpop.permute.xlu1 %1834  ;;  %v5516_v22 = vpop.permute.xlu0 %2547  ;;  %v708_v35 = vcombine.low %v675_v45, %v691_v50  ;;  %v506_v39 = vcombine.low %v5409_v2, %v5399_v44  ;;  %v709_v48 = vcombine.high %v675_v45, %v691_v50 }
 0x128   :  { %8326 = vst [vmem:[#allocation26_spill] sm:$0xff] %v5514_v15  ;;  %8327 = vst [vmem:[#allocation27_spill] sm:$0xff] %v5516_v22  ;;  %v1917_v57 = vcombine.high %v5479_v17, %v5514_v15 }
 0x129   :  { %555 = vrot.lane.b32.xlu1 %v5519_v21, %s4833_s28  ;;  %8328 = vst [vmem:[#allocation28_spill] sm:$0xff] %v5538_v51  ;;  %591 = vrot.lane.b32.xlu0 %v5527_v63, %s4834_s29  ;;  %v5579_v51 = vrot.slane %v776_v25, %v5208_v61  ;;  %v5615_v44 = vrot.slane %v709_v48, %v5208_v61 }
 0x12a   :  { %v5541_v28 = vrot.slane %v1917_v57, %v5005_v41  ;;  %v5572_v57 = vrot.slane %v693_v9, %v5208_v61  ;;  %v5598_v9 = vrot.slane %v708_v35, %v5208_v61  ;;  %v5618_v50 = vrot.slane %v506_v39, %v5208_v61 }
 0x12b   :  { %v5548_v11 = vpop.permute.xlu1 %2543  ;;  %v5550_v56 = vpop.permute.xlu0 %2555  ;;  %v8336_v35 = vmov 0.0  }
 0x12c   :  { %8329 = vst [vmem:[#allocation29_spill] sm:$0xff] %v5541_v28  ;;  %8330 = vst [vmem:[#allocation30_spill] sm:$0xff] %v5548_v11  ;;  %v2584_v30 = vcombine.high %v5516_v22, %v5550_v56  ;;  %v471_v39 = vcombine.high %v5484_v59, %v8336_v35  ;;  %v472_v59 = vcombine.high %v5519_v21, %v8336_v35 }
 0x12d   :  { %8331 = vst [vmem:[#allocation31_spill] sm:$0xff] %v5550_v56  ;;  %563 = vrot.lane.b32.xlu1 %v5553_v27, %s4834_s29  ;;  %829 = vrot.lane.b32.xlu0 %v5558_v36, %s4832_s27  ;;  %8335 = vst [vmem:[#allocation35_spill] sm:$0xff] %v5618_v50  ;;  %v473_v21 = vcombine.high %v5553_v27, %v8336_v35 }
 0x12e   :  { %v5584_v22 = vrot.slane %v2584_v30, %v5005_v41  ;;  %v5606_v30 = vrot.slane %v438_v18, %v5208_v61 }
 0x12f   :  { %v5567_v17 = vpop.permute.xlu1 %2551  ;;  %v5569_v15 = vpop.permute.xlu0 %320 }
 0x130   :  { %v2568_v28 = vcombine.high %v5548_v11, %v5567_v17  ;;  %8332 = vst [vmem:[#allocation32_spill] sm:$0xff] %v5584_v22  ;;  %8334 = vst [vmem:[#allocation34_spill] sm:$0xff] %v5606_v30  ;;  %v539_v11 = vcombine.high %v5462_v42, %v8336_v35 }
 0x131   :  { %801 = vrot.lane.b32.xlu1 %v5572_v57, %s4832_s27  ;;  %837 = vrot.lane.b32.xlu0 %v5579_v51, %s4833_s28 }
 0x132   :  { %v5587_v56 = vrot.slane %v2568_v28, %v5005_v41  ;;  %v5603_v28 = vrot.slane %v777_v19, %v5208_v61  ;;  %v470_v19 = vcombine.high %v5606_v30, %v8336_v35 }
 0x133   :  { %v5593_v62 = vpop.permute.xlu1 %1354  ;;  %v5595_v16 = vpop.permute.xlu0 %328 }
 0x134   :  { %8333 = vst [vmem:[#allocation33_spill] sm:$0xff] %v5587_v56  ;;  %v538_v56 = vcombine.high %v5618_v50, %v8336_v35  ;;  %v692_v50 = vcombine.low %v5532_v0, %v5512_v60  ;;  %v540_v60 = vcombine.high %v5494_v47, %v8336_v35  ;;  %v541_v47 = vcombine.high %v5527_v63, %v8336_v35 }
 0x135   :  { %809 = vrot.lane.b32.xlu1 %v5598_v9, %s4833_s28  ;;  %845 = vrot.lane.b32.xlu0 %v5603_v28, %s4834_s29 }
 0x137   :  { %v293_v2 = vpop.permute.xlu1 %292  ;;  %v5612_v45 = vpop.permute.xlu0 %336 }
 0x139   :  { %817 = vrot.lane.b32.xlu1 %v5615_v44, %s4834_s29  ;;  %543 = vrot.lane.b32.xlu0 %v470_v19, %s4835_s30 }
 0x13b   :  { %v301_v18 = vpop.permute.xlu1 %300  ;;  %v289_v25 = vpop.permute.xlu0 %288 }
 0x13c   :  { %v344_v48 = vsel %vm343_vm3, %v5245_v29, %v289_v25 }
 0x13d   :  { %571 = vrot.lane.b32.xlu1 %v538_v56, %s4835_s30  ;;  %551 = vrot.lane.b32.xlu0 %v471_v39, %s4836_s6  ;;  %v346_v19 = vsel %vm345_vm4, %v344_v48, %v293_v2  ;;  %v760_v56 = vcombine.low %v5503_v6, %v5489_v40 }
 0x13f   :  { %v309_v22 = vpop.permute.xlu1 %308  ;;  %v297_v30 = vpop.permute.xlu0 %296 }
 0x140   :  { %v348_v29 = vsel %vm347_vm5, %v346_v19, %v297_v30  ;;  %v725_v19 = vcombine.high %v5572_v57, %v8336_v35 }
 0x141   :  { %579 = vrot.lane.b32.xlu1 %v539_v11, %s4836_s6  ;;  %559 = vrot.lane.b32.xlu0 %v472_v59, %s4837_s7  ;;  %v350_v42 = vsel %vm349_vm6, %v348_v29, %v301_v18  ;;  %v5654_v11 = vrot.slane %v692_v50, %v5208_v61  ;;  %v5664_v18 = vrot.slane %v760_v56, %v5208_v61 }
 0x143   :  { %v5645_v25 = vpop.permute.xlu1 %1017  ;;  %v305_v2 = vpop.permute.xlu0 %304  ;;  %v724_v50 = vcombine.high %v5654_v11, %v8336_v35 }
 0x144   :  { %8337 = vst [vmem:[#allocation36_spill] sm:$0xff] %v5645_v25  ;;  %v352_v0 = vsel %vm351_vm7, %v350_v42, %v305_v2  ;;  %v793_v42 = vcombine.high %v5558_v36, %v8336_v35 }
 0x145   :  { %587 = vrot.lane.b32.xlu1 %v540_v60, %s4837_s7  ;;  %567 = vrot.lane.b32.xlu0 %v473_v21, %s4838_s8  ;;  %v354_v6 = vsel %vm353_vm8, %v352_v0, %v309_v22  ;;  %v792_v22 = vcombine.high %v5664_v18, %v8336_v35  ;;  %v727_v21 = vcombine.high %v5615_v44, %v8336_v35 }
 0x147   :  { %v5658_v40 = vpop.permute.xlu1 %1025  ;;  %v313_v30 = vpop.permute.xlu0 %312 }
 0x148   :  { %8338 = vst [vmem:[#allocation37_spill] sm:$0xff] %v5658_v40  ;;  %v356_v27 = vsel %vm355_vm9, %v354_v6, %v313_v30 }
 0x149   :  { %364 = vst [vmem:[#allocation3] sm:$0xf] %v356_v27  ;;  %595 = vrot.lane.b32.xlu1 %v541_v47, %s4838_s8  ;;  %797 = vrot.lane.b32.xlu0 %v724_v50, %s4835_s30  ;;  %v5711_v47 = vld [vmem:[#allocation2 + $0xb2] sm:$0xff] }
 0x14b   :  { %v317_v48 = vpop.permute.xlu1 %316  ;;  %v5671_v39 = vpop.permute.xlu0 %1013 }
 0x14c   :  { %8339 = vst [vmem:[#allocation38_spill] sm:$0xff] %v5671_v39  ;;  %v357_v63 = vsel %vm343_vm3, %v5279_v14, %v317_v48  ;;  %v726_v14 = vcombine.high %v5598_v9, %v8336_v35 }
 0x14d   :  { %825 = vrot.lane.b32.xlu1 %v792_v22, %s4835_s30  ;;  %805 = vrot.lane.b32.xlu0 %v725_v19, %s4836_s6  ;;  %v358_v59 = vsel %vm345_vm4, %v357_v63, %v5569_v15  ;;  %v794_v15 = vcombine.high %v5579_v51, %v8336_v35 }
 0x14f   :  { %v325_v29 = vpop.permute.xlu1 %324  ;;  %v5683_v56 = vpop.permute.xlu0 %1021 }
 0x150   :  { %8340 = vst [vmem:[#allocation39_spill] sm:$0xff] %v5683_v56  ;;  %v359_v2 = vsel %vm347_vm5, %v358_v59, %v325_v29 }
 0x151   :  { %833 = vrot.lane.b32.xlu1 %v793_v42, %s4836_s6  ;;  %813 = vrot.lane.b32.xlu0 %v726_v14, %s4837_s7  ;;  %v360_v60 = vsel %vm349_vm6, %v359_v2, %v5595_v16  ;;  %v795_v16 = vcombine.high %v5603_v28, %v8336_v35  ;;  %v5751_v14 = vld [vmem:[#allocation2 + $0x62] sm:$0xff] }
 0x153   :  { %v333_v57 = vpop.permute.xlu1 %332  ;;  %v5694_v0 = vpop.permute.xlu0 %1029 }
 0x154   :  { %8341 = vst [vmem:[#allocation40_spill] sm:$0xff] %v5694_v0  ;;  %v361_v36 = vsel %vm351_vm7, %v360_v60, %v333_v57  ;;  %v5755_v57 = vld [vmem:[#allocation2 + $0x7a] sm:$0xff] }
 0x155   :  { %841 = vrot.lane.b32.xlu1 %v794_v15, %s4837_s7  ;;  %821 = vrot.lane.b32.xlu0 %v727_v21, %s4838_s8  ;;  %v362_v6 = vsel %vm353_vm8, %v361_v36, %v5612_v45 }
 0x157   :  { %v341_v9 = vpop.permute.xlu1 %340  ;;  %v5705_v30 = vpop.permute.xlu0 %1358 }
 0x158   :  { %v363_v51 = vsel %vm355_vm9, %v362_v6, %v341_v9  ;;  %v5771_v6 = vld [vmem:[#allocation2 + $0x92] sm:$0xff] }
 0x159   :  { %365 = vst [vmem:[#allocation3 + $0x8] sm:$0xf] %v363_v51  ;;  %849 = vrot.lane.b32.xlu1 %v795_v16, %s4838_s8  ;;  %3999 = vrot.lane.b32.xlu0 %v5711_v47, %s4828_s0  ;;  %v5775_v16 = vld [vmem:[#allocation2 + $0xaa] sm:$0xff] }
 0x15b   :  { %v5715_v44 = vpop.permute.xlu1 %1362  ;;  %v5717_v27 = vpop.permute.xlu0 %1366 }
 0x15c   :  { %v1379_v45 = vcombine.high %v5593_v62, %v5715_v44  ;;  %v1395_v28 = vcombine.high %v5705_v30, %v5717_v27 }
 0x15d   :  { %3515 = vrot.lane.b32.xlu1 %v5093_v7, %s4830_s22  ;;  %3519 = vrot.lane.b32.xlu0 %v5103_v12, %s4830_s22 }
 0x15e   :  { %v5726_v50 = vrot.slane %v1379_v45, %v5005_v41  ;;  %v5729_v48 = vrot.slane %v1395_v28, %v5005_v41 }
 0x15f   :  { %v5733_v22 = vpop.permute.xlu1 %1824  ;;  %v5735_v63 = vpop.permute.xlu0 %1828 }
 0x160   :  { %8342 = vst [vmem:[#allocation41_spill] sm:$0xff] %v5726_v50  ;;  %8343 = vst [vmem:[#allocation42_spill] sm:$0xff] %v5729_v48  ;;  %v3105_v48 = vcombine.low %v5079_v1, %v5083_v4 }
 0x161   :  { %3523 = vrot.lane.b32.xlu1 %v5095_v8, %s4830_s22  ;;  %3527 = vrot.lane.b32.xlu0 %v5105_v13, %s4830_s22 }
 0x163   :  { %v5743_v29 = vpop.permute.xlu1 %1832  ;;  %v5745_v59 = vpop.permute.xlu0 %1836 }
 0x164   :  { %v1849_v42 = vcombine.high %v5733_v22, %v5743_v29  ;;  %v1865_v2 = vcombine.high %v5735_v63, %v5745_v59 }
 0x165   :  { %3985 = vrot.lane.b32.xlu1 %v5751_v14, %s4828_s0  ;;  %3989 = vrot.lane.b32.xlu0 %v5755_v57, %s4828_s0 }
 0x166   :  { %v5758_v60 = vrot.slane %v1849_v42, %v5005_v41  ;;  %v5761_v15 = vrot.slane %v1865_v2, %v5005_v41 }
 0x167   :  { %v5765_v36 = vpop.permute.xlu1 %2799  ;;  %v5767_v21 = vpop.permute.xlu0 %2803 }
 0x168   :  { %8344 = vst [vmem:[#allocation43_spill] sm:$0xff] %v5758_v60  ;;  %8345 = vst [vmem:[#allocation44_spill] sm:$0xff] %v5761_v15 }
 0x169   :  { %3993 = vrot.lane.b32.xlu1 %v5771_v6, %s4828_s0  ;;  %3997 = vrot.lane.b32.xlu0 %v5775_v16, %s4828_s0 }
 0x16b   :  { %v5779_v51 = vpop.permute.xlu1 %2807  ;;  %v5781_v45 = vpop.permute.xlu0 %2811 }
 0x16c   :  { %v2890_v28 = vcombine.high %v5765_v36, %v5779_v51  ;;  %v2906_v42 = vcombine.high %v5767_v21, %v5781_v45 }
 0x16d   :  { %3269 = vrot.lane.b32.xlu1 %v5079_v1, %s4828_s0  ;;  %3273 = vrot.lane.b32.xlu0 %v5081_v3, %s4828_s0 }
 0x16e   :  { %v5790_v2 = vrot.slane %v2890_v28, %v5005_v41  ;;  %v5793_v9 = vrot.slane %v2906_v42, %v5005_v41 }
 0x16f   :  { %v5797_v19 = vpop.permute.xlu1 %1108  ;;  %v5799_v0 = vpop.permute.xlu0 %1112 }
 0x170   :  { %8346 = vst [vmem:[#allocation45_spill] sm:$0xff] %v5790_v2  ;;  %8347 = vst [vmem:[#allocation46_spill] sm:$0xff] %v5793_v9 }
 0x171   :  { %3277 = vrot.lane.b32.xlu1 %v5083_v4, %s4828_s0  ;;  %3281 = vrot.lane.b32.xlu0 %v5085_v5, %s4828_s0 }
 0x173   :  { %v5807_v28 = vpop.permute.xlu1 %1116  ;;  %v5809_v42 = vpop.permute.xlu0 %1120 }
 0x174   :  { %v1199_v56 = vcombine.high %v5797_v19, %v5807_v28  ;;  %v1215_v25 = vcombine.high %v5799_v0, %v5809_v42 }
 0x175   :  { %3267 = vrot.lane.b32.xlu1 %v5093_v7, %s4828_s0  ;;  %3271 = vrot.lane.b32.xlu0 %v5103_v12, %s4828_s0 }
 0x176   :  { %v5818_v40 = vrot.slane %v1199_v56, %v5005_v41  ;;  %v5821_v39 = vrot.slane %v1215_v25, %v5005_v41 }
 0x177   :  { %v5825_v2 = vpop.permute.xlu1 %2797  ;;  %v5829_v60 = vpop.permute.xlu0 %2801 }
 0x178   :  { %8348 = vst [vmem:[#allocation47_spill] sm:$0xff] %v5818_v40  ;;  %8349 = vst [vmem:[#allocation48_spill] sm:$0xff] %v5821_v39 }
 0x179   :  { %3275 = vrot.lane.b32.xlu1 %v5095_v8, %s4828_s0  ;;  %3279 = vrot.lane.b32.xlu0 %v5105_v13, %s4828_s0 }
 0x17b   :  { %v5835_v7 = vpop.permute.xlu1 %2805  ;;  %v5839_v56 = vpop.permute.xlu0 %2809 }
 0x17c   :  { %v2822_v25 = vcombine.high %v5825_v2, %v5835_v7  ;;  %v2838_v12 = vcombine.high %v5829_v60, %v5839_v56 }
 0x17d   :  { %2080 = vrot.lane.b32.xlu1 %v5150_v37, %s4830_s22  ;;  %2084 = vrot.lane.b32.xlu0 %v5141_v31, %s4830_s22 }
 0x17e   :  { %v5846_v9 = vrot.slane %v2822_v25, %v5005_v41  ;;  %v5851_v8 = vrot.slane %v2838_v12, %v5005_v41 }
 0x17f   :  { %v5853_v13 = vpop.permute.xlu1 %1106  ;;  %v5855_v40 = vpop.permute.xlu0 %1110 }
 0x180   :  { %8350 = vst [vmem:[#allocation49_spill] sm:$0xff] %v5846_v9  ;;  %8351 = vst [vmem:[#allocation50_spill] sm:$0xff] %v5851_v8  ;;  %v4768_v8 = vld [vmem:[#allocation2 + $0x9] ss:$48 sps:$4 sm:$0xff]  }
 0x181   :  { %8352 = vst [vmem:[#allocation51_spill] sm:$0xff] %v5853_v13  ;;  %8353 = vst [vmem:[#allocation52_spill] sm:$0xff] %v5855_v40  ;;  %2088 = vrot.lane.b32.xlu1 %v5143_v32, %s4830_s22  ;;  %2092 = vrot.lane.b32.xlu0 %v5129_v20, %s4830_s22 }
 0x183   :  { %v5863_v37 = vpop.permute.xlu1 %1114  ;;  %v5867_v25 = vpop.permute.xlu0 %1118 }
 0x184   :  { %8354 = vst [vmem:[#allocation53_spill] sm:$0xff] %v5863_v37  ;;  %v1131_v31 = vcombine.high %v5853_v13, %v5863_v37  ;;  %8355 = vst [vmem:[#allocation54_spill] sm:$0xff] %v5867_v25  ;;  %v1147_v12 = vcombine.high %v5855_v40, %v5867_v25  ;;  %v1394_v13 = vcombine.low %v5705_v30, %v5717_v27 }
 0x185   :  { %2078 = vrot.lane.b32.xlu1 %v5308_v24, %s4830_s22  ;;  %2082 = vrot.lane.b32.xlu0 %v5310_v33, %s4830_s22 }
 0x186   :  { %v5874_v39 = vrot.slane %v1131_v31, %v5005_v41  ;;  %v5879_v20 = vrot.slane %v1147_v12, %v5005_v41  ;;  %v4770_v31 = vld [vmem:[#allocation2 + $0x21] ss:$48 sps:$4 sm:$0xff]   ;;  %v6079_v27 = vrot.slane %v1394_v13, %v5005_v41 }
 0x187   :  { %v5881_v32 = vpop.permute.xlu1 %3517  ;;  %v5883_v9 = vpop.permute.xlu0 %3521 }
 0x188   :  { %8356 = vst [vmem:[#allocation55_spill] sm:$0xff] %v5874_v39  ;;  %8357 = vst [vmem:[#allocation56_spill] sm:$0xff] %v5879_v20  ;;  %v968_v20 = vrot.slane %v4770_v31, %v5005_v41  ;;  %v4773_v31 = vld [vmem:[#allocation2 + $0x25] ss:$48 sps:$4 sm:$0xff]  }
 0x189   :  { %8358 = vst [vmem:[#allocation57_spill] sm:$0xff] %v5881_v32  ;;  %8359 = vst [vmem:[#allocation58_spill] sm:$0xff] %v5883_v9  ;;  %2086 = vrot.lane.b32.xlu1 %v5318_v10, %s4830_s22  ;;  %2090 = vrot.lane.b32.xlu0 %v5320_v23, %s4830_s22 }
 0x18b   :  { %v5891_v24 = vpop.permute.xlu1 %3525  ;;  %v5895_v12 = vpop.permute.xlu0 %3529 }
 0x18c   :  { %8360 = vst [vmem:[#allocation59_spill] sm:$0xff] %v5891_v24  ;;  %v3608_v33 = vcombine.high %v5881_v32, %v5891_v24  ;;  %8361 = vst [vmem:[#allocation60_spill] sm:$0xff] %v5895_v12  ;;  %v3624_v15 = vcombine.high %v5883_v9, %v5895_v12  ;;  %v4820_v24 = vld [vmem:[#allocation2 + $0x79] sm:$0xff] }
 0x18d   :  { %4241 = vrot.lane.b32.xlu1 %v5432_v54, %s4830_s22  ;;  %4245 = vrot.lane.b32.xlu0 %v5441_v53, %s4830_s22  ;;  %v952_v54 = vrot.slane %v4768_v8, %v5005_v41  ;;  %v2635_v53 = vcombine.low %v5382_v46, %v5394_v55  ;;  %v2651_v8 = vcombine.low %v5376_v43, %v5384_v58 }
 0x18e   :  { %v5902_v10 = vrot.slane %v3608_v33, %v5005_v41  ;;  %v5907_v23 = vrot.slane %v3624_v15, %v5005_v41  ;;  %v5953_v58 = vrot.slane %v3105_v48, %v5005_v41 }
 0x18f   :  { %v5909_v39 = vpop.permute.xlu1 %3987  ;;  %v5912_v50 = vpop.permute.xlu0 %3991  ;;  %v976_v33 = vcombine.low %v952_v54, %v968_v20  ;;  %v5938_v46 = vrot.slane %v2635_v53, %v5005_v41  ;;  %v977_v4 = vcombine.high %v952_v54, %v968_v20  ;;  %v8366_v54 = vld [vmem:[#allocation24_spill] sm:$0xff] }
 0x190   :  { %8362 = vst [vmem:[#allocation61_spill] sm:$0xff] %v5902_v10  ;;  %8363 = vst [vmem:[#allocation62_spill] sm:$0xff] %v5907_v23 }
 0x191   :  { %4249 = vrot.lane.b32.xlu1 %v5459_v38, %s4830_s22  ;;  %4253 = vrot.lane.b32.xlu0 %v5711_v47, %s4830_s22  ;;  %v3121_v38 = vcombine.low %v5081_v3, %v5085_v5  ;;  %v4772_v47 = vld [vmem:[#allocation2 + $0xd] ss:$48 sps:$4 sm:$0xff]   ;;  %v5943_v1 = vrot.slane %v976_v33, %v5208_v61  ;;  %v5946_v3 = vrot.slane %v4773_v31, %v5005_v41 }
 0x192   :  { %v1446_v5 = vcombine.low %v5423_v26, %v5451_v52  ;;  %v5964_v20 = vrot.slane %v4772_v47, %v5005_v41  ;;  %v1462_v26 = vcombine.low %v5396_v49, %v5425_v34  ;;  %v8365_v52 = vld [vmem:[#allocation26_spill] sm:$0xff]  ;;  %v991_v31 = vrot.slane %v977_v4, %v5208_v61  ;;  %v8367_v34 = vld [vmem:[#allocation25_spill] sm:$0xff] }
 0x193   :  { %v5923_v15 = vpop.permute.xlu1 %3995  ;;  %v5925_v9 = vpop.permute.xlu0 %575  ;;  %8364 = vst [vmem:[#allocation63_spill] sm:$0xff] %v5943_v1  ;;  %v1916_v53 = vcombine.low %v8366_v54, %v8365_v52 }
 0x194   :  { %v5982_v49 = vrot.slane %v1446_v5, %v5005_v41  ;;  %v5994_v4 = vrot.slane %v1462_v26, %v5005_v41  ;;  %v8370_v5 = vld [vmem:[#allocation31_spill] sm:$0xff]  ;;  %v1009_v32 = vcombine.high %v991_v31, %v8336_v35 }
 0x195   :  { %4239 = vrot.lane.b32.xlu1 %v5751_v14, %s4830_s22  ;;  %4243 = vrot.lane.b32.xlu0 %v5755_v57, %s4830_s22  ;;  %v5956_v14 = vrot.slane %v3121_v38, %v5005_v41  ;;  %v5959_v57 = vrot.slane %v2651_v8, %v5005_v41  ;;  %v992_v38 = vcombine.low %v5964_v20, %v5946_v3  ;;  %v8368_v8 = vld [vmem:[#allocation21_spill] sm:$0xff] }
 0x196   :  { %v1932_v47 = vcombine.low %v8368_v8, %v8367_v34  ;;  %v5997_v23 = vrot.slane %v1916_v53, %v5005_v41  ;;  %v4818_v34 = vld [vmem:[#allocation2 + $0x61] sm:$0xff]  ;;  %v4821_v53 = vld [vmem:[#allocation2 + $0xa9] sm:$0xff] }
 0x197   :  { %v5940_v55 = vpop.permute.xlu1 %547  ;;  %v5950_v43 = vpop.permute.xlu0 %583  ;;  %v2667_v48 = vcombine.low %v5938_v46, %v5959_v57  ;;  %v3137_v10 = vcombine.low %v5953_v58, %v5956_v14  ;;  %v3053_v40 = vcombine.low %v4820_v24, %v4821_v53 }
 0x199   :  { %4247 = vrot.lane.b32.xlu1 %v5771_v6, %s4830_s22  ;;  %4251 = vrot.lane.b32.xlu0 %v5775_v16, %s4830_s22  ;;  %v1008_v6 = vcombine.high %v5943_v1, %v8336_v35  ;;  %v8369_v16 = vld [vmem:[#allocation30_spill] sm:$0xff]  ;;  %v8371_v1 = vld [vmem:[#allocation27_spill] sm:$0xff]  ;;  %v6007_v26 = vrot.slane %v2667_v48, %v5208_v61  ;;  %v6046_v25 = vrot.slane %v3053_v40, %v5005_v41 }
 0x19a   :  { %v2567_v52 = vcombine.low %v8369_v16, %v5567_v17  ;;  %v2583_v12 = vcombine.low %v8371_v1, %v8370_v5  ;;  %v4819_v17 = vld [vmem:[#allocation2 + $0x91] sm:$0xff]  ;;  %v1478_v1 = vcombine.low %v5982_v49, %v5994_v4  ;;  %v6012_v5 = vrot.slane %v1932_v47, %v5005_v41 }
 0x19b   :  { %v5974_v33 = vpop.permute.xlu1 %555  ;;  %v5988_v54 = vpop.permute.xlu0 %591  ;;  %v3037_v8 = vcombine.low %v4818_v34, %v4819_v17  ;;  %8372 = vst [vmem:[#allocation26_spill] sm:$0xff] %v6007_v26  ;;  %v2699_v47 = vcombine.high %v6007_v26, %v8336_v35  ;;  %v1378_v26 = vcombine.low %v5593_v62, %v5715_v44  ;;  %v2668_v62 = vcombine.high %v5938_v46, %v5959_v57 }
 0x19c   :  { %v6015_v34 = vrot.slane %v2567_v52, %v5005_v41  ;;  %v1948_v48 = vcombine.low %v5997_v23, %v6012_v5  ;;  %v6026_v24 = vrot.slane %v2583_v12, %v5005_v41  ;;  %v6043_v12 = vrot.slane %v1478_v1, %v5208_v61 }
 0x19d   :  { %1041 = vrot.lane.b32.xlu1 %v1008_v6, %s4835_s30  ;;  %1045 = vrot.lane.b32.xlu0 %v991_v31, %s4832_s27  ;;  %v1000_v6 = vrot.slane %v992_v38, %v5208_v61  ;;  %v6020_v31 = vrot.slane %v3137_v10, %v5208_v61  ;;  %v6034_v52 = vrot.slane %v3037_v8, %v5005_v41 }
 0x19e   :  { %v2599_v10 = vcombine.low %v6015_v34, %v6026_v24  ;;  %8374 = vst [vmem:[#allocation25_spill] sm:$0xff] %v6043_v12  ;;  %v6051_v8 = vrot.slane %v1948_v48, %v5208_v61  ;;  %v1510_v40 = vcombine.high %v6043_v12, %v8336_v35  ;;  %v6076_v44 = vrot.slane %v1378_v26, %v5005_v41  ;;  %v8378_v26 = vld [vmem:[#allocation34_spill] sm:$0xff]  ;;  %v8420_v12 = vld [vmem:[#allocation59_spill] sm:$0xff] }
 0x19f   :  { %v6002_v16 = vpop.permute.xlu1 %563  ;;  %v6017_v17 = vpop.permute.xlu0 %829  ;;  %8373 = vst [vmem:[#allocation24_spill] sm:$0xff] %v6020_v31  ;;  %v3169_v53 = vcombine.high %v6020_v31, %v8336_v35  ;;  %v1010_v1 = vcombine.high %v1000_v6, %v8336_v35  ;;  %v3069_v48 = vcombine.low %v6034_v52, %v6046_v25 }
 0x1a0   :  { %8375 = vst [vmem:[#allocation21_spill] sm:$0xff] %v6051_v8  ;;  %v1980_v30 = vcombine.high %v6051_v8, %v8336_v35  ;;  %v1410_v13 = vcombine.low %v6076_v44, %v6079_v27 }
 0x1a1   :  { %1049 = vrot.lane.b32.xlu1 %v1009_v32, %s4836_s6  ;;  %1053 = vrot.lane.b32.xlu0 %v1000_v6, %s4833_s28  ;;  %v1848_v6 = vcombine.low %v5733_v22, %v5743_v29  ;;  %v3138_v22 = vcombine.high %v5953_v58, %v5956_v14  ;;  %v4778_v29 = vld [vmem:[#allocation2 + $0x68] ss:$48 sps:$4 sm:$0xff]  }
 0x1a3   :  { %v6029_v38 = vpop.permute.xlu1 %801  ;;  %v6038_v32 = vpop.permute.xlu0 %837 }
 0x1a5   :  { %2732 = vrot.lane.b32.xlu1 %v2699_v47, %s4835_s30  ;;  %3202 = vrot.lane.b32.xlu0 %v3169_v53, %s4835_s30  ;;  %v6065_v47 = vrot.slane %v2599_v10, %v5208_v61  ;;  %v1864_v10 = vcombine.low %v5735_v63, %v5745_v59  ;;  %v993_v63 = vcombine.high %v5964_v20, %v5946_v3  ;;  %v4780_v59 = vld [vmem:[#allocation2 + $0x80] ss:$48 sps:$4 sm:$0xff]  }
 0x1a7   :  { %v6057_v31 = vpop.permute.xlu1 %809  ;;  %v6060_v37 = vpop.permute.xlu0 %845  ;;  %8376 = vst [vmem:[#allocation30_spill] sm:$0xff] %v6065_v47  ;;  %v2631_v57 = vcombine.high %v6065_v47, %v8336_v35  ;;  %v8419_v47 = vld [vmem:[#allocation33_spill] sm:$0xff] }
 0x1a9   :  { %1057 = vrot.lane.b32.xlu1 %v1010_v1, %s4837_s7  ;;  %1543 = vrot.lane.b32.xlu0 %v1510_v40, %s4835_s30  ;;  %v6090_v1 = vrot.slane %v3069_v48, %v5208_v61  ;;  %v6103_v48 = vrot.slane %v1848_v6, %v5005_v41 }
 0x1ab   :  { %v6085_v53 = vpop.permute.xlu1 %817  ;;  %v544_v46 = vpop.permute.xlu0 %543  ;;  %8377 = vst [vmem:[#allocation31_spill] sm:$0xff] %v6090_v1  ;;  %v3101_v20 = vcombine.high %v6090_v1, %v8336_v35 }
 0x1ac   :  { %v598_v40 = vsel %vm343_vm3, %v8378_v26, %v544_v46  ;;  %v6106_v46 = vrot.slane %v1864_v10, %v5005_v41  ;;  %v8379_v26 = vld [vmem:[#allocation35_spill] sm:$0xff]  ;;  %v1479_v10 = vcombine.high %v5982_v49, %v5994_v4  ;;  %v6137_v49 = vrot.slane %v3138_v22, %v5208_v61 }
 0x1ad   :  { %2013 = vrot.lane.b32.xlu1 %v1980_v30, %s4835_s30  ;;  %2704 = vrot.lane.b32.xlu0 %v2631_v57, %s4835_s30  ;;  %v6109_v57 = vrot.slane %v2668_v62, %v5208_v61  ;;  %v599_v3 = vsel %vm345_vm4, %v598_v40, %v5940_v55  ;;  %v6124_v62 = vrot.slane %v993_v63, %v5208_v61 }
 0x1ae   :  { %v6130_v55 = vrot.slane %v4780_v59, %v5005_v41  ;;  %v1880_v40 = vcombine.low %v6103_v48, %v6106_v46  ;;  %v6140_v4 = vrot.slane %v1410_v13, %v5208_v61  ;;  %v2889_v63 = vcombine.low %v5765_v36, %v5779_v51 }
 0x1af   :  { %v572_v30 = vpop.permute.xlu1 %571  ;;  %v552_v14 = vpop.permute.xlu0 %551  ;;  %v6155_v22 = vrot.slane %v1479_v10, %v5208_v61 }
 0x1b0   :  { %v605_v58 = vsel %vm343_vm3, %v8379_v26, %v572_v30  ;;  %v600_v6 = vsel %vm347_vm5, %v599_v3, %v552_v14  ;;  %v6127_v30 = vrot.slane %v4778_v29, %v5005_v41  ;;  %8380 = vst [vmem:[#allocation27_spill] sm:$0xff] %v6140_v4  ;;  %v2905_v29 = vcombine.low %v5767_v21, %v5781_v45 }
 0x1b1   :  { %2736 = vrot.lane.b32.xlu1 %v6109_v57, %s4832_s27  ;;  %3174 = vrot.lane.b32.xlu0 %v3101_v20, %s4835_s30  ;;  %v606_v3 = vsel %vm345_vm4, %v605_v58, %v5925_v9  ;;  %v601_v14 = vsel %vm349_vm6, %v600_v6, %v5974_v33  ;;  %v1949_v21 = vcombine.high %v5997_v23, %v6012_v5 }
 0x1b2   :  { %v2419_v36 = vcombine.low %v6127_v30, %v6130_v55  ;;  %v1442_v33 = vcombine.high %v6140_v4, %v8336_v35  ;;  %v6166_v13 = vrot.slane %v1880_v40, %v5208_v61  ;;  %v6169_v58 = vrot.slane %v2889_v63, %v5005_v41 }
 0x1b3   :  { %v580_v26 = vpop.permute.xlu1 %579  ;;  %v560_v20 = vpop.permute.xlu0 %559  ;;  %v6172_v6 = vrot.slane %v2905_v29, %v5005_v41 }
 0x1b4   :  { %v607_v59 = vsel %vm347_vm5, %v606_v3, %v580_v26  ;;  %v602_v9 = vsel %vm351_vm7, %v601_v14, %v560_v20  ;;  %8381 = vst [vmem:[#allocation34_spill] sm:$0xff] %v6166_v13  ;;  %v1912_v63 = vcombine.high %v6166_v13, %v8336_v35  ;;  %v6186_v29 = vrot.slane %v2419_v36, %v5208_v61 }
 0x1b5   :  { %3206 = vrot.lane.b32.xlu1 %v6137_v49, %s4832_s27  ;;  %1061 = vrot.lane.b32.xlu0 %v6124_v62, %s4834_s29  ;;  %v608_v45 = vsel %vm349_vm6, %v607_v59, %v5950_v43  ;;  %v603_v23 = vsel %vm353_vm8, %v602_v9, %v6002_v16  ;;  %v2600_v16 = vcombine.high %v6015_v34, %v6026_v24 }
 0x1b6   :  { %8382 = vst [vmem:[#allocation35_spill] sm:$0xff] %v6186_v29  ;;  %v2921_v59 = vcombine.low %v6169_v58, %v6172_v6  ;;  %v6194_v9 = vrot.slane %v1949_v21, %v5208_v61  ;;  %v1198_v34 = vcombine.low %v5797_v19, %v5807_v28  ;;  %v1214_v24 = vcombine.low %v5799_v0, %v5809_v42 }
 0x1b7   :  { %v588_v51 = vpop.permute.xlu1 %587  ;;  %v568_v5 = vpop.permute.xlu0 %567  ;;  %v2451_v21 = vcombine.high %v6186_v29, %v8336_v35 }
 0x1b8   :  { %v609_v10 = vsel %vm351_vm7, %v608_v45, %v588_v51  ;;  %v604_v43 = vsel %vm355_vm9, %v603_v23, %v568_v5  ;;  %v6215_v19 = vrot.slane %v2921_v59, %v5208_v61  ;;  %v6224_v28 = vrot.slane %v1198_v34, %v5005_v41 }
 0x1b9   :  { %1515 = vrot.lane.b32.xlu1 %v1442_v33, %s4835_s30  ;;  %v614_v26 = vrot.slane %v604_v43, 4  ;;  %1547 = vrot.lane.b32.xlu0 %v6155_v22, %s4832_s27  ;;  %v610_v3 = vsel %vm353_vm8, %v609_v10, %v5988_v54  ;;  %v6212_v10 = vrot.slane %v2600_v16, %v5208_v61  ;;  %v6227_v42 = vrot.slane %v1214_v24, %v5005_v41 }
 0x1ba   :  { %8383 = vst [vmem:[#allocation64_spill] sm:$0xff] %v6215_v19  ;;  %v2700_v5 = vcombine.high %v6109_v57, %v8336_v35  ;;  %v4825_v57 = vld [vmem:[#allocation2 + $0xa] sm:$0xff] }
 0x1bb   :  { %v596_v40 = vpop.permute.xlu1 %595  ;;  %618 = vst [vmem:[#allocation3] sm:$0xf0] %v614_v26  ;;  %v798_v20 = vpop.permute.xlu0 %797 }
 0x1bc   :  { %v611_v14 = vsel %vm355_vm9, %v610_v3, %v596_v40  ;;  %v852_v51 = vsel %vm343_vm3, %v5654_v11, %v798_v20  ;;  %v4823_v3 = vld [vmem:[#allocation2 + $0x22] sm:$0xff] }
 0x1bd   :  { %v615_v54 = vrot.slane %v611_v14, 4  ;;  %1985 = vrot.lane.b32.xlu1 %v1912_v63, %s4835_s30  ;;  %2017 = vrot.lane.b32.xlu0 %v6194_v9, %s4832_s27  ;;  %v853_v11 = vsel %vm345_vm4, %v852_v51, %v6029_v38  ;;  %v1230_v14 = vcombine.low %v6224_v28, %v6227_v42 }
 0x1bf   :  { %619 = vst [vmem:[#allocation3 + $0x8] sm:$0xf0] %v615_v54  ;;  %v826_v36 = vpop.permute.xlu1 %825  ;;  %v806_v33 = vpop.permute.xlu0 %805 }
 0x1c0   :  { %v859_v45 = vsel %vm343_vm3, %v5664_v18, %v826_v36  ;;  %v854_v0 = vsel %vm347_vm5, %v853_v11, %v806_v33  ;;  %v3070_v18 = vcombine.high %v6034_v52, %v6046_v25  ;;  %v2953_v25 = vcombine.high %v6215_v19, %v8336_v35  ;;  %v4822_v52 = vld [vmem:[#allocation2 + $0x52] sm:$0xff] }
 0x1c1   :  { %2484 = vrot.lane.b32.xlu1 %v2451_v21, %s4835_s30  ;;  %2708 = vrot.lane.b32.xlu0 %v6212_v10, %s4832_s27  ;;  %v860_v23 = vsel %vm345_vm4, %v859_v45, %v6017_v17  ;;  %v855_v26 = vsel %vm349_vm6, %v854_v0, %v6057_v31  ;;  %v1684_v63 = vcombine.low %v4823_v3, %v4822_v52  ;;  %v4824_v17 = vld [vmem:[#allocation2 + $0x3a] sm:$0xff] }
 0x1c2   :  { %v1668_v59 = vcombine.low %v4825_v57, %v4824_v17  ;;  %v6246_v54 = vrot.slane %v3070_v18, %v5208_v61  ;;  %v3170_v36 = vcombine.high %v6137_v49, %v8336_v35  ;;  %v4784_v11 = vld [vmem:[#allocation2 + $0x60] ss:$48 sps:$4 sm:$0xff]   ;;  %v4078_v33 = vcombine.high %v5909_v39, %v5923_v15  ;;  %v8384_v18 = vld [vmem:[#allocation5_spill] sm:$0xff] }
 0x1c3   :  { %v834_v38 = vpop.permute.xlu1 %833  ;;  %v814_v40 = vpop.permute.xlu0 %813  ;;  %v6254_v21 = vrot.slane %v1684_v63, %v5005_v41  ;;  %v1011_v52 = vcombine.high %v6124_v62, %v8336_v35 }
 0x1c4   :  { %v861_v43 = vsel %vm347_vm5, %v860_v23, %v834_v38  ;;  %v856_v16 = vsel %vm351_vm7, %v855_v26, %v814_v40  ;;  %v8385_v38 = vld [vmem:[#allocation4_spill] sm:$0xff]  ;;  %v1411_v26 = vcombine.high %v6076_v44, %v6079_v27  ;;  %v6291_v44 = vrot.slane %v4784_v11, %v5005_v41 }
 0x1c5   :  { %2740 = vrot.lane.b32.xlu1 %v2700_v5, %s4836_s6  ;;  %2986 = vrot.lane.b32.xlu0 %v2953_v25, %s4835_s30  ;;  %v862_v20 = vsel %vm349_vm6, %v861_v43, %v6038_v32  ;;  %v857_v34 = vsel %vm353_vm8, %v856_v16, %v6085_v53  ;;  %v6261_v32 = vrot.slane %v1668_v59, %v5005_v41  ;;  %v4786_v53 = vld [vmem:[#allocation2 + $0x78] ss:$48 sps:$4 sm:$0xff]  }
 0x1c6   :  { %v8386_v23 = vcombine.high %v8384_v18, %v8385_v38  ;;  %v6274_v43 = vrot.slane %v1230_v14, %v5208_v61  ;;  %v6294_v27 = vrot.slane %v4786_v53, %v5005_v41  ;;  %v6297_v62 = vrot.slane %v4078_v33, %v5005_v41  ;;  %v8395_v38 = vld [vmem:[#allocation19_spill] sm:$0xff] }
 0x1c7   :  { %v842_v31 = vpop.permute.xlu1 %841  ;;  %v822_v24 = vpop.permute.xlu0 %821  ;;  %v6309_v59 = vrot.slane %v1411_v26, %v5208_v61  ;;  %v2420_v33 = vcombine.high %v6127_v30, %v6130_v55  ;;  %v8399_v30 = vld [vmem:[#allocation54_spill] sm:$0xff]  ;;  %v8400_v55 = vld [vmem:[#allocation52_spill] sm:$0xff] }
 0x1c8   :  { %v863_v51 = vsel %vm351_vm7, %v862_v20, %v842_v31  ;;  %v858_v45 = vsel %vm355_vm9, %v857_v34, %v822_v24  ;;  %v6271_v5 = vrot.slane %v8386_v23, %v5208_v61  ;;  %8387 = vst [vmem:[#allocation5_spill] sm:$0xff] %v6274_v43  ;;  %v1262_v17 = vcombine.high %v6274_v43, %v8336_v35  ;;  %v8396_v23 = vld [vmem:[#allocation20_spill] sm:$0xff] }
 0x1c9   :  { %3178 = vrot.lane.b32.xlu1 %v6246_v54, %s4832_s27  ;;  %866 = vst [vmem:[#allocation3 + $0x20] sm:$0xf] %v858_v45  ;;  %3210 = vrot.lane.b32.xlu0 %v3170_v36, %s4836_s6  ;;  %v864_v0 = vsel %vm353_vm8, %v863_v51, %v6060_v37  ;;  %v1700_v37 = vcombine.low %v6261_v32, %v6254_v21 }
 0x1ca   :  { %v2351_v20 = vcombine.low %v6291_v44, %v6294_v27  ;;  %v1881_v51 = vcombine.high %v6103_v48, %v6106_v46  ;;  %v2821_v34 = vcombine.low %v5825_v2, %v5835_v7  ;;  %v2837_v24 = vcombine.low %v5829_v60, %v5839_v56 }
 0x1cb   :  { %v850_v49 = vpop.permute.xlu1 %849  ;;  %v6279_v25 = vpop.permute.xlu0 %3999  ;;  %v6312_v14 = vrot.slane %v1700_v37, %v5208_v61  ;;  %v1511_v45 = vcombine.high %v6155_v22, %v8336_v35  ;;  %v1981_v22 = vcombine.high %v6194_v9, %v8336_v35  ;;  %v2683_v26 = vcombine.low %v8396_v23, %v8395_v38  ;;  %v8397_v9 = vld [vmem:[#allocation53_spill] sm:$0xff] }
 0x1cc   :  { %v865_v40 = vsel %vm355_vm9, %v864_v0, %v850_v49  ;;  %v4094_v3 = vcombine.high %v5912_v50, %v6279_v25  ;;  %v6338_v48 = vrot.slane %v2821_v34, %v5005_v41  ;;  %v6341_v2 = vrot.slane %v2837_v24, %v5005_v41 }
 0x1cd   :  { %867 = vst [vmem:[#allocation3 + $0x28] sm:$0xf] %v865_v40  ;;  %1033 = vrot.lane.b32.xlu1 %v6271_v5, %s4834_s29  ;;  %1065 = vrot.lane.b32.xlu0 %v1011_v52, %s4838_s8  ;;  %8389 = vst [vmem:[#allocation65_spill] sm:$0xff] %v6312_v14  ;;  %v1732_v53 = vcombine.high %v6312_v14, %v8336_v35  ;;  %v6346_v7 = vrot.slane %v1881_v51, %v5208_v61  ;;  %v8398_v40 = vld [vmem:[#allocation51_spill] sm:$0xff] }
 0x1ce   :  { %v6300_v63 = vrot.slane %v4094_v3, %v5005_v41  ;;  %v6349_v56 = vrot.slane %v2351_v20, %v5208_v61  ;;  %v2853_v49 = vcombine.low %v6338_v48, %v6341_v2  ;;  %v1130_v52 = vcombine.low %v8398_v40, %v8397_v9  ;;  %v8404_v9 = vld [vmem:[#allocation6_spill] sm:$0xff]  ;;  %v8407_v14 = vld [vmem:[#allocation23_spill] sm:$0xff] }
 0x1cf   :  { %v6302_v16 = vpop.permute.xlu1 %3515  ;;  %v6306_v57 = vpop.permute.xlu0 %3519  ;;  %v1146_v37 = vcombine.low %v8400_v55, %v8399_v30  ;;  %v2632_v51 = vcombine.high %v6212_v10, %v8336_v35  ;;  %v2922_v24 = vcombine.high %v6169_v58, %v6172_v6  ;;  %v4790_v30 = vld [vmem:[#allocation2 + $0x2] ss:$48 sps:$4 sm:$0xff]  }
 0x1d0   :  { %8388 = vst [vmem:[#allocation4_spill] sm:$0xff] %v6302_v16  ;;  %8392 = vst [vmem:[#allocation68_spill] sm:$0xff] %v6349_v56  ;;  %v2383_v18 = vcombine.high %v6349_v56, %v8336_v35  ;;  %v6385_v34 = vrot.slane %v2853_v49, %v5208_v61 }
 0x1d1   :  { %1295 = vrot.lane.b32.xlu1 %v1262_v17, %s4835_s30  ;;  %1519 = vrot.lane.b32.xlu0 %v6309_v59, %s4832_s27  ;;  %v6375_v17 = vrot.slane %v2420_v33, %v5208_v61  ;;  %v6398_v33 = vrot.slane %v2683_v26, %v5208_v61  ;;  %v8403_v26 = vld [vmem:[#allocation7_spill] sm:$0xff] }
 0x1d2   :  { %8402 = vst [vmem:[#allocation20_spill] sm:$0xff] %v6385_v34  ;;  %v2885_v58 = vcombine.high %v6385_v34, %v8336_v35  ;;  %v3153_v40 = vcombine.low %v8404_v9, %v8403_v26 }
 0x1d3   :  { %v6327_v36 = vpop.permute.xlu1 %3523  ;;  %v6331_v11 = vpop.permute.xlu0 %3527 }
 0x1d4   :  { %8390 = vst [vmem:[#allocation66_spill] sm:$0xff] %v6327_v36 }
 0x1d5   :  { %1551 = vrot.lane.b32.xlu1 %v1511_v45, %s4836_s6  ;;  %1765 = vrot.lane.b32.xlu0 %v1732_v53, %s4835_s30  ;;  %v6390_v45 = vrot.slane %v1130_v52, %v5005_v41  ;;  %v6393_v53 = vrot.slane %v1146_v37, %v5005_v41  ;;  %v4792_v52 = vld [vmem:[#allocation2 + $0x1a] ss:$48 sps:$4 sm:$0xff]   ;;  %v3102_v37 = vcombine.high %v6246_v54, %v8336_v35 }
 0x1d6   :  { %v6432_v34 = vrot.slane %v4792_v52, %v5005_v41  ;;  %v1231_v54 = vcombine.high %v6224_v28, %v6227_v42 }
 0x1d7   :  { %v6343_v60 = vpop.permute.xlu1 %3985  ;;  %v6351_v46 = vpop.permute.xlu0 %3989  ;;  %v1162_v6 = vcombine.low %v6390_v45, %v6393_v53 }
 0x1d8   :  { %8391 = vst [vmem:[#allocation67_spill] sm:$0xff] %v6343_v60  ;;  %8393 = vst [vmem:[#allocation69_spill] sm:$0xff] %v6351_v46  ;;  %v6459_v43 = vrot.slane %v1231_v54, %v5208_v61  ;;  %v1701_v54 = vcombine.high %v6261_v32, %v6254_v21  ;;  %v1913_v21 = vcombine.high %v6346_v7, %v8336_v35 }
 0x1d9   :  { %1989 = vrot.lane.b32.xlu1 %v6346_v7, %s4832_s27  ;;  %2021 = vrot.lane.b32.xlu0 %v1981_v22, %s4836_s6  ;;  %v6429_v31 = vrot.slane %v1162_v6, %v5208_v61  ;;  %v943_v6 = vcombine.high %v6271_v5, %v8336_v35  ;;  %v2352_v32 = vcombine.high %v6291_v44, %v6294_v27  ;;  %v8422_v7 = vld [vmem:[#allocation60_spill] sm:$0xff] }
 0x1db   :  { %v6362_v0 = vpop.permute.xlu1 %3993  ;;  %v6372_v3 = vpop.permute.xlu0 %3997  ;;  %8405 = vst [vmem:[#allocation53_spill] sm:$0xff] %v6429_v31  ;;  %v1194_v52 = vcombine.high %v6429_v31, %v8336_v35  ;;  %v1443_v31 = vcombine.high %v6309_v59, %v8336_v35  ;;  %v6515_v27 = vrot.slane %v2352_v32, %v5208_v61 }
 0x1dc   :  { %8394 = vst [vmem:[#allocation70_spill] sm:$0xff] %v6362_v0  ;;  %8401 = vst [vmem:[#allocation19_spill] sm:$0xff] %v6372_v3 }
 0x1dd   :  { %2456 = vrot.lane.b32.xlu1 %v2383_v18, %s4835_s30  ;;  %2488 = vrot.lane.b32.xlu0 %v6375_v17, %s4832_s27  ;;  %v6412_v18 = vrot.slane %v2922_v24, %v5208_v61  ;;  %v6426_v24 = vrot.slane %v3153_v40, %v5208_v61 }
 0x1df   :  { %v6380_v20 = vpop.permute.xlu1 %3269  ;;  %v6395_v22 = vpop.permute.xlu0 %3273 }
 0x1e1   :  { %2712 = vrot.lane.b32.xlu1 %v2632_v51, %s4836_s6  ;;  %2744 = vrot.lane.b32.xlu0 %v6398_v33, %s4833_s28 }
 0x1e3   :  { %v6403_v10 = vpop.permute.xlu1 %3277  ;;  %v6409_v49 = vpop.permute.xlu0 %3281 }
 0x1e5   :  { %2958 = vrot.lane.b32.xlu1 %v2885_v58, %s4835_s30  ;;  %2990 = vrot.lane.b32.xlu0 %v6412_v18, %s4832_s27  ;;  %v6438_v58 = vrot.slane %v4790_v30, %v5005_v41  ;;  %v8406_v30 = vld [vmem:[#allocation22_spill] sm:$0xff] }
 0x1e6   :  { %v1494_v28 = vcombine.low %v8407_v14, %v8406_v30 }
 0x1e7   :  { %v6419_v55 = vpop.permute.xlu1 %3267  ;;  %v6423_v51 = vpop.permute.xlu0 %3271 }
 0x1e9   :  { %3182 = vrot.lane.b32.xlu1 %v3102_v37, %s4836_s6  ;;  %3214 = vrot.lane.b32.xlu0 %v6426_v24, %s4833_s28  ;;  %v1632_v37 = vcombine.low %v6438_v58, %v6432_v34 }
 0x1eb   :  { %v6442_v56 = vpop.permute.xlu1 %3275  ;;  %v6446_v40 = vpop.permute.xlu0 %3279  ;;  %v6466_v19 = vrot.slane %v1632_v37, %v5208_v61  ;;  %v8413_v37 = vld [vmem:[#allocation28_spill] sm:$0xff] }
 0x1ed   :  { %1037 = vrot.lane.b32.xlu1 %v943_v6, %s4838_s8  ;;  %1267 = vrot.lane.b32.xlu0 %v1194_v52, %s4835_s30  ;;  %8410 = vst [vmem:[#allocation52_spill] sm:$0xff] %v6466_v19  ;;  %v6474_v52 = vrot.slane %v1494_v28, %v5208_v61  ;;  %v1664_v59 = vcombine.high %v6466_v19, %v8336_v35 }
 0x1ee   :  { %v6490_v28 = vrot.slane %v1701_v54, %v5208_v61  ;;  %v8418_v54 = vld [vmem:[#allocation32_spill] sm:$0xff] }
 0x1ef   :  { %v6456_v42 = vpop.permute.xlu1 %2080  ;;  %v6461_v5 = vpop.permute.xlu0 %2084  ;;  %v2615_v8 = vcombine.low %v8419_v47, %v8418_v54 }
 0x1f0   :  { %8408 = vst [vmem:[#allocation51_spill] sm:$0xff] %v6456_v42  ;;  %8409 = vst [vmem:[#allocation54_spill] sm:$0xff] %v6461_v5  ;;  %v8423_v5 = vld [vmem:[#allocation58_spill] sm:$0xff] }
 0x1f1   :  { %1299 = vrot.lane.b32.xlu1 %v6459_v43, %s4832_s27  ;;  %1523 = vrot.lane.b32.xlu0 %v1443_v31, %s4836_s6  ;;  %v8414_v31 = vld [vmem:[#allocation29_spill] sm:$0xff] }
 0x1f2   :  { %v1964_v13 = vcombine.low %v8414_v31, %v8413_v37 }
 0x1f3   :  { %v6471_v6 = vpop.permute.xlu1 %2088  ;;  %v6478_v29 = vpop.permute.xlu0 %2092 }
 0x1f4   :  { %8411 = vst [vmem:[#allocation7_spill] sm:$0xff] %v6471_v6  ;;  %8412 = vst [vmem:[#allocation6_spill] sm:$0xff] %v6478_v29  ;;  %v6504_v19 = vrot.slane %v1964_v13, %v5208_v61  ;;  %v3623_v29 = vcombine.low %v8423_v5, %v8422_v7  ;;  %v4093_v13 = vcombine.low %v5912_v50, %v6279_v25 }
 0x1f5   :  { %1555 = vrot.lane.b32.xlu1 %v6474_v52, %s4833_s28  ;;  %1737 = vrot.lane.b32.xlu0 %v1664_v59, %s4835_s30  ;;  %v4077_v50 = vcombine.low %v5909_v39, %v5923_v15  ;;  %v8429_v15 = vld [vmem:[#allocation9_spill] sm:$0xff] }
 0x1f6   :  { %v6533_v32 = vrot.slane %v3623_v29, %v5005_v41  ;;  %v6546_v25 = vrot.slane %v4093_v13, %v5005_v41  ;;  %v2701_v29 = vcombine.high %v6398_v33, %v8336_v35 }
 0x1f7   :  { %v6487_v4 = vpop.permute.xlu1 %2078  ;;  %v6492_v1 = vpop.permute.xlu0 %2082 }
 0x1f8   :  { %8415 = vst [vmem:[#allocation22_spill] sm:$0xff] %v6487_v4  ;;  %8416 = vst [vmem:[#allocation23_spill] sm:$0xff] %v6492_v1  ;;  %v8421_v1 = vld [vmem:[#allocation57_spill] sm:$0xff] }
 0x1f9   :  { %1769 = vrot.lane.b32.xlu1 %v6490_v28, %s4832_s27  ;;  %1993 = vrot.lane.b32.xlu0 %v1913_v21, %s4836_s6  ;;  %v3607_v4 = vcombine.low %v8421_v1, %v8420_v12  ;;  %v2452_v12 = vcombine.high %v6375_v17, %v8336_v35  ;;  %v2854_v1 = vcombine.high %v6338_v48, %v6341_v2  ;;  %v8430_v2 = vld [vmem:[#allocation8_spill] sm:$0xff] }
 0x1fa   :  { %v3085_v17 = vcombine.low %v8430_v2, %v8429_v15 }
 0x1fb   :  { %v6501_v59 = vpop.permute.xlu1 %2086  ;;  %v6512_v44 = vpop.permute.xlu0 %2090  ;;  %v6530_v5 = vrot.slane %v3607_v4, %v5005_v41  ;;  %v6557_v39 = vrot.slane %v2854_v1, %v5208_v61  ;;  %v2954_v1 = vcombine.high %v6412_v18, %v8336_v35 }
 0x1fc   :  { %8417 = vst [vmem:[#allocation28_spill] sm:$0xff] %v6501_v59  ;;  %8424 = vst [vmem:[#allocation29_spill] sm:$0xff] %v6512_v44  ;;  %v6538_v44 = vrot.slane %v2615_v8, %v5208_v61 }
 0x1fd   :  { %2025 = vrot.lane.b32.xlu1 %v6504_v19, %s4833_s28  ;;  %2460 = vrot.lane.b32.xlu0 %v6515_v27, %s4832_s27  ;;  %v3639_v8 = vcombine.low %v6530_v5, %v6533_v32 }
 0x1ff   :  { %v6523_v21 = vpop.permute.xlu1 %4241  ;;  %v6535_v7 = vpop.permute.xlu0 %4245 }
 0x200   :  { %8425 = vst [vmem:[#allocation32_spill] sm:$0xff] %v6523_v21  ;;  %8426 = vst [vmem:[#allocation33_spill] sm:$0xff] %v6535_v7 }
 0x201   :  { %2492 = vrot.lane.b32.xlu1 %v2452_v12, %s4836_s6  ;;  %2716 = vrot.lane.b32.xlu0 %v6538_v44, %s4833_s28  ;;  %v6562_v12 = vrot.slane %v4077_v50, %v5005_v41  ;;  %v6579_v50 = vrot.slane %v3639_v8, %v5208_v61 }
 0x203   :  { %v6548_v4 = vpop.permute.xlu1 %4249  ;;  %v6554_v48 = vpop.permute.xlu0 %4253  ;;  %v4109_v33 = vcombine.low %v6562_v12, %v6546_v25  ;;  %8433 = vst [vmem:[#allocation9_spill] sm:$0xff] %v6579_v50  ;;  %v3671_v8 = vcombine.high %v6579_v50, %v8336_v35  ;;  %v1633_v50 = vcombine.high %v6438_v58, %v6432_v34  ;;  %v1733_v58 = vcombine.high %v6490_v28, %v8336_v35 }
 0x204   :  { %8427 = vst [vmem:[#allocation59_spill] sm:$0xff] %v6548_v4  ;;  %8428 = vst [vmem:[#allocation57_spill] sm:$0xff] %v6554_v48  ;;  %v6576_v48 = vrot.slane %v3085_v17, %v5208_v61  ;;  %v1163_v17 = vcombine.high %v6390_v45, %v6393_v53  ;;  %v3539_v28 = vcombine.low %v6302_v16, %v6327_v36 }
 0x205   :  { %2748 = vrot.lane.b32.xlu1 %v2701_v29, %s4837_s7  ;;  %2962 = vrot.lane.b32.xlu0 %v6557_v39, %s4832_s27  ;;  %v6589_v18 = vrot.slane %v4109_v33, %v5208_v61  ;;  %v8438_v33 = vld [vmem:[#allocation41_spill] sm:$0xff]  ;;  %v2633_v16 = vcombine.high %v6538_v44, %v8336_v35 }
 0x206   :  { %v6608_v45 = vrot.slane %v1163_v17, %v5208_v61  ;;  %v6677_v36 = vrot.slane %v3539_v28, %v5005_v41  ;;  %v8451_v44 = vld [vmem:[#allocation45_spill] sm:$0xff] }
 0x207   :  { %v6569_v13 = vpop.permute.xlu1 %4239  ;;  %v6573_v7 = vpop.permute.xlu0 %4243  ;;  %8435 = vst [vmem:[#allocation71_spill] sm:$0xff] %v6589_v18 }
 0x208   :  { %8431 = vst [vmem:[#allocation60_spill] sm:$0xff] %v6569_v13  ;;  %8432 = vst [vmem:[#allocation58_spill] sm:$0xff] %v6573_v7  ;;  %v3171_v13 = vcombine.high %v6426_v24, %v8336_v35  ;;  %v4141_v24 = vcombine.high %v6589_v18, %v8336_v35 }
 0x209   :  { %2994 = vrot.lane.b32.xlu1 %v2954_v1, %s4836_s6  ;;  %3186 = vrot.lane.b32.xlu0 %v6576_v48, %s4833_s28 }
 0x20b   :  { %v6584_v29 = vpop.permute.xlu1 %4247  ;;  %v6593_v7 = vpop.permute.xlu0 %4251 }
 0x20c   :  { %8434 = vst [vmem:[#allocation8_spill] sm:$0xff] %v6584_v29  ;;  %8436 = vst [vmem:[#allocation72_spill] sm:$0xff] %v6593_v7  ;;  %v8437_v29 = vld [vmem:[#allocation42_spill] sm:$0xff]  ;;  %v8440_v7 = vld [vmem:[#allocation44_spill] sm:$0xff] }
 0x20d   :  { %3218 = vrot.lane.b32.xlu1 %v3171_v13, %s4837_s7  ;;  %3704 = vrot.lane.b32.xlu0 %v3671_v8, %s4835_s30  ;;  %v1426_v21 = vcombine.low %v8438_v33, %v8437_v29  ;;  %v1263_v13 = vcombine.high %v6459_v43, %v8336_v35  ;;  %v8441_v43 = vld [vmem:[#allocation43_spill] sm:$0xff] }
 0x20e   :  { %v1896_v59 = vcombine.low %v8441_v43, %v8440_v7 }
 0x20f   :  { %v6599_v1 = vpop.permute.xlu1 %1041  ;;  %v6605_v4 = vpop.permute.xlu0 %1045  ;;  %v6620_v18 = vrot.slane %v1426_v21, %v5208_v61  ;;  %v6636_v21 = vrot.slane %v1633_v50, %v5208_v61 }
 0x211   :  { %4174 = vrot.lane.b32.xlu1 %v4141_v24, %s4835_s30  ;;  %1271 = vrot.lane.b32.xlu0 %v6608_v45, %s4832_s27  ;;  %v1512_v24 = vcombine.high %v6474_v52, %v8336_v35  ;;  %v6648_v52 = vrot.slane %v1896_v59, %v5208_v61  ;;  %v3555_v59 = vcombine.low %v6306_v57, %v6331_v11 }
 0x213   :  { %v6613_v53 = vpop.permute.xlu1 %1049  ;;  %v6617_v8 = vpop.permute.xlu0 %1053 }
 0x215   :  { %1303 = vrot.lane.b32.xlu1 %v1263_v13, %s4836_s6  ;;  %1527 = vrot.lane.b32.xlu0 %v6620_v18, %s4833_s28 }
 0x217   :  { %v6627_v17 = vpop.permute.xlu1 %2732  ;;  %v6633_v42 = vpop.permute.xlu0 %3202 }
 0x218   :  { %8439 = vst [vmem:[#allocation42_spill] sm:$0xff] %v6627_v17  ;;  %8442 = vst [vmem:[#allocation41_spill] sm:$0xff] %v6633_v42  ;;  %v8445_v42 = vld [vmem:[#allocation11_spill] sm:$0xff]  ;;  %v8446_v17 = vld [vmem:[#allocation10_spill] sm:$0xff] }
 0x219   :  { %1559 = vrot.lane.b32.xlu1 %v1512_v24, %s4837_s7  ;;  %1741 = vrot.lane.b32.xlu0 %v6636_v21, %s4832_s27  ;;  %v1982_v24 = vcombine.high %v6504_v19, %v8336_v35  ;;  %v2435_v6 = vcombine.low %v8446_v17, %v8445_v42 }
 0x21b   :  { %v6641_v34 = vpop.permute.xlu1 %1057  ;;  %v6645_v13 = vpop.permute.xlu0 %1543  ;;  %v6672_v19 = vrot.slane %v2435_v6, %v5208_v61  ;;  %v8450_v6 = vld [vmem:[#allocation46_spill] sm:$0xff] }
 0x21c   :  { %8443 = vst [vmem:[#allocation44_spill] sm:$0xff] %v6645_v13  ;;  %v2937_v28 = vcombine.low %v8451_v44, %v8450_v6 }
 0x21d   :  { %1773 = vrot.lane.b32.xlu1 %v1733_v58, %s4836_s6  ;;  %1997 = vrot.lane.b32.xlu0 %v6648_v52, %s4833_s28  ;;  %v2384_v58 = vcombine.high %v6515_v27, %v8336_v35  ;;  %v4009_v27 = vcombine.low %v6343_v60, %v6362_v0  ;;  %v2886_v0 = vcombine.high %v6557_v39, %v8336_v35 }
 0x21f   :  { %v6653_v50 = vpop.permute.xlu1 %2013  ;;  %v6663_v13 = vpop.permute.xlu0 %2704 }
 0x220   :  { %8444 = vst [vmem:[#allocation43_spill] sm:$0xff] %v6653_v50  ;;  %8447 = vst [vmem:[#allocation11_spill] sm:$0xff] %v6663_v13  ;;  %v6680_v13 = vrot.slane %v3555_v59, %v5005_v41  ;;  %v8453_v59 = vcombine.high %v8396_v23, %v8395_v38  ;;  %v6717_v23 = vrot.slane %v2937_v28, %v5208_v61 }
 0x221   :  { %2029 = vrot.lane.b32.xlu1 %v1982_v24, %s4837_s7  ;;  %2464 = vrot.lane.b32.xlu0 %v2384_v58, %s4836_s6  ;;  %v4025_v24 = vcombine.low %v6351_v46, %v6372_v3 }
 0x222   :  { %v6699_v60 = vrot.slane %v8453_v59, %v5208_v61  ;;  %v3571_v46 = vcombine.low %v6677_v36, %v6680_v13 }
 0x223   :  { %v6669_v50 = vpop.permute.xlu1 %2736  ;;  %v6686_v58 = vpop.permute.xlu0 %3174  ;;  %v6707_v3 = vrot.slane %v4025_v24, %v5005_v41  ;;  %v3103_v24 = vcombine.high %v6576_v48, %v8336_v35 }
 0x224   :  { %8448 = vst [vmem:[#allocation10_spill] sm:$0xff] %v6669_v50  ;;  %8449 = vst [vmem:[#allocation73_spill] sm:$0xff] %v6686_v58  ;;  %v6704_v58 = vrot.slane %v4009_v27, %v5005_v41  ;;  %v6726_v39 = vrot.slane %v3571_v46, %v5208_v61 }
 0x225   :  { %2496 = vrot.lane.b32.xlu1 %v6672_v19, %s4833_s28  ;;  %2720 = vrot.lane.b32.xlu0 %v2633_v16, %s4837_s7 }
 0x226   :  { %v4041_v27 = vcombine.low %v6704_v58, %v6707_v3  ;;  %8456 = vst [vmem:[#allocation75_spill] sm:$0xff] %v6726_v39  ;;  %v3603_v46 = vcombine.high %v6726_v39, %v8336_v35 }
 0x227   :  { %v6693_v50 = vpop.permute.xlu1 %3206  ;;  %v1062_v16 = vpop.permute.xlu0 %1061 }
 0x228   :  { %8452 = vst [vmem:[#allocation46_spill] sm:$0xff] %v6693_v50  ;;  %v6746_v50 = vrot.slane %v4041_v27, %v5208_v61  ;;  %v8463_v27 = vld [vmem:[#allocation48_spill] sm:$0xff] }
 0x229   :  { %2752 = vrot.lane.b32.xlu1 %v6699_v60, %s4834_s29  ;;  %2966 = vrot.lane.b32.xlu0 %v2886_v0, %s4836_s6  ;;  %v3640_v0 = vcombine.high %v6530_v5, %v6533_v32  ;;  %v4110_v5 = vcombine.high %v6562_v12, %v6546_v25  ;;  %v8465_v25 = vld [vmem:[#allocation63_spill] sm:$0xff] }
 0x22a   :  { %8460 = vst [vmem:[#allocation78_spill] sm:$0xff] %v6746_v50  ;;  %v1075_v12 = vsel %vm343_vm3, %v8465_v25, %v6599_v1 }
 0x22b   :  { %v6714_v38 = vpop.permute.xlu1 %1515  ;;  %v6721_v59 = vpop.permute.xlu0 %1547 }
 0x22c   :  { %8454 = vst [vmem:[#allocation45_spill] sm:$0xff] %v6714_v38  ;;  %8455 = vst [vmem:[#allocation74_spill] sm:$0xff] %v6721_v59  ;;  %v8458_v38 = vcombine.high %v8404_v9, %v8403_v26  ;;  %v6756_v26 = vrot.slane %v3640_v0, %v5208_v61  ;;  %v6773_v0 = vrot.slane %v4110_v5, %v5208_v61 }
 0x22d   :  { %2998 = vrot.lane.b32.xlu1 %v6717_v23, %s4833_s28  ;;  %3190 = vrot.lane.b32.xlu0 %v3103_v24, %s4837_s7  ;;  %v8464_v24 = vld [vmem:[#allocation47_spill] sm:$0xff] }
 0x22e   :  { %v6739_v59 = vrot.slane %v8458_v38, %v5208_v61  ;;  %v4073_v38 = vcombine.high %v6746_v50, %v8336_v35  ;;  %v1195_v50 = vcombine.high %v6608_v45, %v8336_v35  ;;  %v1444_v45 = vcombine.high %v6620_v18, %v8336_v35  ;;  %v8470_v18 = vld [vmem:[#allocation12_spill] sm:$0xff] }
 0x22f   :  { %v6733_v28 = vpop.permute.xlu1 %1985  ;;  %v6741_v48 = vpop.permute.xlu0 %2017 }
 0x230   :  { %8457 = vst [vmem:[#allocation76_spill] sm:$0xff] %v6733_v28  ;;  %8459 = vst [vmem:[#allocation77_spill] sm:$0xff] %v6741_v48 }
 0x231   :  { %3222 = vrot.lane.b32.xlu1 %v6739_v59, %s4834_s29  ;;  %3676 = vrot.lane.b32.xlu0 %v3603_v46, %s4835_s30  ;;  %v1246_v46 = vcombine.low %v8464_v24, %v8463_v27 }
 0x233   :  { %v6753_v32 = vpop.permute.xlu1 %2484  ;;  %v6758_v9 = vpop.permute.xlu0 %2708  ;;  %v6789_v5 = vrot.slane %v1246_v46, %v5208_v61  ;;  %v8469_v46 = vcombine.high %v8407_v14, %v8406_v30 }
 0x234   :  { %8461 = vst [vmem:[#allocation79_spill] sm:$0xff] %v6753_v32  ;;  %8462 = vst [vmem:[#allocation80_spill] sm:$0xff] %v6758_v9 }
 0x235   :  { %3708 = vrot.lane.b32.xlu1 %v6756_v26, %s4832_s27  ;;  %4146 = vrot.lane.b32.xlu0 %v4073_v38, %s4835_s30  ;;  %v1076_v38 = vsel %vm345_vm4, %v1075_v12, %v6605_v4  ;;  %v6808_v12 = vrot.slane %v8469_v46, %v5208_v61  ;;  %v3359_v46 = vcombine.low %v6380_v20, %v6403_v10 }
 0x236   :  { %v1077_v1 = vsel %vm347_vm5, %v1076_v38, %v6613_v53  ;;  %v8471_v38 = vld [vmem:[#allocation15_spill] sm:$0xff] }
 0x237   :  { %v6770_v39 = vpop.permute.xlu1 %2740  ;;  %v6775_v32 = vpop.permute.xlu0 %2986  ;;  %v1078_v4 = vsel %vm349_vm6, %v1077_v1, %v6617_v8  ;;  %v1716_v28 = vcombine.low %v8471_v38, %v8470_v18  ;;  %v1665_v8 = vcombine.high %v6636_v21, %v8336_v35  ;;  %v8474_v21 = vld [vmem:[#allocation14_spill] sm:$0xff]  ;;  %v6867_v48 = vrot.slane %v3359_v46, %v5005_v41 }
 0x238   :  { %8466 = vst [vmem:[#allocation48_spill] sm:$0xff] %v6775_v32  ;;  %v1079_v53 = vsel %vm351_vm7, %v1078_v4, %v6641_v34  ;;  %v8475_v4 = vld [vmem:[#allocation13_spill] sm:$0xff]  ;;  %v4804_v46 = vld [vmem:[#allocation2 + $0x82] ss:$48 sps:$4 sm:$0xff]  }
 0x239   :  { %4178 = vrot.lane.b32.xlu1 %v6773_v0, %s4832_s27  ;;  %1275 = vrot.lane.b32.xlu0 %v1195_v50, %s4836_s6  ;;  %v6822_v30 = vrot.slane %v1716_v28, %v5208_v61  ;;  %v8477_v28 = vcombine.high %v8414_v31, %v8413_v37  ;;  %v2453_v31 = vcombine.high %v6672_v19, %v8336_v35 }
 0x23b   :  { %v6786_v25 = vpop.permute.xlu1 %3178  ;;  %v6791_v32 = vpop.permute.xlu0 %3210 }
 0x23c   :  { %8467 = vst [vmem:[#allocation47_spill] sm:$0xff] %v6786_v25  ;;  %8468 = vst [vmem:[#allocation63_spill] sm:$0xff] %v6791_v32  ;;  %v1080_v25 = vsel %vm353_vm8, %v1079_v53, %v1062_v16  ;;  %v1914_v16 = vcombine.high %v6648_v52, %v8336_v35  ;;  %v6839_v53 = vrot.slane %v8477_v28, %v5208_v61  ;;  %v4473_v28 = vld [vmem:[#allocation3 + $0x8] sm:$0xff] }
 0x23d   :  { %1307 = vrot.lane.b32.xlu1 %v6789_v5, %s4833_s28  ;;  %1531 = vrot.lane.b32.xlu0 %v1444_v45, %s4837_s7  ;;  %v3375_v52 = vcombine.low %v6395_v22, %v6409_v49 }
 0x23f   :  { %v6802_v50 = vpop.permute.xlu1 %1033  ;;  %v1066_v9 = vpop.permute.xlu0 %1065 }
 0x240   :  { %v1081_v1 = vsel %vm355_vm9, %v1080_v25, %v1066_v9  ;;  %v2367_v9 = vcombine.low %v8475_v4, %v8474_v21 }
 0x241   :  { %1563 = vrot.lane.b32.xlu1 %v6808_v12, %s4834_s29  ;;  %v1085_v34 = vrot.slane %v1081_v1, 4  ;;  %1745 = vrot.lane.b32.xlu0 %v1665_v8, %s4836_s6 }
 0x242   :  { %v6848_v1 = vrot.slane %v2367_v9, %v5208_v61 }
 0x243   :  { %v6819_v14 = vpop.permute.xlu1 %1295  ;;  %1089 = vst [vmem:[#allocation3 + $0x28] sm:$0xf0] %v1085_v34  ;;  %v6824_v45 = vpop.permute.xlu0 %1519  ;;  %v8480_v34 = vcombine.high %v8419_v47, %v8418_v54  ;;  %v2702_v54 = vcombine.high %v6699_v60, %v8336_v35  ;;  %v2955_v60 = vcombine.high %v6717_v23, %v8336_v35  ;;  %v8489_v23 = vld [vmem:[#allocation38_spill] sm:$0xff] }
 0x244   :  { %8472 = vst [vmem:[#allocation12_spill] sm:$0xff] %v6819_v14  ;;  %8473 = vst [vmem:[#allocation15_spill] sm:$0xff] %v6824_v45  ;;  %v8482_v14 = vld [vmem:[#allocation49_spill] sm:$0xff] }
 0x245   :  { %1777 = vrot.lane.b32.xlu1 %v6822_v30, %s4833_s28  ;;  %2001 = vrot.lane.b32.xlu0 %v1914_v16, %s4837_s7  ;;  %v6862_v16 = vrot.slane %v8480_v34, %v5208_v61  ;;  %v4802_v34 = vld [vmem:[#allocation2 + $0x6a] ss:$48 sps:$4 sm:$0xff]  }
 0x247   :  { %v6833_v25 = vpop.permute.xlu1 %1551  ;;  %v6845_v8 = vpop.permute.xlu0 %1765 }
 0x248   :  { %8476 = vst [vmem:[#allocation14_spill] sm:$0xff] %v6833_v25  ;;  %8478 = vst [vmem:[#allocation13_spill] sm:$0xff] %v6845_v8  ;;  %v8481_v8 = vld [vmem:[#allocation50_spill] sm:$0xff]  ;;  %v6870_v25 = vrot.slane %v3375_v52, %v5005_v41 }
 0x249   :  { %2033 = vrot.lane.b32.xlu1 %v6839_v53, %s4834_s29  ;;  %2468 = vrot.lane.b32.xlu0 %v6848_v1, %s4833_s28  ;;  %v2869_v45 = vcombine.low %v8482_v14, %v8481_v8 }
 0x24a   :  { %v4477_v9 = vld [vmem:[#allocation3 + $0x28] sm:$0xff]  ;;  %v3391_v52 = vcombine.low %v6867_v48, %v6870_v25 }
 0x24b   :  { %v6854_v37 = vpop.permute.xlu1 %1989  ;;  %v4732_v19 = vpack.c.bf16 %v4477_v9, %v4473_v28  ;;  %v6886_v28 = vrot.slane %v2869_v45, %v5208_v61  ;;  %v6896_v9 = vrot.slane %v4802_v34, %v5005_v41  ;;  %v8487_v45 = vcombine.high %v8430_v2, %v8429_v15 }
 0x24c   :  { %8479 = vst [vmem:[#allocation81_spill] sm:$0xff] %v6854_v37  ;;  %v6872_v37 = vpop.permute.xlu0 %2021  ;;  %v3172_v15 = vcombine.high %v6739_v59, %v8336_v35 }
 0x24d   :  { %8483 = vst [vmem:[#allocation50_spill] sm:$0xff] %v6872_v37  ;;  %2500 = vrot.lane.b32.xlu1 %v2453_v31, %s4837_s7  ;;  %2724 = vrot.lane.b32.xlu0 %v6862_v16, %s4834_s29 }
 0x24e   :  { %4733 = vmatprep.subr.bf16.mxu0 %v4732_v19  ;;  %v6899_v19 = vrot.slane %v4804_v46, %v5005_v41  ;;  %v3572_v46 = vcombine.high %v6677_v36, %v6680_v13 }
 0x24f   :  { %v6877_v47 = vpop.permute.xlu1 %2456 }
 0x250   :  { %8484 = vst [vmem:[#allocation49_spill] sm:$0xff] %v6877_v47  ;;  %v6883_v32 = vpop.permute.xlu0 %2488  ;;  %v3861_v2 = vcombine.low %v6896_v9, %v6899_v19  ;;  %v6939_v59 = vrot.slane %v3572_v46, %v5208_v61 }
 0x251   :  { %8485 = vst [vmem:[#allocation82_spill] sm:$0xff] %v6883_v32  ;;  %2756 = vrot.lane.b32.xlu1 %v2702_v54, %s4838_s8  ;;  %2970 = vrot.lane.b32.xlu0 %v6886_v28, %s4833_s28  ;;  %v6907_v54 = vrot.slane %v8487_v45, %v5208_v61  ;;  %v6910_v32 = vrot.slane %v3391_v52, %v5208_v61 }
 0x253   :  { %v6891_v31 = vpop.permute.xlu1 %2712  ;;  %8488 = vst [vmem:[#allocation84_spill] sm:$0xff] %v6910_v32 }
 0x254   :  { %8486 = vst [vmem:[#allocation83_spill] sm:$0xff] %v6891_v31  ;;  %v6901_v47 = vpop.permute.xlu0 %2744  ;;  %v8490_v31 = vld [vmem:[#allocation18_spill] sm:$0xff] }
 0x255   :  { %3002 = vrot.lane.b32.xlu1 %v2955_v60, %s4837_s7  ;;  %v1068_v34 = vsel %vm343_vm3, %v8490_v31, %v8489_v23  ;;  %3194 = vrot.lane.b32.xlu0 %v6907_v54, %s4834_s29  ;;  %v3423_v60 = vcombine.high %v6910_v32, %v8336_v35  ;;  %v8493_v31 = vld [vmem:[#allocation36_spill] sm:$0xff]  ;;  %v8494_v23 = vld [vmem:[#allocation39_spill] sm:$0xff]  ;;  %v4042_v32 = vcombine.high %v6704_v58, %v6707_v3 }
 0x256   :  { %v1069_v45 = vsel %vm345_vm4, %v1068_v34, %v8493_v31  ;;  %v3672_v34 = vcombine.high %v6756_v26, %v8336_v35  ;;  %v8500_v26 = vld [vmem:[#allocation55_spill] sm:$0xff] }
 0x257   :  { %v6920_v37 = vpop.permute.xlu1 %2958  ;;  %v1070_v36 = vsel %vm347_vm5, %v1069_v45, %v8494_v23  ;;  %v8499_v45 = vld [vmem:[#allocation56_spill] sm:$0xff] }
 0x258   :  { %8491 = vst [vmem:[#allocation38_spill] sm:$0xff] %v6920_v37  ;;  %v6926_v52 = vpop.permute.xlu0 %2990  ;;  %v6942_v37 = vrot.slane %v3861_v2, %v5208_v61  ;;  %v1178_v23 = vcombine.low %v8500_v26, %v8499_v45 }
 0x259   :  { %8492 = vst [vmem:[#allocation18_spill] sm:$0xff] %v6926_v52  ;;  %3226 = vrot.lane.b32.xlu1 %v3172_v15, %s4838_s8  ;;  %3456 = vrot.lane.b32.xlu0 %v3423_v60, %s4835_s30  ;;  %v8497_v15 = vld [vmem:[#allocation37_spill] sm:$0xff]  ;;  %v8498_v60 = vld [vmem:[#allocation40_spill] sm:$0xff] }
 0x25a   :  { %8496 = vst [vmem:[#allocation39_spill] sm:$0xff] %v6942_v37  ;;  %v1071_v31 = vsel %vm349_vm6, %v1070_v36, %v8497_v15  ;;  %v3893_v58 = vcombine.high %v6942_v37, %v8336_v35 }
 0x25b   :  { %v6936_v13 = vpop.permute.xlu1 %3182  ;;  %v1072_v46 = vsel %vm351_vm7, %v1071_v31, %v8498_v60 }
 0x25c   :  { %8495 = vst [vmem:[#allocation36_spill] sm:$0xff] %v6936_v13  ;;  %v6946_v52 = vpop.permute.xlu0 %3214  ;;  %v1073_v2 = vsel %vm353_vm8, %v1072_v46, %v6802_v50  ;;  %v6967_v13 = vrot.slane %v4042_v32, %v5208_v61  ;;  %v6979_v46 = vrot.slane %v1178_v23, %v5208_v61  ;;  %v8505_v23 = vld [vmem:[#allocation16_spill] sm:$0xff] }
 0x25d   :  { %3680 = vrot.lane.b32.xlu1 %v6939_v59, %s4832_s27  ;;  %3712 = vrot.lane.b32.xlu0 %v3672_v34, %s4836_s6  ;;  %v4142_v34 = vcombine.high %v6773_v0, %v8336_v35  ;;  %v8504_v0 = vcombine.high %v8438_v33, %v8437_v29 }
 0x25f   :  { %v1038_v3 = vpop.permute.xlu1 %1037 }
 0x260   :  { %v1074_v36 = vsel %vm355_vm9, %v1073_v2, %v1038_v3  ;;  %v6964_v15 = vpop.permute.xlu0 %1267  ;;  %v1264_v2 = vcombine.high %v6789_v5, %v8336_v35  ;;  %v1513_v5 = vcombine.high %v6808_v12, %v8336_v35  ;;  %v3291_v12 = vcombine.low %v6419_v55, %v6442_v56 }
 0x261   :  { %8501 = vst [vmem:[#allocation37_spill] sm:$0xff] %v6964_v15  ;;  %v1084_v31 = vrot.slane %v1074_v36, 4  ;;  %3926 = vrot.lane.b32.xlu1 %v3893_v58, %s4835_s30  ;;  %4150 = vrot.lane.b32.xlu0 %v6967_v13, %s4832_s27  ;;  %v6994_v58 = vrot.slane %v8504_v0, %v5208_v61  ;;  %v8506_v36 = vld [vmem:[#allocation17_spill] sm:$0xff] }
 0x263   :  { %1088 = vst [vmem:[#allocation3 + $0x20] sm:$0xf0] %v1084_v31  ;;  %v6972_v50 = vpop.permute.xlu1 %1299  ;;  %v1648_v31 = vcombine.low %v8506_v36, %v8505_v23 }
 0x264   :  { %8502 = vst [vmem:[#allocation40_spill] sm:$0xff] %v6972_v50  ;;  %v6976_v60 = vpop.permute.xlu0 %1523 }
 0x265   :  { %4182 = vrot.lane.b32.xlu1 %v4142_v34, %s4836_s6  ;;  %1279 = vrot.lane.b32.xlu0 %v6979_v46, %s4833_s28  ;;  %v4472_v34 = vld [vmem:[#allocation3] sm:$0xff]  ;;  %v7008_v29 = vrot.slane %v1648_v31, %v5208_v61 }
 0x267   :  { %v6984_v32 = vpop.permute.xlu1 %1555 }
 0x268   :  { %v6988_v3 = vpop.permute.xlu0 %1737 }
 0x269   :  { %8503 = vst [vmem:[#allocation56_spill] sm:$0xff] %v6988_v3  ;;  %1311 = vrot.lane.b32.xlu1 %v1264_v2, %s4837_s7  ;;  %1535 = vrot.lane.b32.xlu0 %v6994_v58, %s4834_s29  ;;  %v1734_v2 = vcombine.high %v6822_v30, %v8336_v35 }
 0x26a   :  { %v4476_v15 = vld [vmem:[#allocation3 + $0x20] sm:$0xff] }
 0x26b   :  { %v7001_v50 = vpop.permute.xlu1 %1769  ;;  %v4734_v3 = vpack.c.bf16 %v4476_v15, %v4472_v34  ;;  %v3307_v15 = vcombine.low %v6423_v51, %v6446_v40  ;;  %v1983_v34 = vcombine.high %v6839_v53, %v8336_v35  ;;  %v8512_v53 = vcombine.high %v8446_v17, %v8445_v42 }
 0x26c   :  { %8507 = vst [vmem:[#allocation55_spill] sm:$0xff] %v7001_v50  ;;  %v7005_v37 = vpop.permute.xlu0 %1993  ;;  %v2887_v42 = vcombine.high %v6886_v28, %v8336_v35  ;;  %v3392_v28 = vcombine.high %v6867_v48, %v6870_v25 }
 0x26d   :  { %8508 = vst [vmem:[#allocation16_spill] sm:$0xff] %v7005_v37  ;;  %1567 = vrot.lane.b32.xlu1 %v1513_v5, %s4838_s8  ;;  %4735 = vmatpush1.bf16.msra.mxu0 %v4734_v3  ;;  %v8510_v3 = vcombine.high %v8441_v43, %v8440_v7  ;;  %v7037_v5 = vrot.slane %v3291_v12, %v5005_v41 }
 0x26e   :  { %1749 = vrot.lane.b32.xlu0 %v7008_v29, %s4833_s28  ;;  %v2385_v7 = vcombine.high %v6848_v1, %v8336_v35  ;;  %v2634_v1 = vcombine.high %v6862_v16, %v8336_v35  ;;  %v3360_v37 = vcombine.high %v6380_v20, %v6403_v10 }
 0x26f   :  { %v7013_v33 = vpop.permute.xlu1 %2025  ;;  %v7027_v31 = vrot.slane %v8510_v3, %v5208_v61  ;;  %v4808_v3 = vld [vmem:[#allocation2 + $0x62] ss:$48 sps:$4 sm:$0xff]  }
 0x270   :  { %v7021_v0 = vpop.permute.xlu0 %2460  ;;  %v7350_v10 = vrot.slane %v3360_v37, %v5005_v41 }
 0x271   :  { %8509 = vst [vmem:[#allocation17_spill] sm:$0xff] %v7021_v0  ;;  %1781 = vrot.lane.b32.xlu1 %v1734_v2, %s4837_s7  ;;  %v7040_v0 = vrot.slane %v3307_v15, %v5005_v41  ;;  %v7054_v2 = vrot.slane %v8512_v53, %v5208_v61  ;;  %v8515_v53 = vcombine.high %v8451_v44, %v8450_v6 }
 0x272   :  { %2005 = vrot.lane.b32.xlu0 %v7027_v31, %s4834_s29  ;;  %v3104_v44 = vcombine.high %v6907_v54, %v8336_v35 }
 0x273   :  { %v7032_v30 = vpop.permute.xlu1 %2492  ;;  %v3323_v12 = vcombine.low %v7037_v5, %v7040_v0 }
 0x274   :  { %8511 = vst [vmem:[#allocation85_spill] sm:$0xff] %v7032_v30  ;;  %v7042_v50 = vpop.permute.xlu0 %2716  ;;  %v7081_v30 = vrot.slane %v4808_v3, %v5005_v41 }
 0x275   :  { %2037 = vrot.lane.b32.xlu1 %v1983_v34, %s4838_s8  ;;  %v4810_v34 = vld [vmem:[#allocation2 + $0x7a] ss:$48 sps:$4 sm:$0xff]   ;;  %v7078_v16 = vrot.slane %v3323_v12, %v5208_v61 }
 0x276   :  { %2472 = vrot.lane.b32.xlu0 %v2385_v7, %s4837_s7 }
 0x277   :  { %v7048_v43 = vpop.permute.xlu1 %2748  ;;  %8516 = vst [vmem:[#allocation88_spill] sm:$0xff] %v7078_v16  ;;  %v3355_v3 = vcombine.high %v7078_v16, %v8336_v35 }
 0x278   :  { %v7058_v15 = vpop.permute.xlu0 %2962 }
 0x279   :  { %8513 = vst [vmem:[#allocation86_spill] sm:$0xff] %v7058_v15  ;;  %2504 = vrot.lane.b32.xlu1 %v7054_v2, %s4834_s29  ;;  %v7075_v15 = vrot.slane %v8515_v53, %v5208_v61  ;;  %v8519_v53 = vld [vmem:[#allocation61_spill] sm:$0xff] }
 0x27a   :  { %2728 = vrot.lane.b32.xlu0 %v2634_v1, %s4838_s8  ;;  %v7084_v1 = vrot.slane %v4810_v34, %v5005_v41 }
 0x27b   :  { %v7065_v7 = vpop.permute.xlu1 %2994 }
 0x27c   :  { %8514 = vst [vmem:[#allocation87_spill] sm:$0xff] %v7065_v7  ;;  %v7069_v17 = vpop.permute.xlu0 %3186  ;;  %v3793_v34 = vcombine.low %v7081_v30, %v7084_v1  ;;  %v7108_v7 = vrot.slane %v3392_v28, %v5208_v61  ;;  %v3862_v28 = vcombine.high %v6896_v9, %v6899_v19  ;;  %v4074_v9 = vcombine.high %v6967_v13, %v8336_v35 }
 0x27d   :  { %2974 = vrot.lane.b32.xlu1 %v2887_v42, %s4837_s7  ;;  %v8518_v42 = vld [vmem:[#allocation62_spill] sm:$0xff] }
 0x27e   :  { %3006 = vrot.lane.b32.xlu0 %v7075_v15, %s4834_s29  ;;  %v3655_v48 = vcombine.low %v8519_v53, %v8518_v42  ;;  %v7115_v16 = vrot.slane %v3793_v34, %v5208_v61 }
 0x27f   :  { %v7091_v6 = vpop.permute.xlu1 %3218 }
 0x280   :  { %v7095_v12 = vpop.permute.xlu0 %3704  ;;  %8522 = vst [vmem:[#allocation90_spill] sm:$0xff] %v7115_v16 }
 0x281   :  { %8517 = vst [vmem:[#allocation89_spill] sm:$0xff] %v7095_v12  ;;  %3198 = vrot.lane.b32.xlu1 %v3104_v44, %s4838_s8  ;;  %v3604_v12 = vcombine.high %v6939_v59, %v8336_v35  ;;  %v3825_v59 = vcombine.high %v7115_v16, %v8336_v35 }
 0x282   :  { %3428 = vrot.lane.b32.xlu0 %v3355_v3, %s4835_s30  ;;  %v7123_v3 = vrot.slane %v3655_v48, %v5208_v61  ;;  %v7139_v48 = vrot.slane %v3862_v28, %v5208_v61  ;;  %v1196_v28 = vcombine.high %v6979_v46, %v8336_v35 }
 0x283   :  { %v7105_v25 = vpop.permute.xlu1 %4174 }
 0x284   :  { %8520 = vst [vmem:[#allocation62_spill] sm:$0xff] %v7105_v25  ;;  %v7110_v54 = vpop.permute.xlu0 %1271 }
 0x285   :  { %8521 = vst [vmem:[#allocation61_spill] sm:$0xff] %v7110_v54  ;;  %3460 = vrot.lane.b32.xlu1 %v7108_v7, %s4832_s27 }
 0x286   :  { %3684 = vrot.lane.b32.xlu0 %v3604_v12, %s4836_s6  ;;  %v4125_v12 = vcombine.low %v6297_v62, %v6300_v63 }
 0x287   :  { %v7120_v44 = vpop.permute.xlu1 %1303 }
 0x288   :  { %8523 = vst [vmem:[#allocation91_spill] sm:$0xff] %v7120_v44  ;;  %v7127_v25 = vpop.permute.xlu0 %1527 }
 0x289   :  { %3716 = vrot.lane.b32.xlu1 %v7123_v3, %s4833_s28 }
 0x28a   :  { %3898 = vrot.lane.b32.xlu0 %v3825_v59, %s4835_s30  ;;  %v7151_v59 = vrot.slane %v4125_v12, %v5208_v61 }
 0x28b   :  { %v7136_v34 = vpop.permute.xlu1 %1559 }
 0x28c   :  { %v7141_v54 = vpop.permute.xlu0 %1741 }
 0x28d   :  { %8524 = vst [vmem:[#allocation92_spill] sm:$0xff] %v7141_v54  ;;  %3930 = vrot.lane.b32.xlu1 %v7139_v48, %s4832_s27 }
 0x28e   :  { %4154 = vrot.lane.b32.xlu0 %v4074_v9, %s4836_s6  ;;  %v8527_v9 = vcombine.high %v8464_v24, %v8463_v27  ;;  %v8530_v27 = vcombine.high %v8471_v38, %v8470_v18  ;;  %v8534_v18 = vcombine.high %v8475_v4, %v8474_v21  ;;  %v3324_v21 = vcombine.high %v7037_v5, %v7040_v0  ;;  %v8537_v5 = vld [vmem:[#allocation70_spill] sm:$0xff] }
 0x28f   :  { %v7148_v19 = vpop.permute.xlu1 %1773 }
 0x290   :  { %8525 = vst [vmem:[#allocation93_spill] sm:$0xff] %v7148_v19  ;;  %v7153_v44 = vpop.permute.xlu0 %1997  ;;  %v7166_v54 = vrot.slane %v8527_v9, %v5208_v61  ;;  %v1445_v19 = vcombine.high %v6994_v58, %v8336_v35  ;;  %v7185_v24 = vrot.slane %v8530_v27, %v5208_v61  ;;  %v8531_v9 = vld [vmem:[#allocation66_spill] sm:$0xff]  ;;  %v7204_v38 = vrot.slane %v8534_v18, %v5208_v61 }
 0x291   :  { %8526 = vst [vmem:[#allocation94_spill] sm:$0xff] %v7153_v44  ;;  %4186 = vrot.lane.b32.xlu1 %v7151_v59, %s4833_s28  ;;  %v8536_v27 = vcombine.high %v8482_v14, %v8481_v8  ;;  %v8540_v14 = vld [vmem:[#allocation69_spill] sm:$0xff] }
 0x292   :  { %1283 = vrot.lane.b32.xlu0 %v1196_v28, %s4837_s7  ;;  %v1666_v28 = vcombine.high %v7008_v29, %v8336_v35  ;;  %v8532_v29 = vld [vmem:[#allocation4_spill] sm:$0xff] }
 0x293   :  { %v7160_v13 = vpop.permute.xlu1 %2029 }
 0x294   :  { %v7168_v12 = vpop.permute.xlu0 %2464 }
 0x295   :  { %8528 = vst [vmem:[#allocation95_spill] sm:$0xff] %v7168_v12  ;;  %1315 = vrot.lane.b32.xlu1 %v7166_v54, %s4834_s29  ;;  %v3540_v12 = vcombine.high %v8532_v29, %v8531_v9  ;;  %v8539_v29 = vld [vmem:[#allocation19_spill] sm:$0xff] }
 0x296   :  { %1539 = vrot.lane.b32.xlu0 %v1445_v19, %s4838_s8  ;;  %v1915_v19 = vcombine.high %v7027_v31, %v8336_v35  ;;  %v4026_v8 = vcombine.high %v8540_v14, %v8539_v29 }
 0x297   :  { %v7175_v46 = vpop.permute.xlu1 %2496 }
 0x298   :  { %8529 = vst [vmem:[#allocation96_spill] sm:$0xff] %v7175_v46  ;;  %v7179_v16 = vpop.permute.xlu0 %2720  ;;  %v3556_v46 = vcombine.high %v6306_v57, %v6331_v11  ;;  %v7214_v57 = vrot.slane %v3540_v12, %v5005_v41  ;;  %v2956_v12 = vcombine.high %v7075_v15, %v8336_v35 }
 0x299   :  { %1753 = vrot.lane.b32.xlu1 %v1666_v28, %s4837_s7  ;;  %v2454_v28 = vcombine.high %v7054_v2, %v8336_v35 }
 0x29a   :  { %1785 = vrot.lane.b32.xlu0 %v7185_v24, %s4834_s29  ;;  %v7217_v11 = vrot.slane %v3556_v46, %v5005_v41  ;;  %v8538_v46 = vld [vmem:[#allocation67_spill] sm:$0xff] }
 0x29b   :  { %v7190_v58 = vpop.permute.xlu1 %2752  ;;  %v4010_v9 = vcombine.high %v8538_v46, %v8537_v5  ;;  %v7258_v46 = vrot.slane %v4026_v8, %v5005_v41  ;;  %v8545_v8 = vld [vmem:[#allocation7_spill] sm:$0xff] }
 0x29c   :  { %v7198_v44 = vpop.permute.xlu0 %2966  ;;  %v3587_v0 = vcombine.low %v7214_v57, %v7217_v11 }
 0x29d   :  { %8533 = vst [vmem:[#allocation66_spill] sm:$0xff] %v7198_v44  ;;  %2009 = vrot.lane.b32.xlu1 %v1915_v19, %s4838_s8  ;;  %v7227_v19 = vrot.slane %v8536_v27, %v5208_v61  ;;  %v3424_v27 = vcombine.high %v7108_v7, %v8336_v35  ;;  %v7255_v5 = vrot.slane %v4010_v9, %v5005_v41  ;;  %v8547_v44 = vld [vmem:[#allocation6_spill] sm:$0xff] }
 0x29e   :  { %2476 = vrot.lane.b32.xlu0 %v7204_v38, %s4834_s29  ;;  %v3673_v9 = vcombine.high %v7123_v3, %v8336_v35 }
 0x29f   :  { %v7209_v31 = vpop.permute.xlu1 %2998  ;;  %v4057_v14 = vcombine.low %v7255_v5, %v7258_v46 }
 0x2a0   :  { %8535 = vst [vmem:[#allocation4_spill] sm:$0xff] %v7209_v31  ;;  %v7221_v4 = vpop.permute.xlu0 %3190 }
 0x2a1   :  { %2508 = vrot.lane.b32.xlu1 %v2454_v28, %s4838_s8  ;;  %v7245_v28 = vrot.slane %v3324_v21, %v5208_v61  ;;  %v7263_v21 = vrot.slane %v3587_v0, %v5208_v61 }
 0x2a2   :  { %2978 = vrot.lane.b32.xlu0 %v7227_v19, %s4834_s29 }
 0x2a3   :  { %v7232_v2 = vpop.permute.xlu1 %3222 }
 0x2a4   :  { %v7242_v18 = vpop.permute.xlu0 %3676 }
 0x2a5   :  { %8541 = vst [vmem:[#allocation70_spill] sm:$0xff] %v7242_v18  ;;  %3010 = vrot.lane.b32.xlu1 %v2956_v12, %s4838_s8  ;;  %v3794_v12 = vcombine.high %v7081_v30, %v7084_v1 }
 0x2a6   :  { %3432 = vrot.lane.b32.xlu0 %v7245_v28, %s4832_s27 }
 0x2a7   :  { %v7250_v15 = vpop.permute.xlu1 %3708  ;;  %v7283_v1 = vrot.slane %v3794_v12, %v5208_v61  ;;  %v7301_v12 = vrot.slane %v4057_v14, %v5208_v61  ;;  %v8553_v14 = vcombine.high %v8500_v26, %v8499_v45  ;;  %v8556_v45 = vcombine.high %v8506_v36, %v8505_v23 }
 0x2a8   :  { %8542 = vst [vmem:[#allocation67_spill] sm:$0xff] %v7250_v15  ;;  %v7260_v29 = vpop.permute.xlu0 %4146  ;;  %v8546_v15 = vld [vmem:[#allocation51_spill] sm:$0xff] }
 0x2a9   :  { %8543 = vst [vmem:[#allocation19_spill] sm:$0xff] %v7260_v29  ;;  %3464 = vrot.lane.b32.xlu1 %v3424_v27, %s4836_s6  ;;  %v2170_v0 = vcombine.low %v8546_v15, %v8545_v8  ;;  %v8548_v29 = vld [vmem:[#allocation54_spill] sm:$0xff]  ;;  %v3894_v27 = vcombine.high %v7139_v48, %v8336_v35  ;;  %v4143_v48 = vcombine.high %v7151_v59, %v8336_v35 }
 0x2aa   :  { %3688 = vrot.lane.b32.xlu0 %v7263_v21, %s4833_s28  ;;  %v2186_v18 = vcombine.low %v8548_v29, %v8547_v44  ;;  %v1265_v59 = vcombine.high %v7166_v54, %v8336_v35  ;;  %v7337_v26 = vrot.slane %v8556_v45, %v5208_v61  ;;  %v8559_v54 = vld [vmem:[#allocation42_spill] sm:$0xff] }
 0x2ab   :  { %v7270_v7 = vpop.permute.xlu1 %4178 }
 0x2ac   :  { %8544 = vst [vmem:[#allocation69_spill] sm:$0xff] %v7270_v7  ;;  %v7280_v30 = vpop.permute.xlu0 %1275  ;;  %v7293_v7 = vrot.slane %v2170_v0, %v5005_v41  ;;  %v7296_v31 = vrot.slane %v2186_v18, %v5005_v41 }
 0x2ad   :  { %8549 = vst [vmem:[#allocation7_spill] sm:$0xff] %v7280_v30  ;;  %3720 = vrot.lane.b32.xlu1 %v3673_v9, %s4837_s7 }
 0x2ae   :  { %3902 = vrot.lane.b32.xlu0 %v7283_v1, %s4832_s27  ;;  %v2202_v0 = vcombine.low %v7293_v7, %v7296_v31 }
 0x2af   :  { %v7288_v3 = vpop.permute.xlu1 %1307 }
 0x2b0   :  { %8550 = vst [vmem:[#allocation51_spill] sm:$0xff] %v7288_v3  ;;  %v7298_v30 = vpop.permute.xlu0 %1531  ;;  %v7318_v3 = vrot.slane %v8553_v14, %v5208_v61 }
 0x2b1   :  { %8551 = vst [vmem:[#allocation6_spill] sm:$0xff] %v7298_v30  ;;  %3934 = vrot.lane.b32.xlu1 %v3894_v27, %s4836_s6 }
 0x2b2   :  { %4158 = vrot.lane.b32.xlu0 %v7301_v12, %s4833_s28 }
 0x2b3   :  { %v7306_v9 = vpop.permute.xlu1 %1563 }
 0x2b4   :  { %v7312_v18 = vpop.permute.xlu0 %1745 }
 0x2b5   :  { %8552 = vst [vmem:[#allocation54_spill] sm:$0xff] %v7312_v18  ;;  %4190 = vrot.lane.b32.xlu1 %v4143_v48, %s4837_s7  ;;  %v3376_v18 = vcombine.high %v6395_v22, %v6409_v49  ;;  %v7340_v48 = vrot.slane %v2202_v0, %v5208_v61  ;;  %v1735_v22 = vcombine.high %v7185_v24, %v8336_v35  ;;  %v8560_v0 = vld [vmem:[#allocation26_spill] sm:$0xff] }
 0x2b6   :  { %1287 = vrot.lane.b32.xlu0 %v7318_v3, %s4834_s29  ;;  %v2766_v14 = vsel %vm343_vm3, %v8560_v0, %v8559_v54  ;;  %v8561_v24 = vld [vmem:[#allocation10_spill] sm:$0xff]  ;;  %v2888_v54 = vcombine.high %v7227_v19, %v8336_v35 }
 0x2b7   :  { %v7323_v27 = vpop.permute.xlu1 %1777  ;;  %8557 = vst [vmem:[#allocation99_spill] sm:$0xff] %v7340_v48  ;;  %v7353_v49 = vrot.slane %v3376_v18, %v5005_v41  ;;  %v2234_v36 = vcombine.high %v7340_v48, %v8336_v35  ;;  %v2767_v37 = vsel %vm345_vm4, %v2766_v14, %v8561_v24  ;;  %v2386_v18 = vcombine.high %v7204_v38, %v8336_v35  ;;  %v4813_v0 = vld [vmem:[#allocation2 + $0x86] ss:$48 sps:$4 sm:$0xff]  }
 0x2b8   :  { %8554 = vst [vmem:[#allocation97_spill] sm:$0xff] %v7323_v27  ;;  %v7331_v30 = vpop.permute.xlu0 %2001  ;;  %v8571_v27 = vld [vmem:[#allocation63_spill] sm:$0xff] }
 0x2b9   :  { %8555 = vst [vmem:[#allocation98_spill] sm:$0xff] %v7331_v30  ;;  %1319 = vrot.lane.b32.xlu1 %v1265_v59, %s4838_s8  ;;  %v3407_v45 = vcombine.low %v7350_v10, %v7353_v49 }
 0x2ba   :  { %1757 = vrot.lane.b32.xlu0 %v7337_v26, %s4834_s29 }
 0x2bb   :  { %v7345_v20 = vpop.permute.xlu1 %2033 }
 0x2bc   :  { %v7355_v23 = vpop.permute.xlu0 %2468 }
 0x2bd   :  { %8558 = vst [vmem:[#allocation100_spill] sm:$0xff] %v7355_v23  ;;  %1789 = vrot.lane.b32.xlu1 %v1735_v22, %s4838_s8  ;;  %v2768_v22 = vsel %vm347_vm5, %v2767_v37, %v6770_v39  ;;  %v3356_v37 = vcombine.high %v7245_v28, %v8336_v35 }
 0x2be   :  { %2267 = vrot.lane.b32.xlu0 %v2234_v36, %s4835_s30  ;;  %v4812_v36 = vld [vmem:[#allocation2 + $0x6e] ss:$48 sps:$4 sm:$0xff]   ;;  %v2769_v14 = vsel %vm349_vm6, %v2768_v22, %v6901_v47  ;;  %v7392_v47 = vrot.slane %v3407_v45, %v5208_v61 }
 0x2bf   :  { %v7366_v59 = vpop.permute.xlu1 %2500  ;;  %v2770_v38 = vsel %vm351_vm7, %v2769_v14, %v7048_v43  ;;  %v7398_v43 = vrot.slane %v4813_v0, %v5005_v41  ;;  %v8566_v14 = vld [vmem:[#allocation28_spill] sm:$0xff] }
 0x2c0   :  { %8562 = vst [vmem:[#allocation42_spill] sm:$0xff] %v7366_v59  ;;  %v7374_v48 = vpop.permute.xlu0 %2724  ;;  %v2771_v39 = vsel %vm353_vm8, %v2770_v38, %v7190_v58  ;;  %v8564_v58 = vld [vmem:[#allocation41_spill] sm:$0xff]  ;;  %v8567_v38 = vld [vmem:[#allocation22_spill] sm:$0xff]  ;;  %v8572_v59 = vcombine.high %v8519_v53, %v8518_v42 }
 0x2c1   :  { %2480 = vrot.lane.b32.xlu1 %v2386_v18, %s4838_s8  ;;  %v7395_v18 = vrot.slane %v4812_v36, %v5005_v41  ;;  %v2102_v45 = vcombine.low %v8567_v38, %v8566_v14 }
 0x2c2   :  { %2982 = vrot.lane.b32.xlu0 %v2888_v54, %s4838_s8  ;;  %v8565_v54 = vld [vmem:[#allocation24_spill] sm:$0xff]  ;;  %v7424_v30 = vrot.slane %v8572_v59, %v5208_v61 }
 0x2c3   :  { %v2757_v24 = vpop.permute.xlu1 %2756  ;;  %v3236_v28 = vsel %vm343_vm3, %v8565_v54, %v8564_v58 }
 0x2c4   :  { %v2772_v19 = vsel %vm355_vm9, %v2771_v39, %v2757_v24  ;;  %v7389_v23 = vpop.permute.xlu0 %2970  ;;  %v8568_v39 = vld [vmem:[#allocation29_spill] sm:$0xff]  ;;  %v8569_v24 = vld [vmem:[#allocation23_spill] sm:$0xff] }
 0x2c5   :  { %8563 = vst [vmem:[#allocation26_spill] sm:$0xff] %v7389_v23  ;;  %v2776_v22 = vrot.slane %v2772_v19, 4  ;;  %3436 = vrot.lane.b32.xlu1 %v3356_v37, %s4836_s6  ;;  %v2118_v36 = vcombine.low %v8569_v24, %v8568_v39  ;;  %v8570_v23 = vld [vmem:[#allocation46_spill] sm:$0xff]  ;;  %v3605_v37 = vcombine.high %v7263_v21, %v8336_v35 }
 0x2c6   :  { %3468 = vrot.lane.b32.xlu0 %v7392_v47, %s4833_s28  ;;  %v3237_v0 = vsel %vm345_vm4, %v3236_v28, %v8570_v23  ;;  %v3877_v23 = vcombine.low %v7395_v18, %v7398_v43 }
 0x2c7   :  { %2780 = vst [vmem:[#allocation3 + $0x18] sm:$0xf0] %v2776_v22  ;;  %v7412_v19 = vpop.permute.xlu1 %3002  ;;  %v3238_v58 = vsel %vm347_vm5, %v3237_v0, %v8571_v27  ;;  %v7436_v27 = vrot.slane %v2102_v45, %v5005_v41  ;;  %v7439_v42 = vrot.slane %v2118_v36, %v5005_v41  ;;  %v3308_v45 = vcombine.high %v6423_v51, %v6446_v40 }
 0x2c8   :  { %v7418_v54 = vpop.permute.xlu0 %3194  ;;  %v3239_v22 = vsel %vm349_vm6, %v3238_v58, %v6946_v52  ;;  %v3826_v52 = vcombine.high %v7283_v1, %v8336_v35  ;;  %v4075_v58 = vcombine.high %v7301_v12, %v8336_v35  ;;  %v1197_v40 = vcombine.high %v7318_v3, %v8336_v35 }
 0x2c9   :  { %3692 = vrot.lane.b32.xlu1 %v3605_v37, %s4837_s7  ;;  %v3240_v21 = vsel %vm351_vm7, %v3239_v22, %v7091_v6  ;;  %v7449_v6 = vrot.slane %v3877_v23, %v5208_v61  ;;  %v2134_v1 = vcombine.low %v7436_v27, %v7439_v42  ;;  %v8573_v22 = vcombine.high %v6297_v62, %v6300_v63 }
 0x2ca   :  { %3724 = vrot.lane.b32.xlu0 %v7424_v30, %s4834_s29  ;;  %v3241_v53 = vsel %vm353_vm8, %v3240_v21, %v7232_v2  ;;  %v3292_v2 = vcombine.high %v6419_v55, %v6442_v56  ;;  %v7479_v55 = vrot.slane %v3308_v45, %v5005_v41  ;;  %v2203_v63 = vcombine.high %v7293_v7, %v7296_v31 }
 0x2cb   :  { %v3227_v59 = vpop.permute.xlu1 %3226  ;;  %v7470_v21 = vrot.slane %v8573_v22, %v5208_v61  ;;  %v7486_v62 = vrot.slane %v2134_v1, %v5208_v61  ;;  %v8577_v22 = vld [vmem:[#allocation74_spill] sm:$0xff] }
 0x2cc   :  { %v3242_v28 = vsel %vm355_vm9, %v3241_v53, %v3227_v59  ;;  %v7446_v0 = vpop.permute.xlu0 %3456  ;;  %v7476_v56 = vrot.slane %v3292_v2, %v5005_v41  ;;  %v1667_v53 = vcombine.high %v7337_v26, %v8336_v35  ;;  %v4814_v59 = vld [vmem:[#allocation2 + $0x66] ss:$48 sps:$4 sm:$0xff]   ;;  %v2217_v7 = vrot.slane %v2203_v63, %v5208_v61 }
 0x2cd   :  { %v3246_v37 = vrot.slane %v3242_v28, 4  ;;  %3906 = vrot.lane.b32.xlu1 %v3826_v52, %s4836_s6  ;;  %8574 = vst [vmem:[#allocation10_spill] sm:$0xff] %v7486_v62  ;;  %v2166_v28 = vcombine.high %v7486_v62, %v8336_v35  ;;  %v8575_v26 = vld [vmem:[#allocation44_spill] sm:$0xff]  ;;  %v8576_v2 = vld [vmem:[#allocation25_spill] sm:$0xff]  ;;  %v7511_v1 = vrot.slane %v4814_v59, %v5005_v41  ;;  %v8578_v62 = vld [vmem:[#allocation14_spill] sm:$0xff]  ;;  %v3425_v59 = vcombine.high %v7392_v47, %v8336_v35 }
 0x2ce   :  { %3938 = vrot.lane.b32.xlu0 %v7449_v6, %s4833_s28  ;;  %v3339_v52 = vcombine.low %v7476_v56, %v7479_v55  ;;  %v1577_v45 = vsel %vm343_vm3, %v8576_v2, %v8575_v26 }
 0x2cf   :  { %3250 = vst [vmem:[#allocation3 + $0x38] sm:$0xf0] %v3246_v37  ;;  %v7460_v36 = vpop.permute.xlu1 %3680  ;;  %v4815_v37 = vld [vmem:[#allocation2 + $0x7e] ss:$48 sps:$4 sm:$0xff]  }
 0x2d0   :  { %v7464_v23 = vpop.permute.xlu0 %3712  ;;  %v3347_v63 = vrot.slane %v3339_v52, %v5208_v61 }
 0x2d1   :  { %4162 = vrot.lane.b32.xlu1 %v4075_v58, %s4837_s7  ;;  %v3588_v58 = vcombine.high %v7214_v57, %v7217_v11 }
 0x2d2   :  { %4194 = vrot.lane.b32.xlu0 %v7470_v21, %s4834_s29 }
 0x2d3   :  { %v7481_v51 = vpop.permute.xlu1 %3926 }
 0x2d4   :  { %v7490_v12 = vpop.permute.xlu0 %4150 }
 0x2d5   :  { %1291 = vrot.lane.b32.xlu1 %v1197_v40, %s4838_s8  ;;  %v1578_v40 = vsel %vm345_vm4, %v1577_v45, %v8577_v22  ;;  %v3674_v22 = vcombine.high %v7424_v30, %v8336_v35 }
 0x2d6   :  { %1761 = vrot.lane.b32.xlu0 %v1667_v53, %s4838_s8  ;;  %v1579_v26 = vsel %vm347_vm5, %v1578_v40, %v8578_v62  ;;  %v7538_v62 = vrot.slane %v3588_v58, %v5208_v61  ;;  %v8579_v40 = vld [vmem:[#allocation43_spill] sm:$0xff]  ;;  %v4058_v58 = vcombine.high %v7255_v5, %v7258_v46  ;;  %v2135_v46 = vcombine.high %v7436_v27, %v7439_v42 }
 0x2d7   :  { %v7498_v3 = vpop.permute.xlu1 %4182  ;;  %v1580_v57 = vsel %vm349_vm6, %v1579_v26, %v6984_v32  ;;  %v4144_v27 = vcombine.high %v7470_v21, %v8336_v35  ;;  %v8586_v42 = vld [vmem:[#allocation83_spill] sm:$0xff]  ;;  %v3408_v21 = vcombine.high %v7350_v10, %v7353_v49 }
 0x2d8   :  { %v7502_v31 = vpop.permute.xlu0 %1279  ;;  %v1581_v11 = vsel %vm351_vm7, %v1580_v57, %v7136_v34 }
 0x2d9   :  { %2239 = vrot.lane.b32.xlu1 %v2166_v28, %s4835_s30  ;;  %v7521_v28 = vrot.slane %v4815_v37, %v5005_v41  ;;  %v1582_v52 = vsel %vm353_vm8, %v1581_v11, %v7306_v9  ;;  %v8580_v9 = vld [vmem:[#allocation21_spill] sm:$0xff] }
 0x2da   :  { %2271 = vrot.lane.b32.xlu0 %v2217_v7, %s4832_s27  ;;  %v2047_v26 = vsel %vm343_vm3, %v8580_v9, %v8579_v40  ;;  %v3895_v40 = vcombine.high %v7449_v6, %v8336_v35 }
 0x2db   :  { %v7517_v53 = vpop.permute.xlu1 %1311  ;;  %v3809_v47 = vcombine.low %v7511_v1, %v7521_v28 }
 0x2dc   :  { %v7525_v2 = vpop.permute.xlu0 %1535 }
 0x2dd   :  { %3440 = vrot.lane.b32.xlu1 %v3347_v63, %s4833_s28  ;;  %v3817_v30 = vrot.slane %v3809_v47, %v5208_v61  ;;  %v8583_v47 = vld [vmem:[#allocation11_spill] sm:$0xff] }
 0x2de   :  { %3472 = vrot.lane.b32.xlu0 %v3425_v59, %s4837_s7  ;;  %v8581_v59 = vld [vmem:[#allocation77_spill] sm:$0xff] }
 0x2df   :  { %v1568_v37 = vpop.permute.xlu1 %1567  ;;  %v2048_v57 = vsel %vm345_vm4, %v2047_v26, %v8581_v59  ;;  %v8585_v59 = vld [vmem:[#allocation80_spill] sm:$0xff] }
 0x2e0   :  { %v1583_v45 = vsel %vm355_vm9, %v1582_v52, %v1568_v37  ;;  %v7543_v32 = vpop.permute.xlu0 %1749  ;;  %v8582_v52 = vld [vmem:[#allocation50_spill] sm:$0xff] }
 0x2e1   :  { %v1587_v34 = vrot.slane %v1583_v45, 4  ;;  %3696 = vrot.lane.b32.xlu1 %v7538_v62, %s4834_s29  ;;  %v2049_v37 = vsel %vm347_vm5, %v2048_v57, %v8582_v52 }
 0x2e2   :  { %3728 = vrot.lane.b32.xlu0 %v3674_v22, %s4838_s8  ;;  %v2050_v22 = vsel %vm349_vm6, %v2049_v37, %v7013_v33  ;;  %v4072_v33 = vrot.slane %v4058_v58, %v5208_v61 }
 0x2e3   :  { %1591 = vst [vmem:[#allocation3 + $0x48] sm:$0xf0] %v1587_v34  ;;  %v7557_v11 = vpop.permute.xlu1 %1781  ;;  %v2051_v5 = vsel %vm351_vm7, %v2050_v22, %v7160_v13  ;;  %v8584_v34 = vld [vmem:[#allocation30_spill] sm:$0xff] }
 0x2e4   :  { %v7562_v45 = vpop.permute.xlu0 %2005  ;;  %v2759_v9 = vsel %vm343_vm3, %v8584_v34, %v8583_v47  ;;  %v2052_v6 = vsel %vm353_vm8, %v2051_v5, %v7345_v20  ;;  %v2149_v5 = vrot.slane %v2135_v46, %v5208_v61  ;;  %v8589_v46 = vld [vmem:[#allocation47_spill] sm:$0xff] }
 0x2e5   :  { %3910 = vrot.lane.b32.xlu1 %v3817_v30, %s4833_s28  ;;  %v2760_v57 = vsel %vm345_vm4, %v2759_v9, %v8585_v59  ;;  %v2235_v9 = vcombine.high %v2217_v7, %v8336_v35  ;;  %v2171_v7 = vcombine.high %v8546_v15, %v8545_v8  ;;  %v3878_v8 = vcombine.high %v7395_v18, %v7398_v43  ;;  %v8593_v43 = vld [vmem:[#allocation57_spill] sm:$0xff] }
 0x2e6   :  { %3942 = vrot.lane.b32.xlu0 %v3895_v40, %s4837_s7  ;;  %v2761_v37 = vsel %vm347_vm5, %v2760_v57, %v8586_v42  ;;  %v2187_v57 = vcombine.high %v8548_v29, %v8547_v44  ;;  %v3606_v29 = vcombine.high %v7538_v62, %v8336_v35  ;;  %v8591_v62 = vld [vmem:[#allocation59_spill] sm:$0xff] }
 0x2e7   :  { %v2038_v26 = vpop.permute.xlu1 %2037  ;;  %v2762_v20 = vsel %vm349_vm6, %v2761_v37, %v7042_v50  ;;  %v3422_v37 = vrot.slane %v3408_v21, %v5208_v61  ;;  %v3827_v21 = vcombine.high %v3817_v30, %v8336_v35 }
 0x2e8   :  { %v2053_v13 = vsel %vm355_vm9, %v2052_v6, %v2038_v26  ;;  %v7583_v52 = vpop.permute.xlu0 %2472  ;;  %v2763_v58 = vsel %vm351_vm7, %v2762_v20, %v7179_v16  ;;  %v8587_v6 = vld [vmem:[#allocation73_spill] sm:$0xff]  ;;  %v8588_v16 = vld [vmem:[#allocation31_spill] sm:$0xff]  ;;  %v7636_v20 = vrot.slane %v2171_v7, %v5005_v41  ;;  %v2167_v7 = vcombine.high %v2149_v5, %v8336_v35 }
 0x2e9   :  { %v2057_v40 = vrot.slane %v2053_v13, 4  ;;  %4166 = vrot.lane.b32.xlu1 %v4072_v33, %s4834_s29  ;;  %v2764_v47 = vsel %vm353_vm8, %v2763_v58, %v7374_v48  ;;  %v3229_v26 = vsel %vm343_vm3, %v8588_v16, %v8587_v6  ;;  %v3357_v48 = vcombine.high %v3347_v63, %v8336_v35  ;;  %v8590_v13 = vld [vmem:[#allocation36_spill] sm:$0xff] }
 0x2ea   :  { %4198 = vrot.lane.b32.xlu0 %v4144_v27, %s4838_s8  ;;  %v3230_v10 = vsel %vm345_vm4, %v3229_v26, %v8589_v46  ;;  %v3892_v6 = vrot.slane %v3878_v8, %v5208_v61  ;;  %v4076_v26 = vcombine.high %v4072_v33, %v8336_v35  ;;  %v2103_v33 = vcombine.high %v8567_v38, %v8566_v14 }
 0x2eb   :  { %2061 = vst [vmem:[#allocation3 + $0x68] sm:$0xf0] %v2057_v40  ;;  %v7595_v22 = vpop.permute.xlu1 %2504  ;;  %v3231_v27 = vsel %vm347_vm5, %v3230_v10, %v8590_v13  ;;  %v3426_v14 = vcombine.high %v3422_v37, %v8336_v35  ;;  %v3810_v38 = vcombine.high %v7511_v1, %v7521_v28  ;;  %v8600_v1 = vld [vmem:[#allocation27_spill] sm:$0xff] }
 0x2ec   :  { %v2729_v34 = vpop.permute.xlu0 %2728  ;;  %v3232_v40 = vsel %vm349_vm6, %v3231_v27, %v7069_v17  ;;  %v7639_v17 = vrot.slane %v2187_v57, %v5005_v41  ;;  %v2119_v57 = vcombine.high %v8569_v24, %v8568_v39  ;;  %v7690_v39 = vrot.slane %v2103_v33, %v5005_v41 }
 0x2ed   :  { %v2765_v50 = vsel %vm355_vm9, %v2764_v47, %v2729_v34  ;;  %2243 = vrot.lane.b32.xlu1 %v2149_v5, %s4832_s27  ;;  %v3233_v63 = vsel %vm351_vm7, %v3232_v40, %v7221_v4  ;;  %v8592_v47 = vld [vmem:[#allocation32_spill] sm:$0xff]  ;;  %v8594_v34 = vld [vmem:[#allocation33_spill] sm:$0xff] }
 0x2ee   :  { %v2775_v59 = vrot.slane %v2765_v50, 4  ;;  %2275 = vrot.lane.b32.xlu0 %v2235_v9, %s4836_s6  ;;  %v3234_v44 = vsel %vm353_vm8, %v3233_v63, %v7418_v54  ;;  %v4331_v18 = vcombine.low %v8592_v47, %v8591_v62  ;;  %v4347_v9 = vcombine.low %v8594_v34, %v8593_v43  ;;  %v8595_v40 = vld [vmem:[#allocation8_spill] sm:$0xff] }
 0x2ef   :  { %v7611_v49 = vpop.permute.xlu1 %2974  ;;  %v2218_v16 = vcombine.low %v7636_v20, %v7639_v17  ;;  %v7693_v24 = vrot.slane %v2119_v57, %v5005_v41  ;;  %v8596_v63 = vld [vmem:[#allocation60_spill] sm:$0xff] }
 0x2f0   :  { %2779 = vst [vmem:[#allocation3 + $0x10] sm:$0xf0] %v2775_v59  ;;  %v7620_v42 = vpop.permute.xlu0 %3006  ;;  %v3340_v59 = vcombine.high %v7476_v56, %v7479_v55  ;;  %v7664_v46 = vrot.slane %v4331_v18, %v5005_v41  ;;  %v7667_v10 = vrot.slane %v4347_v9, %v5005_v41  ;;  %v3896_v18 = vcombine.high %v3892_v6, %v8336_v35 }
 0x2f1   :  { %3444 = vrot.lane.b32.xlu1 %v3357_v48, %s4837_s7  ;;  %v2226_v56 = vrot.slane %v2218_v16, %v5208_v61  ;;  %v2150_v16 = vcombine.low %v7690_v39, %v7693_v24 }
 0x2f2   :  { %3476 = vrot.lane.b32.xlu0 %v3422_v37, %s4834_s29  ;;  %v4363_v55 = vcombine.low %v7664_v46, %v7667_v10  ;;  %v3354_v5 = vrot.slane %v3340_v59, %v5208_v61  ;;  %v8599_v37 = vld [vmem:[#allocation45_spill] sm:$0xff] }
 0x2f3   :  { %v3199_v15 = vpop.permute.xlu1 %3198  ;;  %v1570_v28 = vsel %vm343_vm3, %v8600_v1, %v8599_v37 }
 0x2f4   :  { %v3235_v4 = vsel %vm355_vm9, %v3234_v44, %v3199_v15  ;;  %v7642_v58 = vpop.permute.xlu0 %3428  ;;  %v4263_v44 = vcombine.low %v8596_v63, %v8595_v40  ;;  %v8597_v15 = vld [vmem:[#allocation72_spill] sm:$0xff]  ;;  %v7711_v9 = vrot.slane %v4363_v55, %v5208_v61 }
 0x2f5   :  { %v3245_v54 = vrot.slane %v3235_v4, 4  ;;  %3700 = vrot.lane.b32.xlu1 %v3606_v29, %s4838_s8  ;;  %v8598_v29 = vld [vmem:[#allocation58_spill] sm:$0xff] }
 0x2f6   :  { %3914 = vrot.lane.b32.xlu0 %v3827_v21, %s4837_s7  ;;  %v4279_v8 = vcombine.low %v8598_v29, %v8597_v15  ;;  %8601 = vst [vmem:[#allocation41_spill] sm:$0xff] %v7711_v9 }
 0x2f7   :  { %3249 = vst [vmem:[#allocation3 + $0x30] sm:$0xf0] %v3245_v54  ;;  %v7651_v50 = vpop.permute.xlu1 %3460  ;;  %v3824_v54 = vrot.slane %v3810_v38, %v5208_v61 }
 0x2f8   :  { %v7656_v30 = vpop.permute.xlu0 %3684  ;;  %v7719_v59 = vrot.slane %v4279_v8, %v5005_v41  ;;  %v4395_v8 = vcombine.high %v7711_v9, %v8336_v35 }
 0x2f9   :  { %3946 = vrot.lane.b32.xlu1 %v3892_v6, %s4834_s29 }
 0x2fa   :  { %4170 = vrot.lane.b32.xlu0 %v4076_v26, %s4838_s8  ;;  %v7716_v26 = vrot.slane %v4263_v44, %v5005_v41 }
 0x2fb   :  { %v7669_v48 = vpop.permute.xlu1 %3716 }
 0x2fc   :  { %v7676_v13 = vpop.permute.xlu0 %3898  ;;  %v4295_v37 = vcombine.low %v7716_v26, %v7719_v59 }
 0x2fd   :  { %2247 = vrot.lane.b32.xlu1 %v2167_v7, %s4836_s6  ;;  %v8602_v7 = vld [vmem:[#allocation15_spill] sm:$0xff] }
 0x2fe   :  { %2279 = vrot.lane.b32.xlu0 %v2226_v56, %s4833_s28  ;;  %v1571_v33 = vsel %vm345_vm4, %v1570_v28, %v8602_v7  ;;  %v2158_v28 = vrot.slane %v2150_v16, %v5208_v61  ;;  %v8605_v7 = vld [vmem:[#allocation34_spill] sm:$0xff] }
 0x2ff   :  { %v7683_v27 = vpop.permute.xlu1 %3930  ;;  %v1572_v6 = vsel %vm347_vm5, %v1571_v33, %v6976_v60 }
 0x300   :  { %v7699_v4 = vpop.permute.xlu0 %4154  ;;  %v1573_v55 = vsel %vm349_vm6, %v1572_v6, %v7127_v25 }
 0x301   :  { %3448 = vrot.lane.b32.xlu1 %v3354_v5, %s4834_s29 }
 0x302   :  { %3480 = vrot.lane.b32.xlu0 %v3426_v14, %s4838_s8  ;;  %v8603_v14 = vld [vmem:[#allocation6_spill] sm:$0xff] }
 0x303   :  { %v7706_v21 = vpop.permute.xlu1 %4186  ;;  %v1574_v38 = vsel %vm351_vm7, %v1573_v55, %v8603_v14  ;;  %v8606_v55 = vld [vmem:[#allocation81_spill] sm:$0xff] }
 0x304   :  { %v7723_v57 = vpop.permute.xlu0 %1283  ;;  %v1575_v60 = vsel %vm353_vm8, %v1574_v38, %v7525_v2  ;;  %v2236_v2 = vcombine.high %v2226_v56, %v8336_v35  ;;  %v8607_v38 = vld [vmem:[#allocation16_spill] sm:$0xff] }
 0x305   :  { %3918 = vrot.lane.b32.xlu1 %v3824_v54, %s4834_s29 }
 0x306   :  { %3950 = vrot.lane.b32.xlu0 %v3896_v18, %s4838_s8  ;;  %v8604_v18 = vld [vmem:[#allocation76_spill] sm:$0xff] }
 0x307   :  { %v7733_v44 = vpop.permute.xlu1 %1315  ;;  %v2040_v33 = vsel %vm343_vm3, %v8605_v7, %v8604_v18  ;;  %v8609_v7 = vld [vmem:[#allocation79_spill] sm:$0xff] }
 0x308   :  { %v1540_v1 = vpop.permute.xlu0 %1539  ;;  %v2041_v14 = vsel %vm345_vm4, %v2040_v33, %v8606_v55  ;;  %v8610_v33 = vld [vmem:[#allocation35_spill] sm:$0xff]  ;;  %v8611_v55 = vld [vmem:[#allocation98_spill] sm:$0xff] }
 0x309   :  { %v1576_v25 = vsel %vm355_vm9, %v1575_v60, %v1540_v1  ;;  %4428 = vrot.lane.b32.xlu1 %v4395_v8, %s4835_s30  ;;  %v2042_v16 = vsel %vm347_vm5, %v2041_v14, %v8607_v38  ;;  %v3358_v8 = vcombine.high %v3354_v5, %v8336_v35  ;;  %v7759_v1 = vrot.slane %v4295_v37, %v5208_v61 }
 0x30a   :  { %v1586_v6 = vrot.slane %v1576_v25, 4  ;;  %2251 = vrot.lane.b32.xlu0 %v2158_v28, %s4833_s28  ;;  %v8608_v25 = vld [vmem:[#allocation94_spill] sm:$0xff]  ;;  %v2518_v56 = vsel %vm343_vm3, %v8610_v33, %v8609_v7  ;;  %v4364_v5 = vcombine.high %v7664_v46, %v7667_v10  ;;  %v8614_v46 = vld [vmem:[#allocation96_spill] sm:$0xff] }
 0x30b   :  { %v7750_v9 = vpop.permute.xlu1 %1753  ;;  %v2043_v18 = vsel %vm349_vm6, %v2042_v16, %v8608_v25  ;;  %v8613_v25 = vld [vmem:[#allocation85_spill] sm:$0xff] }
 0x30c   :  { %1590 = vst [vmem:[#allocation3 + $0x40] sm:$0xf0] %v1586_v6  ;;  %v7755_v60 = vpop.permute.xlu0 %1785  ;;  %v2044_v14 = vsel %vm351_vm7, %v2043_v18, %v8611_v55  ;;  %v8612_v6 = vld [vmem:[#allocation82_spill] sm:$0xff]  ;;  %v8616_v55 = vld [vmem:[#allocation64_spill] sm:$0xff] }
 0x30d   :  { %2283 = vrot.lane.b32.xlu1 %v2236_v2, %s4837_s7  ;;  %v2519_v37 = vsel %vm345_vm4, %v2518_v56, %v8612_v6  ;;  %v2045_v38 = vsel %vm353_vm8, %v2044_v14, %v7562_v45  ;;  %v3828_v2 = vcombine.high %v3824_v54, %v8336_v35  ;;  %v8615_v45 = vld [vmem:[#allocation48_spill] sm:$0xff]  ;;  %v8617_v14 = vld [vmem:[#allocation42_spill] sm:$0xff] }
 0x30e   :  { %3452 = vrot.lane.b32.xlu0 %v3358_v8, %s4838_s8  ;;  %v2520_v7 = vsel %vm347_vm5, %v2519_v37, %v8613_v25  ;;  %v4327_v8 = vcombine.high %v7759_v1, %v8336_v35  ;;  %v3020_v54 = vsel %vm343_vm3, %v8616_v55, %v8615_v45  ;;  %v2219_v37 = vcombine.high %v7636_v20, %v7639_v17  ;;  %v8621_v55 = vld [vmem:[#allocation88_spill] sm:$0xff] }
 0x30f   :  { %v2010_v16 = vpop.permute.xlu1 %2009  ;;  %v2521_v10 = vsel %vm349_vm6, %v2520_v7, %v8614_v46  ;;  %v4378_v7 = vrot.slane %v4364_v5, %v5208_v61  ;;  %v8619_v46 = vld [vmem:[#allocation87_spill] sm:$0xff]  ;;  %v2168_v20 = vcombine.high %v2158_v28, %v8336_v35  ;;  %v4332_v17 = vcombine.high %v8592_v47, %v8591_v62 }
 0x310   :  { %v2046_v33 = vsel %vm355_vm9, %v2045_v38, %v2010_v16  ;;  %v7780_v18 = vpop.permute.xlu0 %2476  ;;  %v2522_v6 = vsel %vm351_vm7, %v2521_v10, %v8617_v14  ;;  %v8618_v38 = vld [vmem:[#allocation18_spill] sm:$0xff]  ;;  %v2233_v62 = vrot.slane %v2219_v37, %v5208_v61  ;;  %v2151_v47 = vcombine.high %v7690_v39, %v7693_v24 }
 0x311   :  { %v2056_v56 = vrot.slane %v2046_v33, 4  ;;  %3922 = vrot.lane.b32.xlu1 %v3828_v2, %s4838_s8  ;;  %v3021_v16 = vsel %vm345_vm4, %v3020_v54, %v8618_v38  ;;  %v2523_v25 = vsel %vm353_vm8, %v2522_v6, %v7595_v22  ;;  %v4296_v33 = vcombine.high %v7716_v26, %v7719_v59  ;;  %v8620_v22 = vld [vmem:[#allocation4_spill] sm:$0xff]  ;;  %v8622_v24 = vld [vmem:[#allocation70_spill] sm:$0xff]  ;;  %v8623_v6 = vld [vmem:[#allocation75_spill] sm:$0xff] }
 0x312   :  { %4400 = vrot.lane.b32.xlu0 %v4327_v8, %s4835_s30  ;;  %v3022_v10 = vsel %vm347_vm5, %v3021_v16, %v8619_v46  ;;  %v4348_v26 = vcombine.high %v8594_v34, %v8593_v43  ;;  %v3483_v54 = vsel %vm343_vm3, %v8621_v55, %v7642_v58  ;;  %v7829_v14 = vrot.slane %v4332_v17, %v5005_v41  ;;  %v8624_v38 = vld [vmem:[#allocation84_spill] sm:$0xff] }
 0x313   :  { %2060 = vst [vmem:[#allocation3 + $0x60] sm:$0xf0] %v2056_v56  ;;  %v2509_v2 = vpop.permute.xlu1 %2508  ;;  %v3023_v56 = vsel %vm349_vm6, %v3022_v10, %v8620_v22  ;;  %v4264_v58 = vcombine.high %v8596_v63, %v8595_v40  ;;  %v3731_v37 = vsel %vm343_vm3, %v8623_v6, %v8622_v24  ;;  %v3490_v16 = vsel %vm343_vm3, %v8624_v38, %v7446_v0 }
 0x314   :  { %v2524_v8 = vsel %vm355_vm9, %v2523_v25, %v2509_v2  ;;  %v7805_v45 = vpop.permute.xlu0 %2978  ;;  %v3024_v59 = vsel %vm351_vm7, %v3023_v56, %v7412_v19  ;;  %v4310_v19 = vrot.slane %v4296_v33, %v5208_v61  ;;  %v7836_v39 = vrot.slane %v4348_v26, %v5005_v41 }
 0x315   :  { %2526 = vst [vmem:[#allocation3 + $0x18] sm:$0xf] %v2524_v8  ;;  %4432 = vrot.lane.b32.xlu1 %v4378_v7, %s4832_s27  ;;  %v3025_v28 = vsel %vm353_vm8, %v3024_v59, %v7620_v42  ;;  %v4280_v25 = vcombine.high %v8598_v29, %v8597_v15  ;;  %v3732_v2 = vsel %vm345_vm4, %v3731_v37, %v7460_v36 }
 0x316   :  { %2255 = vrot.lane.b32.xlu0 %v2168_v20, %s4837_s7  ;;  %v3491_v33 = vsel %vm345_vm4, %v3490_v16, %v7651_v50  ;;  %v4396_v63 = vcombine.high %v4378_v7, %v8336_v35  ;;  %v3733_v46 = vsel %vm347_vm5, %v3732_v2, %v7656_v30  ;;  %v2165_v8 = vrot.slane %v2151_v47, %v5208_v61  ;;  %v8625_v20 = vld [vmem:[#allocation90_spill] sm:$0xff] }
 0x317   :  { %v3011_v5 = vpop.permute.xlu1 %3010  ;;  %v4379_v36 = vcombine.low %v7829_v14, %v7836_v39  ;;  %v4278_v50 = vrot.slane %v4264_v58, %v5005_v41  ;;  %v4294_v30 = vrot.slane %v4280_v25, %v5005_v41  ;;  %v2237_v7 = vcombine.high %v2233_v62, %v8336_v35  ;;  %v8626_v41 = vld [vmem:[#allocation19_spill] sm:$0xff]  ;;  %v8627_v47 = vld [vmem:[#allocation78_spill] sm:$0xff]  ;;  %v8631_v25 = vld [vmem:[#allocation40_spill] sm:$0xff] }
 0x318   :  { %v3026_v43 = vsel %vm355_vm9, %v3025_v28, %v3011_v5  ;;  %v3433_v34 = vpop.permute.xlu0 %3432  ;;  %v3953_v17 = vsel %vm343_vm3, %v8625_v20, %v7676_v13  ;;  %v4328_v56 = vcombine.high %v4310_v19, %v8336_v35  ;;  %v4201_v55 = vsel %vm343_vm3, %v8627_v47, %v8626_v41  ;;  %v8634_v20 = vld [vmem:[#allocation13_spill] sm:$0xff] }
 0x319   :  { %3028 = vst [vmem:[#allocation3 + $0x38] sm:$0xf] %v3026_v43  ;;  %v7832_v42 = vsel %vm345_vm4, %v3483_v54, %v3433_v34  ;;  %2287 = vrot.lane.b32.xlu1 %v2233_v62, %s4834_s29  ;;  %v8628_v62 = vld [vmem:[#allocation39_spill] sm:$0xff]  ;;  %v4311_v13 = vcombine.low %v4278_v50, %v4294_v30  ;;  %v4202_v43 = vsel %vm345_vm4, %v4201_v55, %v7490_v12  ;;  %v8629_v12 = vld [vmem:[#allocation12_spill] sm:$0xff]  ;;  %v8637_v47 = vld [vmem:[#allocation93_spill] sm:$0xff] }
 0x31a   :  { %4404 = vrot.lane.b32.xlu0 %v4310_v19, %s4832_s27  ;;  %v3960_v54 = vsel %vm343_vm3, %v8628_v62, %v7481_v51  ;;  %v4387_v58 = vrot.slane %v4379_v36, %v5208_v61  ;;  %v4203_v24 = vsel %vm347_vm5, %v4202_v43, %v7699_v4  ;;  %v2169_v37 = vcombine.high %v2165_v8, %v8336_v35  ;;  %v8633_v36 = vld [vmem:[#allocation51_spill] sm:$0xff] }
 0x31b   :  { %v3465_v40 = vpop.permute.xlu1 %3464  ;;  %v3961_v34 = vsel %vm345_vm4, %v3960_v54, %v7683_v27  ;;  %v8630_v27 = vld [vmem:[#allocation5_spill] sm:$0xff] }
 0x31c   :  { %v7857_v10 = vsel %vm347_vm5, %v3491_v33, %v3465_v40  ;;  %v3689_v0 = vpop.permute.xlu0 %3688  ;;  %v4475_v26 = vld [vmem:[#allocation3 + $0x18] sm:$0xff]  ;;  %v1329_v16 = vsel %vm343_vm3, %v8630_v27, %v8629_v12  ;;  %v4319_v33 = vrot.slane %v4311_v13, %v5208_v61  ;;  %v4380_v40 = vcombine.high %v7829_v14, %v7836_v39  ;;  %v8638_v13 = vld [vmem:[#allocation97_spill] sm:$0xff] }
 0x31d   :  { %v7861_v15 = vsel %vm349_vm6, %v3733_v46, %v3689_v0  ;;  %4436 = vrot.lane.b32.xlu1 %v4396_v63, %s4836_s6  ;;  %v1330_v4 = vsel %vm345_vm4, %v1329_v16, %v8631_v25  ;;  %v8632_v63 = vld [vmem:[#allocation91_spill] sm:$0xff]  ;;  %v4312_v14 = vcombine.high %v4278_v50, %v4294_v30  ;;  %v8639_v30 = vld [vmem:[#allocation49_spill] sm:$0xff]  ;;  %v8644_v25 = vld [vmem:[#allocation86_spill] sm:$0xff] }
 0x31e   :  { %2259 = vrot.lane.b32.xlu0 %v2165_v8, %s4834_s29  ;;  %v1331_v46 = vsel %vm347_vm5, %v1330_v4, %v8632_v63  ;;  %v4397_v8 = vcombine.high %v4387_v58, %v8336_v35  ;;  %v8636_v39 = vld [vmem:[#allocation55_spill] sm:$0xff]  ;;  %v4329_v41 = vcombine.high %v4319_v33, %v8336_v35 }
 0x31f   :  { %v7869_v29 = vpop.permute.xlu1 %3720  ;;  %v4326_v16 = vrot.slane %v4312_v14, %v5208_v61 }
 0x320   :  { %v3903_v22 = vpop.permute.xlu0 %3902  ;;  %v4479_v59 = vld [vmem:[#allocation3 + $0x38] sm:$0xff] }
 0x321   :  { %v7877_v28 = vsel %vm345_vm4, %v3953_v17, %v3903_v22  ;;  %2291 = vrot.lane.b32.xlu1 %v2237_v7, %s4838_s8  ;;  %v4740_v5 = vpack.c.bf16 %v4479_v59, %v4475_v26  ;;  %v1332_v7 = vsel %vm349_vm6, %v1331_v46, %v8633_v36  ;;  %v8635_v17 = vld [vmem:[#allocation65_spill] sm:$0xff] }
 0x322   :  { %4408 = vrot.lane.b32.xlu0 %v4328_v56, %s4836_s6  ;;  %v1799_v22 = vsel %vm343_vm3, %v8635_v17, %v8634_v20  ;;  %v1333_v56 = vsel %vm351_vm7, %v1332_v7, %v7517_v53  ;;  %v4394_v53 = vrot.slane %v4380_v40, %v5208_v61  ;;  %v8647_v7 = vld [vmem:[#allocation100_spill] sm:$0xff]  ;;  %v8648_v61 = vld [vmem:[#allocation26_spill] sm:$0xff] }
 0x323   :  { %v3935_v19 = vpop.permute.xlu1 %3934  ;;  %4741 = vmatprep.subr.bf16.mxu1 %v4740_v5  ;;  %v1800_v26 = vsel %vm345_vm4, %v1799_v22, %v8636_v39  ;;  %v1334_v59 = vsel %vm353_vm8, %v1333_v56, %v7733_v44  ;;  %v8640_v44 = vld [vmem:[#allocation68_spill] sm:$0xff]  ;;  %v4330_v39 = vcombine.high %v4326_v16, %v8336_v35 }
 0x324   :  { %v7895_v6 = vsel %vm347_vm5, %v3961_v34, %v3935_v19  ;;  %v4159_v51 = vpop.permute.xlu0 %4158  ;;  %v1801_v55 = vsel %vm347_vm5, %v1800_v26, %v8637_v47  ;;  %v2511_v43 = vsel %vm343_vm3, %v8640_v44, %v8639_v30  ;;  %v8641_v19 = vld [vmem:[#allocation38_spill] sm:$0xff]  ;;  %v4398_v46 = vcombine.high %v4394_v53, %v8336_v35 }
 0x325   :  { %v7899_v38 = vsel %vm349_vm6, %v4203_v24, %v4159_v51  ;;  %4440 = vrot.lane.b32.xlu1 %v4387_v58, %s4833_s28  ;;  %v1802_v50 = vsel %vm349_vm6, %v1801_v55, %v8638_v13  ;;  %v8642_v58 = vld [vmem:[#allocation20_spill] sm:$0xff]  ;;  %v8643_v51 = vld [vmem:[#allocation17_spill] sm:$0xff] }
 0x326   :  { %2263 = vrot.lane.b32.xlu0 %v2169_v37, %s4838_s8  ;;  %v1803_v34 = vsel %vm351_vm7, %v1802_v50, %v7557_v11  ;;  %v3013_v24 = vsel %vm343_vm3, %v8642_v58, %v8641_v19  ;;  %v2512_v37 = vsel %vm345_vm4, %v2511_v43, %v8643_v51  ;;  %v8649_v43 = vld [vmem:[#allocation37_spill] sm:$0xff]  ;;  %v8651_v58 = vld [vmem:[#allocation56_spill] sm:$0xff] }
 0x327   :  { %v7908_v2 = vpop.permute.xlu1 %4190  ;;  %v1804_v12 = vsel %vm353_vm8, %v1803_v34, %v7755_v60  ;;  %v3014_v4 = vsel %vm345_vm4, %v3013_v24, %v8644_v25  ;;  %v8650_v34 = vld [vmem:[#allocation53_spill] sm:$0xff]  ;;  %v8652_v24 = vld [vmem:[#allocation52_spill] sm:$0xff] }
 0x328   :  { %v7915_v0 = vpop.permute.xlu0 %1287  ;;  %v1322_v19 = vsel %vm343_vm3, %v8650_v34, %v8649_v43  ;;  %v1792_v51 = vsel %vm343_vm3, %v8652_v24, %v8651_v58  ;;  %v8662_v58 = vld [vmem:[#allocation71_spill] sm:$0xff] }
 0x329   :  { %4412 = vrot.lane.b32.xlu1 %v4319_v33, %s4833_s28  ;;  %v8645_v33 = vld [vmem:[#allocation95_spill] sm:$0xff] }
 0x32a   :  { %4444 = vrot.lane.b32.xlu0 %v4397_v8, %s4837_s7  ;;  %v2513_v11 = vsel %vm347_vm5, %v2512_v37, %v8645_v33  ;;  %v8646_v8 = vld [vmem:[#allocation66_spill] sm:$0xff]  ;;  %v8653_v37 = vld [vmem:[#allocation61_spill] sm:$0xff] }
 0x32b   :  { %v1320_v5 = vpop.permute.xlu1 %1319  ;;  %v3015_v36 = vsel %vm347_vm5, %v3014_v4, %v8646_v8  ;;  %v2514_v60 = vsel %vm349_vm6, %v2513_v11, %v8647_v7  ;;  %v8656_v11 = vld [vmem:[#allocation54_spill] sm:$0xff] }
 0x32c   :  { %v1335_v62 = vsel %vm355_vm9, %v1334_v59, %v1320_v5  ;;  %v7935_v54 = vpop.permute.xlu0 %1757  ;;  %v3016_v20 = vsel %vm349_vm6, %v3015_v36, %v8648_v61  ;;  %v2515_v17 = vsel %vm351_vm7, %v2514_v60, %v7583_v52 }
 0x32d   :  { %1337 = vst [vmem:[#allocation3 + $0x48] sm:$0xf] %v1335_v62  ;;  %4416 = vrot.lane.b32.xlu1 %v4329_v41, %s4837_s7  ;;  %v3017_v22 = vsel %vm351_vm7, %v3016_v20, %v7611_v49  ;;  %v2516_v56 = vsel %vm353_vm8, %v2515_v17, %v7780_v18 }
 0x32e   :  { %4448 = vrot.lane.b32.xlu0 %v4394_v53, %s4834_s29  ;;  %v3018_v26 = vsel %vm353_vm8, %v3017_v22, %v7805_v45 }
 0x32f   :  { %v1790_v27 = vpop.permute.xlu1 %1789 }
 0x330   :  { %v1805_v40 = vsel %vm355_vm9, %v1804_v12, %v1790_v27  ;;  %v2268_v63 = vpop.permute.xlu0 %2267  ;;  %v1323_v12 = vsel %vm345_vm4, %v1322_v19, %v8653_v37  ;;  %v8661_v19 = vld [vmem:[#allocation62_spill] sm:$0xff] }
 0x331   :  { %1807 = vst [vmem:[#allocation3 + $0x68] sm:$0xf] %v1805_v40  ;;  %4420 = vrot.lane.b32.xlu1 %v4326_v16, %s4834_s29  ;;  %v8654_v16 = vld [vmem:[#allocation92_spill] sm:$0xff] }
 0x332   :  { %4452 = vrot.lane.b32.xlu0 %v4398_v46, %s4838_s8  ;;  %v1793_v25 = vsel %vm345_vm4, %v1792_v51, %v8654_v16  ;;  %v8663_v51 = vld [vmem:[#allocation69_spill] sm:$0xff] }
 0x333   :  { %v2481_v14 = vpop.permute.xlu1 %2480  ;;  %v1794_v40 = vsel %vm347_vm5, %v1793_v25, %v8656_v11 }
 0x334   :  { %v2517_v59 = vsel %vm355_vm9, %v2516_v56, %v2481_v14  ;;  %v2983_v5 = vpop.permute.xlu0 %2982  ;;  %v4481_v35 = vld [vmem:[#allocation3 + $0x48] sm:$0xff]  ;;  %v1795_v8 = vsel %vm349_vm6, %v1794_v40, %v7543_v32 }
 0x335   :  { %2525 = vst [vmem:[#allocation3 + $0x10] sm:$0xf] %v2517_v59  ;;  %v3019_v52 = vsel %vm355_vm9, %v3018_v26, %v2983_v5  ;;  %4424 = vrot.lane.b32.xlu1 %v4330_v39, %s4838_s8  ;;  %v1796_v7 = vsel %vm351_vm7, %v1795_v8, %v7750_v9  ;;  %v8659_v39 = vld [vmem:[#allocation9_spill] sm:$0xff]  ;;  %v8660_v59 = vld [vmem:[#allocation67_spill] sm:$0xff] }
 0x336   :  { %3027 = vst [vmem:[#allocation3 + $0x30] sm:$0xf] %v3019_v52  ;;  %v1797_v20 = vsel %vm353_vm8, %v1796_v7, %v7935_v54 }
 0x337   :  { %v3437_v41 = vpop.permute.xlu1 %3436 }
 0x338   :  { %v7983_v49 = vsel %vm347_vm5, %v7832_v42, %v3437_v41  ;;  %v7985_v18 = vpop.permute.xlu0 %3468  ;;  %v4485_v47 = vld [vmem:[#allocation3 + $0x68] sm:$0xff] }
 0x339   :  { %v4736_v55 = vpack.c.bf16 %v4485_v47, %v4481_v35 }
 0x33b   :  { %v7987_v45 = vpop.permute.xlu1 %3692  ;;  %4737 = vmatprep.subr.bf16.mxu0 %v4736_v55 }
 0x33c   :  { %v3725_v62 = vpop.permute.xlu0 %3724  ;;  %v4474_v53 = vld [vmem:[#allocation3 + $0x10] sm:$0xff] }
 0x33d   :  { %v4478_v13 = vld [vmem:[#allocation3 + $0x30] sm:$0xff] }
 0x33e   :  { %v4742_v50 = vpack.c.bf16 %v4478_v13, %v4474_v53 }
 0x33f   :  { %v3907_v30 = vpop.permute.xlu1 %3906 }
 0x340   :  { %v7991_v44 = vsel %vm347_vm5, %v7877_v28, %v3907_v30  ;;  %4743 = vmatpush1.bf16.msra.mxu1 %v4742_v50  ;;  %v7993_v42 = vpop.permute.xlu0 %3938  ;;  %v8655_v28 = vld [vmem:[#allocation7_spill] sm:$0xff] }
 0x341   :  { %v1324_v4 = vsel %vm347_vm5, %v1323_v12, %v8655_v28 }
 0x342   :  { %v1325_v46 = vsel %vm349_vm6, %v1324_v4, %v7502_v31 }
 0x343   :  { %v4163_v27 = vpop.permute.xlu1 %4162  ;;  %v1326_v36 = vsel %vm351_vm7, %v1325_v46, %v7723_v57  ;;  %v8657_v57 = vld [vmem:[#allocation99_spill] sm:$0xff] }
 0x344   :  { %v4195_v33 = vpop.permute.xlu0 %4194  ;;  %v1327_v60 = vsel %vm353_vm8, %v1326_v36, %v7915_v0  ;;  %v2301_v56 = vsel %vm343_vm3, %v8657_v57, %v2268_v63  ;;  %v8658_v0 = vld [vmem:[#allocation89_spill] sm:$0xff] }
 0x345   :  { %v3738_v54 = vsel %vm343_vm3, %v8659_v39, %v8658_v0 }
 0x346   :  { %v3739_v5 = vsel %vm345_vm4, %v3738_v54, %v8660_v59  ;;  %v3963_v54 = vsel %vm349_vm6, %v7895_v6, %v7993_v42 }
 0x347   :  { %v1292_v61 = vpop.permute.xlu1 %1291  ;;  %v3740_v35 = vsel %vm347_vm5, %v3739_v5, %v7464_v23  ;;  %v4208_v23 = vsel %vm343_vm3, %v8662_v58, %v8661_v19 }
 0x348   :  { %v1328_v17 = vsel %vm355_vm9, %v1327_v60, %v1292_v61  ;;  %v1762_v22 = vpop.permute.xlu0 %1761  ;;  %v3741_v63 = vsel %vm349_vm6, %v3740_v35, %v7669_v48  ;;  %v4209_v48 = vsel %vm345_vm4, %v4208_v23, %v8663_v51  ;;  %v4205_v61 = vsel %vm351_vm7, %v7899_v38, %v4163_v27 }
 0x349   :  { %1336 = vst [vmem:[#allocation3 + $0x40] sm:$0xf] %v1328_v17  ;;  %v1798_v31 = vsel %vm355_vm9, %v1797_v20, %v1762_v22  ;;  %v3742_v53 = vsel %vm351_vm7, %v3741_v63, %v7869_v29  ;;  %v4210_v29 = vsel %vm347_vm5, %v4209_v48, %v7498_v3 }
 0x34a   :  { %1806 = vst [vmem:[#allocation3 + $0x60] sm:$0xf] %v1798_v31  ;;  %v3743_v50 = vsel %vm353_vm8, %v3742_v53, %v3725_v62  ;;  %v4211_v62 = vsel %vm349_vm6, %v4210_v29, %v7706_v21  ;;  %v3735_v21 = vsel %vm351_vm7, %v7861_v15, %v7987_v45  ;;  %v3493_v45 = vsel %vm349_vm6, %v7857_v10, %v7985_v18 }
 0x34b   :  { %v8023_v32 = vpop.permute.xlu1 %2239  ;;  %v4212_v12 = vsel %vm351_vm7, %v4211_v62, %v7908_v2 }
 0x34c   :  { %v2272_v9 = vpop.permute.xlu0 %2271  ;;  %v4213_v25 = vsel %vm353_vm8, %v4212_v12, %v4195_v33 }
 0x34d   :  { %v8028_v14 = vsel %vm345_vm4, %v2301_v56, %v2272_v9 }
 0x34f   :  { %v8033_v26 = vpop.permute.xlu1 %3440 }
 0x350   :  { %v3473_v52 = vpop.permute.xlu0 %3472  ;;  %v4480_v41 = vld [vmem:[#allocation3 + $0x40] sm:$0xff] }
 0x351   :  { %v4484_v47 = vld [vmem:[#allocation3 + $0x60] sm:$0xff]  ;;  %v3494_v9 = vsel %vm351_vm7, %v3493_v45, %v3473_v52 }
 0x352   :  { %v4738_v55 = vpack.c.bf16 %v4484_v47, %v4480_v41  ;;  %v3486_v47 = vsel %vm349_vm6, %v7983_v49, %v8033_v26  ;;  %v4471_v45 = vld [vmem:[%s8158_s1] sm:$0xff] }
 0x353   :  { %v3697_v13 = vpop.permute.xlu1 %3696 }
 0x354   :  { %4739 = vmatpush1.bf16.msra.mxu0 %v4738_v55  ;;  %v3729_v30 = vpop.permute.xlu0 %3728  ;;  %v3736_v2 = vsel %vm353_vm8, %v3735_v21, %v3697_v13 }
 0x355   :  { %v3744_v43 = vsel %vm355_vm9, %v3743_v50, %v3729_v30 }
 0x356   :  { %v3748_v34 = vrot.slane %v3744_v43, 4 }
 0x357   :  { %v3911_v24 = vpop.permute.xlu1 %3910 }
 0x358   :  { %3752 = vst [vmem:[#allocation3 + $0x58] sm:$0xf0] %v3748_v34  ;;  %v3943_v37 = vpop.permute.xlu0 %3942  ;;  %v3956_v53 = vsel %vm349_vm6, %v7991_v44, %v3911_v24 }
 0x359   :  { %v3964_v59 = vsel %vm351_vm7, %v3963_v54, %v3943_v37 }
 0x35b   :  { %v4167_v16 = vpop.permute.xlu1 %4166 }
 0x35c   :  { %v4199_v28 = vpop.permute.xlu0 %4198  ;;  %v4206_v17 = vsel %vm353_vm8, %v4205_v61, %v4167_v16 }
 0x35d   :  { %v4214_v4 = vsel %vm355_vm9, %v4213_v25, %v4199_v28 }
 0x35e   :  { %v4218_v11 = vrot.slane %v4214_v4, 4  ;;  %v8664_v4 = vld [vmem:[#allocation10_spill] sm:$0xff] }
 0x35f   :  { %v8058_v40 = vpop.permute.xlu1 %2243 }
 0x360   :  { %4222 = vst [vmem:[#allocation3 + $0x78] sm:$0xf0] %v4218_v11  ;;  %v8060_v46 = vpop.permute.xlu0 %2275  ;;  %v2294_v11 = vsel %vm343_vm3, %v8664_v4, %v8023_v32 }
 0x361   :  { %v2303_v12 = vsel %vm347_vm5, %v8028_v14, %v8060_v46  ;;  %v2295_v21 = vsel %vm345_vm4, %v2294_v11, %v8058_v40  ;;  %v4672_v11 = vld [vmem:[%s8159_s2] sm:$0xff] }
 0x363   :  { %v3445_v8 = vpop.permute.xlu1 %3444 }
 0x364   :  { %v3477_v3 = vpop.permute.xlu0 %3476  ;;  %v3487_v63 = vsel %vm351_vm7, %v3486_v47, %v3445_v8 }
 0x365   :  { %v3495_v38 = vsel %vm353_vm8, %v3494_v9, %v3477_v3 }
 0x367   :  { %v3701_v36 = vpop.permute.xlu1 %3700 }
 0x368   :  { %v3737_v33 = vsel %vm355_vm9, %v3736_v2, %v3701_v36  ;;  %v3915_v7 = vpop.permute.xlu0 %3914 }
 0x369   :  { %v3747_v60 = vrot.slane %v3737_v33, 4  ;;  %v3957_v43 = vsel %vm351_vm7, %v3956_v53, %v3915_v7 }
 0x36b   :  { %3751 = vst [vmem:[#allocation3 + $0x50] sm:$0xf0] %v3747_v60  ;;  %v3947_v20 = vpop.permute.xlu1 %3946 }
 0x36c   :  { %v4171_v22 = vpop.permute.xlu0 %4170  ;;  %v3965_v41 = vsel %vm353_vm8, %v3964_v59, %v3947_v20 }
 0x36d   :  { %v4207_v31 = vsel %vm355_vm9, %v4206_v17, %v4171_v22  ;;  %v8665_v22 = vld [vmem:[#allocation41_spill] sm:$0xff] }
 0x36e   :  { %v4217_v57 = vrot.slane %v4207_v31, 4 }
 0x36f   :  { %v2248_v56 = vpop.permute.xlu1 %2247 }
 0x370   :  { %4221 = vst [vmem:[#allocation3 + $0x70] sm:$0xf0] %v4217_v57  ;;  %v2280_v15 = vpop.permute.xlu0 %2279  ;;  %v2296_v14 = vsel %vm347_vm5, %v2295_v21, %v2248_v56  ;;  %v4676_v21 = vld [vmem:[%s8160_s3] sm:$0xff] }
 0x371   :  { %v2304_v25 = vsel %vm349_vm6, %v2303_v12, %v2280_v15 }
 0x373   :  { %v3449_v0 = vpop.permute.xlu1 %3448 }
 0x374   :  { %v3481_v27 = vpop.permute.xlu0 %3480  ;;  %v3488_v6 = vsel %vm353_vm8, %v3487_v63, %v3449_v0 }
 0x375   :  { %v3496_v39 = vsel %vm355_vm9, %v3495_v38, %v3481_v27 }
 0x376   :  { %3498 = vst [vmem:[#allocation3 + $0x58] sm:$0xf] %v3496_v39 }
 0x377   :  { %v3919_v5 = vpop.permute.xlu1 %3918 }
 0x378   :  { %v3951_v35 = vpop.permute.xlu0 %3950  ;;  %v3958_v19 = vsel %vm353_vm8, %v3957_v43, %v3919_v5 }
 0x379   :  { %v3966_v10 = vsel %vm355_vm9, %v3965_v41, %v3951_v35 }
 0x37a   :  { %3968 = vst [vmem:[#allocation3 + $0x78] sm:$0xf] %v3966_v10 }
 0x37b   :  { %v4429_v18 = vpop.permute.xlu1 %4428 }
 0x37c   :  { %v2252_v52 = vpop.permute.xlu0 %2251  ;;  %v4462_v31 = vsel %vm343_vm3, %v8665_v22, %v4429_v18 }
 0x37d   :  { %v4483_v50 = vld [vmem:[#allocation3 + $0x58] sm:$0xff]  ;;  %v2297_v46 = vsel %vm349_vm6, %v2296_v14, %v2252_v52  ;;  %v4701_v14 = vld [vmem:[%s8161_s4] sm:$0xff] }
 0x37f   :  { %v2284_v55 = vpop.permute.xlu1 %2283 }
 0x380   :  { %v3453_v42 = vpop.permute.xlu0 %3452  ;;  %v2305_v28 = vsel %vm351_vm7, %v2304_v25, %v2284_v55 }
 0x381   :  { %v3489_v13 = vsel %vm355_vm9, %v3488_v6, %v3453_v42  ;;  %v4487_v30 = vld [vmem:[#allocation3 + $0x78] sm:$0xff] }
 0x382   :  { %3497 = vst [vmem:[#allocation3 + $0x50] sm:$0xf] %v3489_v13  ;;  %v4744_v34 = vpack.c.bf16 %v4487_v30, %v4483_v50 }
 0x383   :  { %v3923_v49 = vpop.permute.xlu1 %3922 }
 0x384   :  { %v3959_v26 = vsel %vm355_vm9, %v3958_v19, %v3923_v49  ;;  %4745 = vmatprep.subr.bf16.mxu1 %v4744_v34  ;;  %v4401_v58 = vpop.permute.xlu0 %4400 }
 0x385   :  { %3967 = vst [vmem:[#allocation3 + $0x70] sm:$0xf] %v3959_v26  ;;  %v4455_v38 = vsel %vm343_vm3, %v7759_v1, %v4401_v58 }
 0x387   :  { %v4433_v23 = vpop.permute.xlu1 %4432 }
 0x388   :  { %v2256_v51 = vpop.permute.xlu0 %2255  ;;  %v4463_v56 = vsel %vm345_vm4, %v4462_v31, %v4433_v23 }
 0x389   :  { %v4482_v24 = vld [vmem:[#allocation3 + $0x50] sm:$0xff]  ;;  %v2298_v33 = vsel %vm351_vm7, %v2297_v46, %v2256_v51 }
 0x38b   :  { %v2288_v48 = vpop.permute.xlu1 %2287 }
 0x38c   :  { %v4405_v44 = vpop.permute.xlu0 %4404  ;;  %v4486_v37 = vld [vmem:[#allocation3 + $0x70] sm:$0xff]  ;;  %v2306_v8 = vsel %vm353_vm8, %v2305_v28, %v2288_v48 }
 0x38d   :  { %v4746_v29 = vpack.c.bf16 %v4486_v37, %v4482_v24  ;;  %v4456_v39 = vsel %vm345_vm4, %v4455_v38, %v4405_v44 }
 0x38f   :  { %v4437_v62 = vpop.permute.xlu1 %4436  ;;  %4747 = vmatpush1.bf16.msra.mxu1 %v4746_v29 }
 0x390   :  { %v2260_v16 = vpop.permute.xlu0 %2259  ;;  %v4464_v9 = vsel %vm347_vm5, %v4463_v56, %v4437_v62 }
 0x391   :  { %v2299_v60 = vsel %vm353_vm8, %v2298_v33, %v2260_v16  ;;  %v4839_v16 = vmov 0  }
 0x392   :  { %4762 = vset.pattern.permute.xlu0 %v4839_v16  ;;  %4763 = vset.pattern.permute.xlu1 %v4839_v16 }
 0x393   :  { %v2292_v3 = vpop.permute.xlu1 %2291 }
 0x394   :  { %v2307_v2 = vsel %vm355_vm9, %v2306_v8, %v2292_v3  ;;  %v4409_v36 = vpop.permute.xlu0 %4408 }
 0x395   :  { %2309 = vst [vmem:[#allocation3 + $0x88] sm:$0xf] %v2307_v2  ;;  %v4457_v5 = vsel %vm347_vm5, %v4456_v39, %v4409_v36 }
 0x397   :  { %v4441_v7 = vpop.permute.xlu1 %4440 }
 0x398   :  { %v2264_v32 = vpop.permute.xlu0 %2263  ;;  %v4465_v27 = vsel %vm349_vm6, %v4464_v9, %v4441_v7 }
 0x399   :  { %v2300_v61 = vsel %vm355_vm9, %v2299_v60, %v2264_v32 }
 0x39a   :  { %2308 = vst [vmem:[#allocation3 + $0x80] sm:$0xf] %v2300_v61 }
 0x39b   :  { %v4413_v20 = vpop.permute.xlu1 %4412 }
 0x39c   :  { %v4445_v40 = vpop.permute.xlu0 %4444  ;;  %v4489_v17 = vld [vmem:[#allocation3 + $0x88] sm:$0xf]  ;;  %v4458_v10 = vsel %vm349_vm6, %v4457_v5, %v4413_v20 }
 0x39d   :  { %4724 = vmatprep.subr.msk.mxu0 %vm4496_vm10, %v4489_v17  ;;  %v4466_v54 = vsel %vm351_vm7, %v4465_v27, %v4445_v40 }
 0x39f   :  { %v4417_v57 = vpop.permute.xlu1 %4416 }
 0x3a0   :  { %v4449_v15 = vpop.permute.xlu0 %4448  ;;  %v4459_v18 = vsel %vm351_vm7, %v4458_v10, %v4417_v57 }
 0x3a1   :  { %v4488_v0 = vld [vmem:[#allocation3 + $0x80] sm:$0xf]  ;;  %v4467_v41 = vsel %vm353_vm8, %v4466_v54, %v4449_v15 }
 0x3a2   :  { %4725 = vmatpush1.msk.msra.mxu0 %vm4496_vm10, %v4488_v0 }
 0x3a3   :  { %v4421_v59 = vpop.permute.xlu1 %4420  ;;  %4726 = vmatmul.mubr.msk.f32.vlgmr.msra.gmra.mrb[0].mxu0 %vm4492_vm11, %v4471_v45 }
 0x3a4   :  { %v4453_v35 = vpop.permute.xlu0 %4452  ;;  %v4460_v52 = vsel %vm353_vm8, %v4459_v18, %v4421_v59 }
 0x3a5   :  { %v4468_v1 = vsel %vm355_vm9, %v4467_v41, %v4453_v35 }
 0x3a6   :  { %4470 = vst [vmem:[#allocation3 + $0x98] sm:$0xf] %v4468_v1 }
 0x3a7   :  { %v4425_v47 = vpop.permute.xlu1 %4424 }
 0x3a8   :  { %v4461_v63 = vsel %vm355_vm9, %v4460_v52, %v4425_v47 }
 0x3a9   :  { %4469 = vst [vmem:[#allocation3 + $0x90] sm:$0xf] %v4461_v63 }
 0x3ad   :  { %v4491_v55 = vld [vmem:[#allocation3 + $0x98] sm:$0xf] }
 0x3ae   :  { %4727 = vmatprep.subr.msk.mxu1 %vm4496_vm10, %v4491_v55 }
 0x3b0   :  { %v4490_v6 = vld [vmem:[#allocation3 + $0x90] sm:$0xf] }
 0x3b1   :  { %4728 = vmatpush1.msk.msra.mxu1 %vm4496_vm10, %v4490_v6 }
 0x3b2   :  { %4729 = vmatmul.mubr.msk.f32.vlgmr.msra.gmra.mrb[0].mxu1 %vm4492_vm11, %v4471_v45 }
 0x476   :  { %v4575_v42 = vpop.f32.mrb[0].mxu0 }
 0x477   :  { %v4577_v53 = vpop.f32.mrb[1].mxu0 }
 0x478   :  { %v4651_v13 = vadd.f32 %v4577_v53, %v4575_v42 }
 0x485   :  { %v4646_v50 = vpop.f32.mrb[0].mxu1 }
 0x486   :  { %v4652_v30 = vadd.f32 %v4651_v13, %v4646_v50  ;;  %v4648_v43 = vpop.f32.mrb[1].mxu1 }
 0x488   :  { %v4653_v34 = vadd.f32 %v4652_v30, %v4648_v43 }
 0x48a   :  { %4654 = vadd.xlane.f32.xlu0 %v4653_v34 }
 0x517   :  { %v4655_v19 = vpop.xlane.xlu0 %4654 }
 0x518   :  { %v4657_v49 = vmul.f32 0.001953125, %v4655_v19 }
 0x51a   :  { %v4658_v26 = vsub.f32 %v4575_v42, %v4657_v49  ;;  %v4659_v58 = vsub.f32 %v4577_v53, %v4657_v49  ;;  %v4660_v23 = vsub.f32 %v4646_v50, %v4657_v49  ;;  %v4661_v51 = vsub.f32 %v4648_v43, %v4657_v49 }
 0x51c   :  { %v4662_v48 = vmul.f32 %v4658_v26, %v4658_v26  ;;  %v4663_v44 = vmul.f32 %v4659_v58, %v4659_v58  ;;  %v4664_v24 = vmul.f32 %v4660_v23, %v4660_v23  ;;  %v4665_v29 = vmul.f32 %v4661_v51, %v4661_v51 }
 0x51e   :  { %v4666_v37 = vadd.f32 %v4663_v44, %v4662_v48 }
 0x520   :  { %v4667_v62 = vadd.f32 %v4666_v37, %v4664_v24 }
 0x522   :  { %v4668_v12 = vadd.f32 %v4667_v62, %v4665_v29 }
 0x524   :  { %4669 = vadd.xlane.f32.xlu1 %v4668_v12 }
 0x5b1   :  { %v4670_v25 = vpop.xlane.xlu1 %4669 }
 0x5b2   :  { %v4671_v28 = vmul.f32 0.001953125, %v4670_v25 }
 0x5b4   :  { %v4673_v4 = vadd.f32 1e-05, %v4671_v28 }
 0x5b6   :  { %4816 = vrsqrt.f32 %v4673_v4 }
 0x5c0   :  { %v4817_v8 = vpop.eup %4816 }
 0x5c1   :  { %v4675_v3 = vmul.f32 %v4817_v8, %v4672_v11 }
 0x5c3   :  { %4681 = vperm.xlu0 %4762, %v4675_v3   ;;  %v4677_v2 = vmul.f32 %v4675_v3, %v4657_v49 }
 0x5c5   :  { %v4678_v36 = vsub.f32 %v4676_v21, %v4677_v2 }
 0x5c7   :  { %4690 = vperm.xlu1 %4763, %v4678_v36  }
 0x5cb   :  { %4704 = vperm.xlu1 %4763, %v4701_v14  }
 0x642   :  { %v4682_v46 = vpop.permute.xlu0 %4681 }
 0x643   :  { %v4684_v33 = vmul.f32 %v4682_v46, %v4575_v42  ;;  %v4685_v7 = vmul.f32 %v4682_v46, %v4577_v53  ;;  %v4686_v60 = vmul.f32 %v4682_v46, %v4646_v50  ;;  %v4687_v32 = vmul.f32 %v4682_v46, %v4648_v43 }
 0x646   :  { %v4691_v61 = vpop.permute.xlu1 %4690 }
 0x647   :  { %v4693_v20 = vadd.f32 %v4691_v61, %v4684_v33  ;;  %v4694_v40 = vadd.f32 %v4691_v61, %v4685_v7  ;;  %v4695_v17 = vadd.f32 %v4691_v61, %v4686_v60  ;;  %v4696_v22 = vadd.f32 %v4691_v61, %v4687_v32 }
 0x649   :  { %vm4697_vm12 = vcmp.ge.f32.partialorder %v4693_v20, 0.0  ;;  %vm4698_vm13 = vcmp.ge.f32.partialorder %v4694_v40, 0.0  ;;  %vm4699_vm14 = vcmp.ge.f32.partialorder %v4695_v17, 0.0  ;;  %vm4700_vm15 = vcmp.ge.f32.partialorder %v4696_v22, 0.0 }
 0x64a   :  { %v4705_v31 = vpop.permute.xlu1 %4704 }
 0x64b   :  { %v4707_v57 = vmul.f32 %v4705_v31, %v4693_v20  ;;  %v4708_v56 = vmul.f32 %v4705_v31, %v4694_v40  ;;  %v4709_v15 = vmul.f32 %v4705_v31, %v4695_v17  ;;  %v4710_v45 = vmul.f32 %v4705_v31, %v4696_v22 }
 0x64d   :  { %v4711_v9 = vsel %vm4697_vm12, %v4693_v20, %v4707_v57  ;;  %v4712_v0 = vsel %vm4698_vm13, %v4694_v40, %v4708_v56  ;;  %v4713_v38 = vsel %vm4699_vm14, %v4695_v17, %v4709_v15  ;;  %v4714_v27 = vsel %vm4700_vm15, %v4696_v22, %v4710_v45 }
 0x64e   :  { %4715 = vst [vmem:[%s8162_s5] sm:$0xff] %v4711_v9  ;;  %4716 = vst [vmem:[%s8162_s5 + $0x8] sm:$0xff] %v4712_v0 }
 0x64f   :  { %4730 = vst [vmem:[%s8162_s5 + $0x10] sm:$0xff] %v4713_v38  ;;  %4731 = vst [vmem:[%s8162_s5 + $0x18] sm:$0xff] %v4714_v27 }

</bundles_post_ra>
